<compile_context>
chip_gen: v6e
topology: v6e:2x2x1
jax: 0.10.0
libtpu: 0.0.40
codegen_flags: <defaults>
</compile_context>

<pallas_src>
import functools

import jax
import jax.numpy as jnp
from jax.experimental import pallas as pl
from jax.experimental.pallas import tpu as pltpu

ACT_DTYPE = jnp.bfloat16   # weight / MXU-operand dtype (all accumulation is f32)


# ------------------------------ kernel helpers ------------------------------

def _ln_f32(x_f32, g, b, eps=1e-5):
    """LayerNorm over the last axis, math in f32 (safe on v5e: no bf16 VPU/EUP)."""
    mu = jnp.mean(x_f32, axis=-1, keepdims=True)
    var = jnp.mean(jnp.square(x_f32 - mu), axis=-1, keepdims=True)
    return (x_f32 - mu) * jax.lax.rsqrt(var + eps) * g.astype(jnp.float32) \
        + b.astype(jnp.float32)


# ------------------------------- fused kernel -------------------------------

def _vit_kernel(x_ref,                                   # (1, N, patch_dim) bf16
                patch_w_ref, patch_b_ref, pos_ref,       # (PD,D), (1,D), (N,D)
                a_ln_g_ref, a_ln_b_ref,                  # (S, 1, D)
                wqkv_ref, bqkv_ref,                      # (S*3*H, D, dh), (S*3*H, 1, dh)
                wo_ref, bo_ref,                          # (S*H, dh, D), (S, 1, D)
                f_ln_g_ref, f_ln_b_ref,                  # (S, 1, D)
                w1_ref, b1_ref,                          # (S, D, mlp), (S, 1, mlp)
                w2_ref, b2_ref,                          # (S, mlp, D), (S, 1, D)
                head_ln_g_ref, head_ln_b_ref,            # (1, D)
                head_w_ref, head_b_ref,                  # (D, C), (1, C)
                pred_ref,                                # (1, 1, C)  f32
                attn_ref,                                # (1, S*H, N, N) bf16
                *, num_stages, heads, dim_head, scale):
    """Whole ViT forward for one batch element; records every softmax output."""
    f32 = jnp.float32
    cdt = ACT_DTYPE

    # ---- patch embedding with the positional-embedding add fused in ---------
    patches = x_ref[0]                                            # (N, PD) bf16
    x = jnp.dot(patches, patch_w_ref[...], preferred_element_type=f32)
    x = x + patch_b_ref[...].astype(f32) + pos_ref[...].astype(f32)   # (N, D) f32

    for s in range(num_stages):            # transformer1 / transformer2 / transformer3
        # ---- pre-LN multi-head self-attention --------------------------------
        xn = _ln_f32(x, a_ln_g_ref[s], a_ln_b_ref[s]).astype(cdt)     # (N, D) bf16
        y = x                                                         # residual, f32
        # Heads are a static loop over LEADING-axis weight slices: no lane-
        # subrange slicing of a fused qkv and no concat; the out-projection is
        # accumulated per head.  (H=2 here; a fully head-batched dot_general
        # buys nothing extra at this size.)
        for h in range(heads):
            iq = (s * 3 + 0) * heads + h
            ik = (s * 3 + 1) * heads + h
            iv = (s * 3 + 2) * heads + h
            q = jnp.dot(xn, wqkv_ref[iq], preferred_element_type=f32) \
                + bqkv_ref[iq].astype(f32)                            # (N, dh) f32
            k = jnp.dot(xn, wqkv_ref[ik], preferred_element_type=f32) \
                + bqkv_ref[ik].astype(f32)
            v = jnp.dot(xn, wqkv_ref[iv], preferred_element_type=f32) \
                + bqkv_ref[iv].astype(f32)
            q = (q * scale).astype(cdt)      # fold softmax scale into q: (N,dh) muls
            k = k.astype(cdt)
            # scores = q @ k.T  (contract last dims), f32 MXU accumulation
            sc = jax.lax.dot_general(q, k, (((1,), (1,)), ((), ())),
                                     preferred_element_type=f32)      # (N, N) f32
            m = jnp.max(sc, axis=-1, keepdims=True)
            p = jnp.exp(sc - m)
            attn = p / jnp.sum(p, axis=-1, keepdims=True)   # exact softmax (recorded)
            # hooked `attend` output: store this head's map immediately, in bf16
            attn_ref[0, s * heads + h] = attn.astype(attn_ref.dtype)
            o_h = jnp.dot(attn.astype(cdt), v.astype(cdt),
                          preferred_element_type=f32)                 # (N, dh) f32
            y = y + jnp.dot(o_h.astype(cdt), wo_ref[s * heads + h],
                            preferred_element_type=f32)               # += o_h @ Wo[h]
        y = y + bo_ref[s].astype(f32)                                 # (N, D) f32

        # ---- pre-LN feed-forward ---------------------------------------------
        yn = _ln_f32(y, f_ln_g_ref[s], f_ln_b_ref[s]).astype(cdt)
        hh = jnp.dot(yn, w1_ref[s], preferred_element_type=f32) \
            + b1_ref[s].astype(f32)
        # TODO(synk): PyTorch nn.GELU defaults to exact erf-GELU; the tanh
        # approximation is kept because lax.erf has no guaranteed Mosaic lowering.
        hh = jax.nn.gelu(hh, approximate=True).astype(cdt)
        hh = jnp.dot(hh, w2_ref[s], preferred_element_type=f32) \
            + b2_ref[s].astype(f32)
        x = y + hh                                                    # (N, D) f32

    # ---- mean-pool + LN + classification head --------------------------------
    pooled = jnp.mean(x, axis=0, keepdims=True)                       # (1, D) f32
    pooled = _ln_f32(pooled, head_ln_g_ref[...], head_ln_b_ref[...]).astype(cdt)
    logits = jnp.dot(pooled, head_w_ref[...], preferred_element_type=f32) \
        + head_b_ref[...].astype(f32)                                 # (1, C) f32
    pred_ref[0] = logits.astype(pred_ref.dtype)


# ------------------------------- forward pass -------------------------------

def vit_forward(img, params, *, patch, heads, dim_head):
    """Fused ViT forward: img (B,C,H,W) -> (pred (B,C_out), attn (B,S,H,N,N) f32)."""
    B, C, H, W = img.shape
    # 'b c (h p1) (w p2) -> b (h w) (c p1 p2)' — pure layout plumbing in plain JAX
    x = img.astype(ACT_DTYPE).reshape(B, C, H // patch, patch, W // patch, patch)
    x = x.transpose(0, 2, 4, 1, 3, 5).reshape(
        B, (H // patch) * (W // patch), C * patch * patch)
    _, N, PD = x.shape

    num_stages = params["w1"].shape[0]
    num_classes = params["head_w"].shape[1]

    def rep(a):   # resident weight/bias: constant block index every grid step
        n = a.ndim
        return pl.BlockSpec(a.shape, lambda b: (0,) * n)

    weights = (params["patch_w"], params["patch_b"], params["pos"],
               params["a_ln_g"], params["a_ln_b"],
               params["wqkv"], params["bqkv"], params["wo"], params["bo"],
               params["f_ln_g"], params["f_ln_b"],
               params["w1"], params["b1"], params["w2"], params["b2"],
               params["head_ln_g"], params["head_ln_b"],
               params["head_w"], params["head_b"])

    kernel = functools.partial(_vit_kernel, num_stages=num_stages, heads=heads,
                               dim_head=dim_head, scale=dim_head ** -0.5)
    pred, attn = pl.pallas_call(
        kernel,
        out_shape=(jax.ShapeDtypeStruct((B, 1, num_classes), jnp.float32),
                   jax.ShapeDtypeStruct((B, num_stages * heads, N, N), ACT_DTYPE)),
        grid=(B,),
        in_specs=[pl.BlockSpec((1, N, PD), lambda b: (b, 0, 0))]
                 + [rep(w) for w in weights],
        out_specs=(
            pl.BlockSpec((1, 1, num_classes), lambda b: (b, 0, 0)),
            pl.BlockSpec((1, num_stages * heads, N, N), lambda b: (b, 0, 0, 0)),
        ),
        compiler_params=pltpu.CompilerParams(
            # TODO(synk): on v7x, pltpu.CORE_PARALLEL on this axis (or pl.core_map)
            # would split the batch across both TensorCores; kept portable here.
            dimension_semantics=("parallel",),
            vmem_limit_bytes=32 * 1024 * 1024),
    )(x, *weights)

    pred = pred.reshape(B, num_classes)
    attn = attn.reshape(B, num_stages, heads, N, N).astype(jnp.float32)
    return pred, attn


class Recorder:
    """JAX analogue of the PyTorch Recorder: returns (pred, stacked attn maps)."""

    def __init__(self, params, *, patch, heads, dim_head, share_params=False):
        self.params = params
        self.patch = patch
        self.heads = heads
        self.dim_head = dim_head
        self.share_params = share_params
        self.recordings = []
        self._fwd = jax.jit(functools.partial(
            vit_forward, patch=patch, heads=heads, dim_head=dim_head))

    def clear(self):
        self.recordings = []

    def __call__(self, img):
        self.clear()
        pred, attn = self._fwd(img, self.params)     # attn: (B, S, H, N, N) f32
        if self.share_params:
            # TODO(synk): assumes shared params hook only transformer1 & transformer3
            recs = [attn[:, 0], attn[:, 2]]
        else:
            recs = [attn[:, s] for s in range(attn.shape[1])]
        self.recordings = recs                        # mirrors Recorder._hook list
        attns = jnp.stack(recs, axis=1)               # torch.stack(recordings, dim=1)
        return pred, attns


# ------------------------------ parameter init ------------------------------

def init_params(key, *, patch_dim, dim, heads, dim_head, mlp_dim,
                num_classes, num_patches, num_stages=3):
    """Synthetic ViT weights laid out for the fused kernel.

    Head/stage weights are stacked on leading axes so the kernel can index
    them without lane-axis slicing (wqkv[(s*3+c)*H + h] is the (D, dh) weight
    of component c (0=q,1=k,2=v), head h of stage s)."""
    ks = iter(jax.random.split(key, 16))

    def w(shape):
        return (jax.random.normal(next(ks), shape, jnp.float32) * 0.02).astype(ACT_DTYPE)

    p = {}
    p["patch_w"] = w((patch_dim, dim))
    p["patch_b"] = jnp.zeros((1, dim), ACT_DTYPE)
    p["pos"] = w((num_patches, dim))

    p["a_ln_g"] = jnp.ones((num_stages, 1, dim), ACT_DTYPE)
    p["a_ln_b"] = jnp.zeros((num_stages, 1, dim), ACT_DTYPE)
    p["wqkv"] = w((num_stages * 3 * heads, dim, dim_head))
    p["bqkv"] = jnp.zeros((num_stages * 3 * heads, 1, dim_head), ACT_DTYPE)
    p["wo"] = w((num_stages * heads, dim_head, dim))
    p["bo"] = jnp.zeros((num_stages, 1, dim), ACT_DTYPE)

    p["f_ln_g"] = jnp.ones((num_stages, 1, dim), ACT_DTYPE)
    p["f_ln_b"] = jnp.zeros((num_stages, 1, dim), ACT_DTYPE)
    p["w1"] = w((num_stages, dim, mlp_dim))
    p["b1"] = jnp.zeros((num_stages, 1, mlp_dim), ACT_DTYPE)
    p["w2"] = w((num_stages, mlp_dim, dim))
    p["b2"] = jnp.zeros((num_stages, 1, dim), ACT_DTYPE)

    p["head_ln_g"] = jnp.ones((1, dim), ACT_DTYPE)
    p["head_ln_b"] = jnp.zeros((1, dim), ACT_DTYPE)
    p["head_w"] = w((dim, num_classes))
    p["head_b"] = jnp.zeros((1, num_classes), ACT_DTYPE)
    return p


# ----------------------------------- main -----------------------------------

if __name__ == "__main__":
    B, C, HW = 2, 3, 16
    patch = 4
    dim, heads, dim_head, mlp_dim, num_classes = 32, 2, 16, 64, 10
    num_patches = (HW // patch) * (HW // patch)      # 16 tokens
    patch_dim = C * patch * patch                    # 48

    root = jax.random.PRNGKey(0)
    k_img, k_params = jax.random.split(root)
    img = jax.random.normal(k_img, (B, C, HW, HW), jnp.float32)

    params = init_params(k_params, patch_dim=patch_dim, dim=dim, heads=heads,
                         dim_head=dim_head, mlp_dim=mlp_dim,
                         num_classes=num_classes, num_patches=num_patches)

    recorder = Recorder(params, patch=patch, heads=heads, dim_head=dim_head)
    pred, attns = recorder(img)
    pred, attns = jax.block_until_ready((pred, attns))

    assert pred.shape == (B, num_classes)
    assert attns.shape == (B, 3, heads, num_patches, num_patches)
    assert bool(jnp.all(jnp.isfinite(pred)))
    # softmax is exact-normalized in-kernel; tolerance covers bf16 map storage
    assert jnp.allclose(jnp.sum(attns, axis=-1), 1.0, atol=1e-2)

    print("KERNEL_OK")
</pallas_src>

<mosaic_0001>
module attributes {stable_mosaic.version = 11 : i64} {
  func.func @_vit_kernel(%arg0: i32, %arg1: memref<1x16x48xbf16, #tpu.memory_space<vmem>>, %arg2: memref<48x32xbf16, #tpu.memory_space<vmem>>, %arg3: memref<1x32xbf16, #tpu.memory_space<vmem>>, %arg4: memref<16x32xbf16, #tpu.memory_space<vmem>>, %arg5: memref<3x1x32xbf16, #tpu.memory_space<vmem>>, %arg6: memref<3x1x32xbf16, #tpu.memory_space<vmem>>, %arg7: memref<18x32x16xbf16, #tpu.memory_space<vmem>>, %arg8: memref<18x1x16xbf16, #tpu.memory_space<vmem>>, %arg9: memref<6x16x32xbf16, #tpu.memory_space<vmem>>, %arg10: memref<3x1x32xbf16, #tpu.memory_space<vmem>>, %arg11: memref<3x1x32xbf16, #tpu.memory_space<vmem>>, %arg12: memref<3x1x32xbf16, #tpu.memory_space<vmem>>, %arg13: memref<3x32x64xbf16, #tpu.memory_space<vmem>>, %arg14: memref<3x1x64xbf16, #tpu.memory_space<vmem>>, %arg15: memref<3x64x32xbf16, #tpu.memory_space<vmem>>, %arg16: memref<3x1x32xbf16, #tpu.memory_space<vmem>>, %arg17: memref<1x32xbf16, #tpu.memory_space<vmem>>, %arg18: memref<1x32xbf16, #tpu.memory_space<vmem>>, %arg19: memref<32x10xbf16, #tpu.memory_space<vmem>>, %arg20: memref<1x10xbf16, #tpu.memory_space<vmem>>, %arg21: memref<1x1x10xf32, #tpu.memory_space<vmem>>, %arg22: memref<1x6x16x16xbf16, #tpu.memory_space<vmem>>) attributes {dimension_semantics = [#tpu.dimension_semantics<parallel>], iteration_bounds = array<i64: 2>, scalar_prefetch = 0 : i64, scratch_operands = 0 : i64, tpu.core_type = #tpu.core_type<tc>, window_params = [{transform_indices = @transform_0, window_bounds = array<i64: 1, 16, 48>}, {pipeline_mode = #tpu.pipeline_mode<synchronous>, transform_indices = @transform_1, window_bounds = array<i64: 48, 32>}, {pipeline_mode = #tpu.pipeline_mode<synchronous>, transform_indices = @transform_2, window_bounds = array<i64: 1, 32>}, {pipeline_mode = #tpu.pipeline_mode<synchronous>, transform_indices = @transform_3, window_bounds = array<i64: 16, 32>}, {pipeline_mode = #tpu.pipeline_mode<synchronous>, transform_indices = @transform_4, window_bounds = array<i64: 3, 1, 32>}, {pipeline_mode = #tpu.pipeline_mode<synchronous>, transform_indices = @transform_5, window_bounds = array<i64: 3, 1, 32>}, {pipeline_mode = #tpu.pipeline_mode<synchronous>, transform_indices = @transform_6, window_bounds = array<i64: 18, 32, 16>}, {pipeline_mode = #tpu.pipeline_mode<synchronous>, transform_indices = @transform_7, window_bounds = array<i64: 18, 1, 16>}, {pipeline_mode = #tpu.pipeline_mode<synchronous>, transform_indices = @transform_8, window_bounds = array<i64: 6, 16, 32>}, {pipeline_mode = #tpu.pipeline_mode<synchronous>, transform_indices = @transform_9, window_bounds = array<i64: 3, 1, 32>}, {pipeline_mode = #tpu.pipeline_mode<synchronous>, transform_indices = @transform_10, window_bounds = array<i64: 3, 1, 32>}, {pipeline_mode = #tpu.pipeline_mode<synchronous>, transform_indices = @transform_11, window_bounds = array<i64: 3, 1, 32>}, {pipeline_mode = #tpu.pipeline_mode<synchronous>, transform_indices = @transform_12, window_bounds = array<i64: 3, 32, 64>}, {pipeline_mode = #tpu.pipeline_mode<synchronous>, transform_indices = @transform_13, window_bounds = array<i64: 3, 1, 64>}, {pipeline_mode = #tpu.pipeline_mode<synchronous>, transform_indices = @transform_14, window_bounds = array<i64: 3, 64, 32>}, {pipeline_mode = #tpu.pipeline_mode<synchronous>, transform_indices = @transform_15, window_bounds = array<i64: 3, 1, 32>}, {pipeline_mode = #tpu.pipeline_mode<synchronous>, transform_indices = @transform_16, window_bounds = array<i64: 1, 32>}, {pipeline_mode = #tpu.pipeline_mode<synchronous>, transform_indices = @transform_17, window_bounds = array<i64: 1, 32>}, {pipeline_mode = #tpu.pipeline_mode<synchronous>, transform_indices = @transform_18, window_bounds = array<i64: 32, 10>}, {pipeline_mode = #tpu.pipeline_mode<synchronous>, transform_indices = @transform_19, window_bounds = array<i64: 1, 10>}, {transform_indices = @transform_20, window_bounds = array<i64: 1, 1, 10>}, {transform_indices = @transform_21, window_bounds = array<i64: 1, 6, 16, 16>}]} {
    %c0 = arith.constant 0 : index
    %c0_0 = arith.constant 0 : index
    %c0_1 = arith.constant 0 : index
    %0 = vector.load %arg1[%c0, %c0_0, %c0_1] : memref<1x16x48xbf16, #tpu.memory_space<vmem>>, vector<1x16x48xbf16>
    %1 = vector.shape_cast %0 : vector<1x16x48xbf16> to vector<16x48xbf16>
    %c0_2 = arith.constant 0 : index
    %c0_3 = arith.constant 0 : index
    %2 = vector.load %arg2[%c0_2, %c0_3] : memref<48x32xbf16, #tpu.memory_space<vmem>>, vector<48x32xbf16>
    %cst = arith.constant dense<0.000000e+00> : vector<16x32xf32>
    %3 = tpu.matmul %1, %2, %cst {dimension_numbers = #tpu.dot_dimension_numbers<[1], [0], [0], [1], [0, 0, 1, 1], [], []>} : vector<16x48xbf16>, vector<48x32xbf16>, vector<16x32xf32> -> vector<16x32xf32>
    %c0_4 = arith.constant 0 : index
    %c0_5 = arith.constant 0 : index
    %4 = vector.load %arg3[%c0_4, %c0_5] : memref<1x32xbf16, #tpu.memory_space<vmem>>, vector<1x32xbf16>
    %5 = arith.extf %4 : vector<1x32xbf16> to vector<1x32xf32>
    %6 = vector.broadcast %5 : vector<1x32xf32> to vector<16x32xf32>
    %7 = arith.addf %3, %6 : vector<16x32xf32>
    %c0_6 = arith.constant 0 : index
    %c0_7 = arith.constant 0 : index
    %8 = vector.load %arg4[%c0_6, %c0_7] : memref<16x32xbf16, #tpu.memory_space<vmem>>, vector<16x32xbf16>
    %9 = arith.extf %8 : vector<16x32xbf16> to vector<16x32xf32>
    %10 = arith.addf %7, %9 : vector<16x32xf32>
    %c0_8 = arith.constant 0 : index
    %c0_9 = arith.constant 0 : index
    %c0_10 = arith.constant 0 : index
    %11 = vector.load %arg5[%c0_8, %c0_9, %c0_10] : memref<3x1x32xbf16, #tpu.memory_space<vmem>>, vector<1x1x32xbf16>
    %12 = vector.shape_cast %11 : vector<1x1x32xbf16> to vector<1x32xbf16>
    %c0_11 = arith.constant 0 : index
    %c0_12 = arith.constant 0 : index
    %c0_13 = arith.constant 0 : index
    %13 = vector.load %arg6[%c0_11, %c0_12, %c0_13] : memref<3x1x32xbf16, #tpu.memory_space<vmem>>, vector<1x1x32xbf16>
    %14 = vector.shape_cast %13 : vector<1x1x32xbf16> to vector<1x32xbf16>
    %cst_14 = arith.constant dense<0.000000e+00> : vector<16xf32>
    %15 = vector.multi_reduction <add>, %10, %cst_14 [1] : vector<16x32xf32> to vector<16xf32>
    %16 = vector.shape_cast %15 : vector<16xf32> to vector<16x1xf32>
    %cst_15 = arith.constant 3.200000e+01 : f32
    %17 = vector.broadcast %cst_15 : f32 to vector<16x1xf32>
    %18 = arith.divf %16, %17 : vector<16x1xf32>
    %19 = vector.broadcast %18 : vector<16x1xf32> to vector<16x32xf32>
    %20 = arith.subf %10, %19 : vector<16x32xf32>
    %21 = arith.mulf %20, %20 : vector<16x32xf32>
    %cst_16 = arith.constant dense<0.000000e+00> : vector<16xf32>
    %22 = vector.multi_reduction <add>, %21, %cst_16 [1] : vector<16x32xf32> to vector<16xf32>
    %23 = vector.shape_cast %22 : vector<16xf32> to vector<16x1xf32>
    %cst_17 = arith.constant 3.200000e+01 : f32
    %24 = vector.broadcast %cst_17 : f32 to vector<16x1xf32>
    %25 = arith.divf %23, %24 : vector<16x1xf32>
    %26 = vector.broadcast %18 : vector<16x1xf32> to vector<16x32xf32>
    %27 = arith.subf %10, %26 : vector<16x32xf32>
    %cst_18 = arith.constant 9.99999974E-6 : f32
    %28 = vector.broadcast %cst_18 : f32 to vector<16x1xf32>
    %29 = arith.addf %25, %28 : vector<16x1xf32>
    %30 = math.rsqrt %29 : vector<16x1xf32>
    %31 = vector.broadcast %30 : vector<16x1xf32> to vector<16x32xf32>
    %32 = arith.mulf %27, %31 : vector<16x32xf32>
    %33 = arith.extf %12 : vector<1x32xbf16> to vector<1x32xf32>
    %34 = vector.broadcast %33 : vector<1x32xf32> to vector<16x32xf32>
    %35 = arith.mulf %32, %34 : vector<16x32xf32>
    %36 = arith.extf %14 : vector<1x32xbf16> to vector<1x32xf32>
    %37 = vector.broadcast %36 : vector<1x32xf32> to vector<16x32xf32>
    %38 = arith.addf %35, %37 : vector<16x32xf32>
    %39 = arith.truncf %38 : vector<16x32xf32> to vector<16x32xbf16>
    %c0_19 = arith.constant 0 : index
    %c0_20 = arith.constant 0 : index
    %c0_21 = arith.constant 0 : index
    %40 = vector.load %arg7[%c0_19, %c0_20, %c0_21] : memref<18x32x16xbf16, #tpu.memory_space<vmem>>, vector<1x32x16xbf16>
    %41 = vector.shape_cast %40 : vector<1x32x16xbf16> to vector<32x16xbf16>
    %cst_22 = arith.constant dense<0.000000e+00> : vector<16x16xf32>
    %42 = tpu.matmul %39, %41, %cst_22 {dimension_numbers = #tpu.dot_dimension_numbers<[1], [0], [0], [1], [0, 0, 1, 1], [], []>} : vector<16x32xbf16>, vector<32x16xbf16>, vector<16x16xf32> -> vector<16x16xf32>
    %c0_23 = arith.constant 0 : index
    %c0_24 = arith.constant 0 : index
    %c0_25 = arith.constant 0 : index
    %43 = vector.load %arg8[%c0_23, %c0_24, %c0_25] : memref<18x1x16xbf16, #tpu.memory_space<vmem>>, vector<1x1x16xbf16>
    %44 = vector.shape_cast %43 : vector<1x1x16xbf16> to vector<1x16xbf16>
    %45 = arith.extf %44 : vector<1x16xbf16> to vector<1x16xf32>
    %46 = vector.broadcast %45 : vector<1x16xf32> to vector<16x16xf32>
    %47 = arith.addf %42, %46 : vector<16x16xf32>
    %c2 = arith.constant 2 : index
    %c0_26 = arith.constant 0 : index
    %c0_27 = arith.constant 0 : index
    %48 = vector.load %arg7[%c2, %c0_26, %c0_27] : memref<18x32x16xbf16, #tpu.memory_space<vmem>>, vector<1x32x16xbf16>
    %49 = vector.shape_cast %48 : vector<1x32x16xbf16> to vector<32x16xbf16>
    %cst_28 = arith.constant dense<0.000000e+00> : vector<16x16xf32>
    %50 = tpu.matmul %39, %49, %cst_28 {dimension_numbers = #tpu.dot_dimension_numbers<[1], [0], [0], [1], [0, 0, 1, 1], [], []>} : vector<16x32xbf16>, vector<32x16xbf16>, vector<16x16xf32> -> vector<16x16xf32>
    %c2_29 = arith.constant 2 : index
    %c0_30 = arith.constant 0 : index
    %c0_31 = arith.constant 0 : index
    %51 = vector.load %arg8[%c2_29, %c0_30, %c0_31] : memref<18x1x16xbf16, #tpu.memory_space<vmem>>, vector<1x1x16xbf16>
    %52 = vector.shape_cast %51 : vector<1x1x16xbf16> to vector<1x16xbf16>
    %53 = arith.extf %52 : vector<1x16xbf16> to vector<1x16xf32>
    %54 = vector.broadcast %53 : vector<1x16xf32> to vector<16x16xf32>
    %55 = arith.addf %50, %54 : vector<16x16xf32>
    %c4 = arith.constant 4 : index
    %c0_32 = arith.constant 0 : index
    %c0_33 = arith.constant 0 : index
    %56 = vector.load %arg7[%c4, %c0_32, %c0_33] : memref<18x32x16xbf16, #tpu.memory_space<vmem>>, vector<1x32x16xbf16>
    %57 = vector.shape_cast %56 : vector<1x32x16xbf16> to vector<32x16xbf16>
    %cst_34 = arith.constant dense<0.000000e+00> : vector<16x16xf32>
    %58 = tpu.matmul %39, %57, %cst_34 {dimension_numbers = #tpu.dot_dimension_numbers<[1], [0], [0], [1], [0, 0, 1, 1], [], []>} : vector<16x32xbf16>, vector<32x16xbf16>, vector<16x16xf32> -> vector<16x16xf32>
    %c4_35 = arith.constant 4 : index
    %c0_36 = arith.constant 0 : index
    %c0_37 = arith.constant 0 : index
    %59 = vector.load %arg8[%c4_35, %c0_36, %c0_37] : memref<18x1x16xbf16, #tpu.memory_space<vmem>>, vector<1x1x16xbf16>
    %60 = vector.shape_cast %59 : vector<1x1x16xbf16> to vector<1x16xbf16>
    %61 = arith.extf %60 : vector<1x16xbf16> to vector<1x16xf32>
    %62 = vector.broadcast %61 : vector<1x16xf32> to vector<16x16xf32>
    %63 = arith.addf %58, %62 : vector<16x16xf32>
    %cst_38 = arith.constant 2.500000e-01 : f32
    %64 = vector.broadcast %cst_38 : f32 to vector<16x16xf32>
    %65 = arith.mulf %47, %64 : vector<16x16xf32>
    %66 = arith.truncf %65 : vector<16x16xf32> to vector<16x16xbf16>
    %67 = arith.truncf %55 : vector<16x16xf32> to vector<16x16xbf16>
    %cst_39 = arith.constant dense<0.000000e+00> : vector<16x16xf32>
    %68 = tpu.matmul %66, %67, %cst_39 {dimension_numbers = #tpu.dot_dimension_numbers<[1], [1], [0], [0], [0, 0, 1, 0], [], []>} : vector<16x16xbf16>, vector<16x16xbf16>, vector<16x16xf32> -> vector<16x16xf32>
    %cst_40 = arith.constant dense<0xFF800000> : vector<16xf32>
    %69 = vector.multi_reduction <maximumf>, %68, %cst_40 [1] : vector<16x16xf32> to vector<16xf32>
    %70 = vector.shape_cast %69 : vector<16xf32> to vector<16x1xf32>
    %71 = vector.broadcast %70 : vector<16x1xf32> to vector<16x16xf32>
    %72 = arith.subf %68, %71 : vector<16x16xf32>
    %73 = math.exp %72 : vector<16x16xf32>
    %cst_41 = arith.constant dense<0.000000e+00> : vector<16xf32>
    %74 = vector.multi_reduction <add>, %73, %cst_41 [1] : vector<16x16xf32> to vector<16xf32>
    %75 = vector.shape_cast %74 : vector<16xf32> to vector<16x1xf32>
    %76 = vector.broadcast %75 : vector<16x1xf32> to vector<16x16xf32>
    %77 = arith.divf %73, %76 : vector<16x16xf32>
    %78 = arith.truncf %77 : vector<16x16xf32> to vector<16x16xbf16>
    %c0_42 = arith.constant 0 : index
    %c0_43 = arith.constant 0 : index
    %c0_44 = arith.constant 0 : index
    %c0_45 = arith.constant 0 : index
    %79 = vector.load %arg22[%c0_42, %c0_43, %c0_44, %c0_45] : memref<1x6x16x16xbf16, #tpu.memory_space<vmem>>, vector<1x1x16x16xbf16>
    %80 = vector.shape_cast %79 : vector<1x1x16x16xbf16> to vector<16x16xbf16>
    %81 = vector.shape_cast %78 : vector<16x16xbf16> to vector<1x1x16x16xbf16>
    tpu.vector_store %arg22[%c0_42, %c0_43, %c0_44, %c0_45], %81 {strides = array<i32>} : memref<1x6x16x16xbf16, #tpu.memory_space<vmem>>, vector<1x1x16x16xbf16>,
    %82 = arith.truncf %77 : vector<16x16xf32> to vector<16x16xbf16>
    %83 = arith.truncf %63 : vector<16x16xf32> to vector<16x16xbf16>
    %cst_46 = arith.constant dense<0.000000e+00> : vector<16x16xf32>
    %84 = tpu.matmul %82, %83, %cst_46 {dimension_numbers = #tpu.dot_dimension_numbers<[1], [0], [0], [1], [0, 0, 1, 1], [], []>} : vector<16x16xbf16>, vector<16x16xbf16>, vector<16x16xf32> -> vector<16x16xf32>
    %85 = arith.truncf %84 : vector<16x16xf32> to vector<16x16xbf16>
    %c0_47 = arith.constant 0 : index
    %c0_48 = arith.constant 0 : index
    %c0_49 = arith.constant 0 : index
    %86 = vector.load %arg9[%c0_47, %c0_48, %c0_49] : memref<6x16x32xbf16, #tpu.memory_space<vmem>>, vector<1x16x32xbf16>
    %87 = vector.shape_cast %86 : vector<1x16x32xbf16> to vector<16x32xbf16>
    %cst_50 = arith.constant dense<0.000000e+00> : vector<16x32xf32>
    %88 = tpu.matmul %85, %87, %cst_50 {dimension_numbers = #tpu.dot_dimension_numbers<[1], [0], [0], [1], [0, 0, 1, 1], [], []>} : vector<16x16xbf16>, vector<16x32xbf16>, vector<16x32xf32> -> vector<16x32xf32>
    %89 = arith.addf %10, %88 : vector<16x32xf32>
    %c1 = arith.constant 1 : index
    %c0_51 = arith.constant 0 : index
    %c0_52 = arith.constant 0 : index
    %90 = vector.load %arg7[%c1, %c0_51, %c0_52] : memref<18x32x16xbf16, #tpu.memory_space<vmem>>, vector<1x32x16xbf16>
    %91 = vector.shape_cast %90 : vector<1x32x16xbf16> to vector<32x16xbf16>
    %cst_53 = arith.constant dense<0.000000e+00> : vector<16x16xf32>
    %92 = tpu.matmul %39, %91, %cst_53 {dimension_numbers = #tpu.dot_dimension_numbers<[1], [0], [0], [1], [0, 0, 1, 1], [], []>} : vector<16x32xbf16>, vector<32x16xbf16>, vector<16x16xf32> -> vector<16x16xf32>
    %c1_54 = arith.constant 1 : index
    %c0_55 = arith.constant 0 : index
    %c0_56 = arith.constant 0 : index
    %93 = vector.load %arg8[%c1_54, %c0_55, %c0_56] : memref<18x1x16xbf16, #tpu.memory_space<vmem>>, vector<1x1x16xbf16>
    %94 = vector.shape_cast %93 : vector<1x1x16xbf16> to vector<1x16xbf16>
    %95 = arith.extf %94 : vector<1x16xbf16> to vector<1x16xf32>
    %96 = vector.broadcast %95 : vector<1x16xf32> to vector<16x16xf32>
    %97 = arith.addf %92, %96 : vector<16x16xf32>
    %c3 = arith.constant 3 : index
    %c0_57 = arith.constant 0 : index
    %c0_58 = arith.constant 0 : index
    %98 = vector.load %arg7[%c3, %c0_57, %c0_58] : memref<18x32x16xbf16, #tpu.memory_space<vmem>>, vector<1x32x16xbf16>
    %99 = vector.shape_cast %98 : vector<1x32x16xbf16> to vector<32x16xbf16>
    %cst_59 = arith.constant dense<0.000000e+00> : vector<16x16xf32>
    %100 = tpu.matmul %39, %99, %cst_59 {dimension_numbers = #tpu.dot_dimension_numbers<[1], [0], [0], [1], [0, 0, 1, 1], [], []>} : vector<16x32xbf16>, vector<32x16xbf16>, vector<16x16xf32> -> vector<16x16xf32>
    %c3_60 = arith.constant 3 : index
    %c0_61 = arith.constant 0 : index
    %c0_62 = arith.constant 0 : index
    %101 = vector.load %arg8[%c3_60, %c0_61, %c0_62] : memref<18x1x16xbf16, #tpu.memory_space<vmem>>, vector<1x1x16xbf16>
    %102 = vector.shape_cast %101 : vector<1x1x16xbf16> to vector<1x16xbf16>
    %103 = arith.extf %102 : vector<1x16xbf16> to vector<1x16xf32>
    %104 = vector.broadcast %103 : vector<1x16xf32> to vector<16x16xf32>
    %105 = arith.addf %100, %104 : vector<16x16xf32>
    %c5 = arith.constant 5 : index
    %c0_63 = arith.constant 0 : index
    %c0_64 = arith.constant 0 : index
    %106 = vector.load %arg7[%c5, %c0_63, %c0_64] : memref<18x32x16xbf16, #tpu.memory_space<vmem>>, vector<1x32x16xbf16>
    %107 = vector.shape_cast %106 : vector<1x32x16xbf16> to vector<32x16xbf16>
    %cst_65 = arith.constant dense<0.000000e+00> : vector<16x16xf32>
    %108 = tpu.matmul %39, %107, %cst_65 {dimension_numbers = #tpu.dot_dimension_numbers<[1], [0], [0], [1], [0, 0, 1, 1], [], []>} : vector<16x32xbf16>, vector<32x16xbf16>, vector<16x16xf32> -> vector<16x16xf32>
    %c5_66 = arith.constant 5 : index
    %c0_67 = arith.constant 0 : index
    %c0_68 = arith.constant 0 : index
    %109 = vector.load %arg8[%c5_66, %c0_67, %c0_68] : memref<18x1x16xbf16, #tpu.memory_space<vmem>>, vector<1x1x16xbf16>
    %110 = vector.shape_cast %109 : vector<1x1x16xbf16> to vector<1x16xbf16>
    %111 = arith.extf %110 : vector<1x16xbf16> to vector<1x16xf32>
    %112 = vector.broadcast %111 : vector<1x16xf32> to vector<16x16xf32>
    %113 = arith.addf %108, %112 : vector<16x16xf32>
    %cst_69 = arith.constant 2.500000e-01 : f32
    %114 = vector.broadcast %cst_69 : f32 to vector<16x16xf32>
    %115 = arith.mulf %97, %114 : vector<16x16xf32>
    %116 = arith.truncf %115 : vector<16x16xf32> to vector<16x16xbf16>
    %117 = arith.truncf %105 : vector<16x16xf32> to vector<16x16xbf16>
    %cst_70 = arith.constant dense<0.000000e+00> : vector<16x16xf32>
    %118 = tpu.matmul %116, %117, %cst_70 {dimension_numbers = #tpu.dot_dimension_numbers<[1], [1], [0], [0], [0, 0, 1, 0], [], []>} : vector<16x16xbf16>, vector<16x16xbf16>, vector<16x16xf32> -> vector<16x16xf32>
    %cst_71 = arith.constant dense<0xFF800000> : vector<16xf32>
    %119 = vector.multi_reduction <maximumf>, %118, %cst_71 [1] : vector<16x16xf32> to vector<16xf32>
    %120 = vector.shape_cast %119 : vector<16xf32> to vector<16x1xf32>
    %121 = vector.broadcast %120 : vector<16x1xf32> to vector<16x16xf32>
    %122 = arith.subf %118, %121 : vector<16x16xf32>
    %123 = math.exp %122 : vector<16x16xf32>
    %cst_72 = arith.constant dense<0.000000e+00> : vector<16xf32>
    %124 = vector.multi_reduction <add>, %123, %cst_72 [1] : vector<16x16xf32> to vector<16xf32>
    %125 = vector.shape_cast %124 : vector<16xf32> to vector<16x1xf32>
    %126 = vector.broadcast %125 : vector<16x1xf32> to vector<16x16xf32>
    %127 = arith.divf %123, %126 : vector<16x16xf32>
    %128 = arith.truncf %127 : vector<16x16xf32> to vector<16x16xbf16>
    %c0_73 = arith.constant 0 : index
    %c1_74 = arith.constant 1 : index
    %c0_75 = arith.constant 0 : index
    %c0_76 = arith.constant 0 : index
    %129 = vector.load %arg22[%c0_73, %c1_74, %c0_75, %c0_76] : memref<1x6x16x16xbf16, #tpu.memory_space<vmem>>, vector<1x1x16x16xbf16>
    %130 = vector.shape_cast %129 : vector<1x1x16x16xbf16> to vector<16x16xbf16>
    %131 = vector.shape_cast %128 : vector<16x16xbf16> to vector<1x1x16x16xbf16>
    tpu.vector_store %arg22[%c0_73, %c1_74, %c0_75, %c0_76], %131 {strides = array<i32>} : memref<1x6x16x16xbf16, #tpu.memory_space<vmem>>, vector<1x1x16x16xbf16>,
    %132 = arith.truncf %127 : vector<16x16xf32> to vector<16x16xbf16>
    %133 = arith.truncf %113 : vector<16x16xf32> to vector<16x16xbf16>
    %cst_77 = arith.constant dense<0.000000e+00> : vector<16x16xf32>
    %134 = tpu.matmul %132, %133, %cst_77 {dimension_numbers = #tpu.dot_dimension_numbers<[1], [0], [0], [1], [0, 0, 1, 1], [], []>} : vector<16x16xbf16>, vector<16x16xbf16>, vector<16x16xf32> -> vector<16x16xf32>
    %135 = arith.truncf %134 : vector<16x16xf32> to vector<16x16xbf16>
    %c1_78 = arith.constant 1 : index
    %c0_79 = arith.constant 0 : index
    %c0_80 = arith.constant 0 : index
    %136 = vector.load %arg9[%c1_78, %c0_79, %c0_80] : memref<6x16x32xbf16, #tpu.memory_space<vmem>>, vector<1x16x32xbf16>
    %137 = vector.shape_cast %136 : vector<1x16x32xbf16> to vector<16x32xbf16>
    %cst_81 = arith.constant dense<0.000000e+00> : vector<16x32xf32>
    %138 = tpu.matmul %135, %137, %cst_81 {dimension_numbers = #tpu.dot_dimension_numbers<[1], [0], [0], [1], [0, 0, 1, 1], [], []>} : vector<16x16xbf16>, vector<16x32xbf16>, vector<16x32xf32> -> vector<16x32xf32>
    %139 = arith.addf %89, %138 : vector<16x32xf32>
    %c0_82 = arith.constant 0 : index
    %c0_83 = arith.constant 0 : index
    %c0_84 = arith.constant 0 : index
    %140 = vector.load %arg10[%c0_82, %c0_83, %c0_84] : memref<3x1x32xbf16, #tpu.memory_space<vmem>>, vector<1x1x32xbf16>
    %141 = vector.shape_cast %140 : vector<1x1x32xbf16> to vector<1x32xbf16>
    %142 = arith.extf %141 : vector<1x32xbf16> to vector<1x32xf32>
    %143 = vector.broadcast %142 : vector<1x32xf32> to vector<16x32xf32>
    %144 = arith.addf %139, %143 : vector<16x32xf32>
    %c0_85 = arith.constant 0 : index
    %c0_86 = arith.constant 0 : index
    %c0_87 = arith.constant 0 : index
    %145 = vector.load %arg11[%c0_85, %c0_86, %c0_87] : memref<3x1x32xbf16, #tpu.memory_space<vmem>>, vector<1x1x32xbf16>
    %146 = vector.shape_cast %145 : vector<1x1x32xbf16> to vector<1x32xbf16>
    %c0_88 = arith.constant 0 : index
    %c0_89 = arith.constant 0 : index
    %c0_90 = arith.constant 0 : index
    %147 = vector.load %arg12[%c0_88, %c0_89, %c0_90] : memref<3x1x32xbf16, #tpu.memory_space<vmem>>, vector<1x1x32xbf16>
    %148 = vector.shape_cast %147 : vector<1x1x32xbf16> to vector<1x32xbf16>
    %cst_91 = arith.constant dense<0.000000e+00> : vector<16xf32>
    %149 = vector.multi_reduction <add>, %144, %cst_91 [1] : vector<16x32xf32> to vector<16xf32>
    %150 = vector.shape_cast %149 : vector<16xf32> to vector<16x1xf32>
    %cst_92 = arith.constant 3.200000e+01 : f32
    %151 = vector.broadcast %cst_92 : f32 to vector<16x1xf32>
    %152 = arith.divf %150, %151 : vector<16x1xf32>
    %153 = vector.broadcast %152 : vector<16x1xf32> to vector<16x32xf32>
    %154 = arith.subf %144, %153 : vector<16x32xf32>
    %155 = arith.mulf %154, %154 : vector<16x32xf32>
    %cst_93 = arith.constant dense<0.000000e+00> : vector<16xf32>
    %156 = vector.multi_reduction <add>, %155, %cst_93 [1] : vector<16x32xf32> to vector<16xf32>
    %157 = vector.shape_cast %156 : vector<16xf32> to vector<16x1xf32>
    %cst_94 = arith.constant 3.200000e+01 : f32
    %158 = vector.broadcast %cst_94 : f32 to vector<16x1xf32>
    %159 = arith.divf %157, %158 : vector<16x1xf32>
    %160 = vector.broadcast %152 : vector<16x1xf32> to vector<16x32xf32>
    %161 = arith.subf %144, %160 : vector<16x32xf32>
    %cst_95 = arith.constant 9.99999974E-6 : f32
    %162 = vector.broadcast %cst_95 : f32 to vector<16x1xf32>
    %163 = arith.addf %159, %162 : vector<16x1xf32>
    %164 = math.rsqrt %163 : vector<16x1xf32>
    %165 = vector.broadcast %164 : vector<16x1xf32> to vector<16x32xf32>
    %166 = arith.mulf %161, %165 : vector<16x32xf32>
    %167 = arith.extf %146 : vector<1x32xbf16> to vector<1x32xf32>
    %168 = vector.broadcast %167 : vector<1x32xf32> to vector<16x32xf32>
    %169 = arith.mulf %166, %168 : vector<16x32xf32>
    %170 = arith.extf %148 : vector<1x32xbf16> to vector<1x32xf32>
    %171 = vector.broadcast %170 : vector<1x32xf32> to vector<16x32xf32>
    %172 = arith.addf %169, %171 : vector<16x32xf32>
    %173 = arith.truncf %172 : vector<16x32xf32> to vector<16x32xbf16>
    %c0_96 = arith.constant 0 : index
    %c0_97 = arith.constant 0 : index
    %c0_98 = arith.constant 0 : index
    %174 = vector.load %arg13[%c0_96, %c0_97, %c0_98] : memref<3x32x64xbf16, #tpu.memory_space<vmem>>, vector<1x32x64xbf16>
    %175 = vector.shape_cast %174 : vector<1x32x64xbf16> to vector<32x64xbf16>
    %cst_99 = arith.constant dense<0.000000e+00> : vector<16x64xf32>
    %176 = tpu.matmul %173, %175, %cst_99 {dimension_numbers = #tpu.dot_dimension_numbers<[1], [0], [0], [1], [0, 0, 1, 1], [], []>} : vector<16x32xbf16>, vector<32x64xbf16>, vector<16x64xf32> -> vector<16x64xf32>
    %c0_100 = arith.constant 0 : index
    %c0_101 = arith.constant 0 : index
    %c0_102 = arith.constant 0 : index
    %177 = vector.load %arg14[%c0_100, %c0_101, %c0_102] : memref<3x1x64xbf16, #tpu.memory_space<vmem>>, vector<1x1x64xbf16>
    %178 = vector.shape_cast %177 : vector<1x1x64xbf16> to vector<1x64xbf16>
    %179 = arith.extf %178 : vector<1x64xbf16> to vector<1x64xf32>
    %180 = vector.broadcast %179 : vector<1x64xf32> to vector<16x64xf32>
    %181 = arith.addf %176, %180 : vector<16x64xf32>
    %182 = arith.mulf %181, %181 : vector<16x64xf32>
    %183 = arith.mulf %181, %182 : vector<16x64xf32>
    %cst_103 = arith.constant 4.471500e-02 : f32
    %184 = vector.broadcast %cst_103 : f32 to vector<16x64xf32>
    %185 = arith.mulf %184, %183 : vector<16x64xf32>
    %186 = arith.addf %181, %185 : vector<16x64xf32>
    %cst_104 = arith.constant 0.797884583 : f32
    %187 = vector.broadcast %cst_104 : f32 to vector<16x64xf32>
    %188 = arith.mulf %187, %186 : vector<16x64xf32>
    %189 = math.tanh %188 : vector<16x64xf32>
    %cst_105 = arith.constant 1.000000e+00 : f32
    %190 = vector.broadcast %cst_105 : f32 to vector<16x64xf32>
    %191 = arith.addf %190, %189 : vector<16x64xf32>
    %cst_106 = arith.constant 5.000000e-01 : f32
    %192 = vector.broadcast %cst_106 : f32 to vector<16x64xf32>
    %193 = arith.mulf %192, %191 : vector<16x64xf32>
    %194 = arith.mulf %181, %193 : vector<16x64xf32>
    %195 = arith.truncf %194 : vector<16x64xf32> to vector<16x64xbf16>
    %c0_107 = arith.constant 0 : index
    %c0_108 = arith.constant 0 : index
    %c0_109 = arith.constant 0 : index
    %196 = vector.load %arg15[%c0_107, %c0_108, %c0_109] : memref<3x64x32xbf16, #tpu.memory_space<vmem>>, vector<1x64x32xbf16>
    %197 = vector.shape_cast %196 : vector<1x64x32xbf16> to vector<64x32xbf16>
    %cst_110 = arith.constant dense<0.000000e+00> : vector<16x32xf32>
    %198 = tpu.matmul %195, %197, %cst_110 {dimension_numbers = #tpu.dot_dimension_numbers<[1], [0], [0], [1], [0, 0, 1, 1], [], []>} : vector<16x64xbf16>, vector<64x32xbf16>, vector<16x32xf32> -> vector<16x32xf32>
    %c0_111 = arith.constant 0 : index
    %c0_112 = arith.constant 0 : index
    %c0_113 = arith.constant 0 : index
    %199 = vector.load %arg16[%c0_111, %c0_112, %c0_113] : memref<3x1x32xbf16, #tpu.memory_space<vmem>>, vector<1x1x32xbf16>
    %200 = vector.shape_cast %199 : vector<1x1x32xbf16> to vector<1x32xbf16>
    %201 = arith.extf %200 : vector<1x32xbf16> to vector<1x32xf32>
    %202 = vector.broadcast %201 : vector<1x32xf32> to vector<16x32xf32>
    %203 = arith.addf %198, %202 : vector<16x32xf32>
    %204 = arith.addf %144, %203 : vector<16x32xf32>
    %c1_114 = arith.constant 1 : index
    %c0_115 = arith.constant 0 : index
    %c0_116 = arith.constant 0 : index
    %205 = vector.load %arg5[%c1_114, %c0_115, %c0_116] : memref<3x1x32xbf16, #tpu.memory_space<vmem>>, vector<1x1x32xbf16>
    %206 = vector.shape_cast %205 : vector<1x1x32xbf16> to vector<1x32xbf16>
    %c1_117 = arith.constant 1 : index
    %c0_118 = arith.constant 0 : index
    %c0_119 = arith.constant 0 : index
    %207 = vector.load %arg6[%c1_117, %c0_118, %c0_119] : memref<3x1x32xbf16, #tpu.memory_space<vmem>>, vector<1x1x32xbf16>
    %208 = vector.shape_cast %207 : vector<1x1x32xbf16> to vector<1x32xbf16>
    %cst_120 = arith.constant dense<0.000000e+00> : vector<16xf32>
    %209 = vector.multi_reduction <add>, %204, %cst_120 [1] : vector<16x32xf32> to vector<16xf32>
    %210 = vector.shape_cast %209 : vector<16xf32> to vector<16x1xf32>
    %cst_121 = arith.constant 3.200000e+01 : f32
    %211 = vector.broadcast %cst_121 : f32 to vector<16x1xf32>
    %212 = arith.divf %210, %211 : vector<16x1xf32>
    %213 = vector.broadcast %212 : vector<16x1xf32> to vector<16x32xf32>
    %214 = arith.subf %204, %213 : vector<16x32xf32>
    %215 = arith.mulf %214, %214 : vector<16x32xf32>
    %cst_122 = arith.constant dense<0.000000e+00> : vector<16xf32>
    %216 = vector.multi_reduction <add>, %215, %cst_122 [1] : vector<16x32xf32> to vector<16xf32>
    %217 = vector.shape_cast %216 : vector<16xf32> to vector<16x1xf32>
    %cst_123 = arith.constant 3.200000e+01 : f32
    %218 = vector.broadcast %cst_123 : f32 to vector<16x1xf32>
    %219 = arith.divf %217, %218 : vector<16x1xf32>
    %220 = vector.broadcast %212 : vector<16x1xf32> to vector<16x32xf32>
    %221 = arith.subf %204, %220 : vector<16x32xf32>
    %cst_124 = arith.constant 9.99999974E-6 : f32
    %222 = vector.broadcast %cst_124 : f32 to vector<16x1xf32>
    %223 = arith.addf %219, %222 : vector<16x1xf32>
    %224 = math.rsqrt %223 : vector<16x1xf32>
    %225 = vector.broadcast %224 : vector<16x1xf32> to vector<16x32xf32>
    %226 = arith.mulf %221, %225 : vector<16x32xf32>
    %227 = arith.extf %206 : vector<1x32xbf16> to vector<1x32xf32>
    %228 = vector.broadcast %227 : vector<1x32xf32> to vector<16x32xf32>
    %229 = arith.mulf %226, %228 : vector<16x32xf32>
    %230 = arith.extf %208 : vector<1x32xbf16> to vector<1x32xf32>
    %231 = vector.broadcast %230 : vector<1x32xf32> to vector<16x32xf32>
    %232 = arith.addf %229, %231 : vector<16x32xf32>
    %233 = arith.truncf %232 : vector<16x32xf32> to vector<16x32xbf16>
    %c6 = arith.constant 6 : index
    %c0_125 = arith.constant 0 : index
    %c0_126 = arith.constant 0 : index
    %234 = vector.load %arg7[%c6, %c0_125, %c0_126] : memref<18x32x16xbf16, #tpu.memory_space<vmem>>, vector<1x32x16xbf16>
    %235 = vector.shape_cast %234 : vector<1x32x16xbf16> to vector<32x16xbf16>
    %cst_127 = arith.constant dense<0.000000e+00> : vector<16x16xf32>
    %236 = tpu.matmul %233, %235, %cst_127 {dimension_numbers = #tpu.dot_dimension_numbers<[1], [0], [0], [1], [0, 0, 1, 1], [], []>} : vector<16x32xbf16>, vector<32x16xbf16>, vector<16x16xf32> -> vector<16x16xf32>
    %c6_128 = arith.constant 6 : index
    %c0_129 = arith.constant 0 : index
    %c0_130 = arith.constant 0 : index
    %237 = vector.load %arg8[%c6_128, %c0_129, %c0_130] : memref<18x1x16xbf16, #tpu.memory_space<vmem>>, vector<1x1x16xbf16>
    %238 = vector.shape_cast %237 : vector<1x1x16xbf16> to vector<1x16xbf16>
    %239 = arith.extf %238 : vector<1x16xbf16> to vector<1x16xf32>
    %240 = vector.broadcast %239 : vector<1x16xf32> to vector<16x16xf32>
    %241 = arith.addf %236, %240 : vector<16x16xf32>
    %c8 = arith.constant 8 : index
    %c0_131 = arith.constant 0 : index
    %c0_132 = arith.constant 0 : index
    %242 = vector.load %arg7[%c8, %c0_131, %c0_132] : memref<18x32x16xbf16, #tpu.memory_space<vmem>>, vector<1x32x16xbf16>
    %243 = vector.shape_cast %242 : vector<1x32x16xbf16> to vector<32x16xbf16>
    %cst_133 = arith.constant dense<0.000000e+00> : vector<16x16xf32>
    %244 = tpu.matmul %233, %243, %cst_133 {dimension_numbers = #tpu.dot_dimension_numbers<[1], [0], [0], [1], [0, 0, 1, 1], [], []>} : vector<16x32xbf16>, vector<32x16xbf16>, vector<16x16xf32> -> vector<16x16xf32>
    %c8_134 = arith.constant 8 : index
    %c0_135 = arith.constant 0 : index
    %c0_136 = arith.constant 0 : index
    %245 = vector.load %arg8[%c8_134, %c0_135, %c0_136] : memref<18x1x16xbf16, #tpu.memory_space<vmem>>, vector<1x1x16xbf16>
    %246 = vector.shape_cast %245 : vector<1x1x16xbf16> to vector<1x16xbf16>
    %247 = arith.extf %246 : vector<1x16xbf16> to vector<1x16xf32>
    %248 = vector.broadcast %247 : vector<1x16xf32> to vector<16x16xf32>
    %249 = arith.addf %244, %248 : vector<16x16xf32>
    %c10 = arith.constant 10 : index
    %c0_137 = arith.constant 0 : index
    %c0_138 = arith.constant 0 : index
    %250 = vector.load %arg7[%c10, %c0_137, %c0_138] : memref<18x32x16xbf16, #tpu.memory_space<vmem>>, vector<1x32x16xbf16>
    %251 = vector.shape_cast %250 : vector<1x32x16xbf16> to vector<32x16xbf16>
    %cst_139 = arith.constant dense<0.000000e+00> : vector<16x16xf32>
    %252 = tpu.matmul %233, %251, %cst_139 {dimension_numbers = #tpu.dot_dimension_numbers<[1], [0], [0], [1], [0, 0, 1, 1], [], []>} : vector<16x32xbf16>, vector<32x16xbf16>, vector<16x16xf32> -> vector<16x16xf32>
    %c10_140 = arith.constant 10 : index
    %c0_141 = arith.constant 0 : index
    %c0_142 = arith.constant 0 : index
    %253 = vector.load %arg8[%c10_140, %c0_141, %c0_142] : memref<18x1x16xbf16, #tpu.memory_space<vmem>>, vector<1x1x16xbf16>
    %254 = vector.shape_cast %253 : vector<1x1x16xbf16> to vector<1x16xbf16>
    %255 = arith.extf %254 : vector<1x16xbf16> to vector<1x16xf32>
    %256 = vector.broadcast %255 : vector<1x16xf32> to vector<16x16xf32>
    %257 = arith.addf %252, %256 : vector<16x16xf32>
    %cst_143 = arith.constant 2.500000e-01 : f32
    %258 = vector.broadcast %cst_143 : f32 to vector<16x16xf32>
    %259 = arith.mulf %241, %258 : vector<16x16xf32>
    %260 = arith.truncf %259 : vector<16x16xf32> to vector<16x16xbf16>
    %261 = arith.truncf %249 : vector<16x16xf32> to vector<16x16xbf16>
    %cst_144 = arith.constant dense<0.000000e+00> : vector<16x16xf32>
    %262 = tpu.matmul %260, %261, %cst_144 {dimension_numbers = #tpu.dot_dimension_numbers<[1], [1], [0], [0], [0, 0, 1, 0], [], []>} : vector<16x16xbf16>, vector<16x16xbf16>, vector<16x16xf32> -> vector<16x16xf32>
    %cst_145 = arith.constant dense<0xFF800000> : vector<16xf32>
    %263 = vector.multi_reduction <maximumf>, %262, %cst_145 [1] : vector<16x16xf32> to vector<16xf32>
    %264 = vector.shape_cast %263 : vector<16xf32> to vector<16x1xf32>
    %265 = vector.broadcast %264 : vector<16x1xf32> to vector<16x16xf32>
    %266 = arith.subf %262, %265 : vector<16x16xf32>
    %267 = math.exp %266 : vector<16x16xf32>
    %cst_146 = arith.constant dense<0.000000e+00> : vector<16xf32>
    %268 = vector.multi_reduction <add>, %267, %cst_146 [1] : vector<16x16xf32> to vector<16xf32>
    %269 = vector.shape_cast %268 : vector<16xf32> to vector<16x1xf32>
    %270 = vector.broadcast %269 : vector<16x1xf32> to vector<16x16xf32>
    %271 = arith.divf %267, %270 : vector<16x16xf32>
    %272 = arith.truncf %271 : vector<16x16xf32> to vector<16x16xbf16>
    %c0_147 = arith.constant 0 : index
    %c2_148 = arith.constant 2 : index
    %c0_149 = arith.constant 0 : index
    %c0_150 = arith.constant 0 : index
    %273 = vector.load %arg22[%c0_147, %c2_148, %c0_149, %c0_150] : memref<1x6x16x16xbf16, #tpu.memory_space<vmem>>, vector<1x1x16x16xbf16>
    %274 = vector.shape_cast %273 : vector<1x1x16x16xbf16> to vector<16x16xbf16>
    %275 = vector.shape_cast %272 : vector<16x16xbf16> to vector<1x1x16x16xbf16>
    tpu.vector_store %arg22[%c0_147, %c2_148, %c0_149, %c0_150], %275 {strides = array<i32>} : memref<1x6x16x16xbf16, #tpu.memory_space<vmem>>, vector<1x1x16x16xbf16>,
    %276 = arith.truncf %271 : vector<16x16xf32> to vector<16x16xbf16>
    %277 = arith.truncf %257 : vector<16x16xf32> to vector<16x16xbf16>
    %cst_151 = arith.constant dense<0.000000e+00> : vector<16x16xf32>
    %278 = tpu.matmul %276, %277, %cst_151 {dimension_numbers = #tpu.dot_dimension_numbers<[1], [0], [0], [1], [0, 0, 1, 1], [], []>} : vector<16x16xbf16>, vector<16x16xbf16>, vector<16x16xf32> -> vector<16x16xf32>
    %279 = arith.truncf %278 : vector<16x16xf32> to vector<16x16xbf16>
    %c2_152 = arith.constant 2 : index
    %c0_153 = arith.constant 0 : index
    %c0_154 = arith.constant 0 : index
    %280 = vector.load %arg9[%c2_152, %c0_153, %c0_154] : memref<6x16x32xbf16, #tpu.memory_space<vmem>>, vector<1x16x32xbf16>
    %281 = vector.shape_cast %280 : vector<1x16x32xbf16> to vector<16x32xbf16>
    %cst_155 = arith.constant dense<0.000000e+00> : vector<16x32xf32>
    %282 = tpu.matmul %279, %281, %cst_155 {dimension_numbers = #tpu.dot_dimension_numbers<[1], [0], [0], [1], [0, 0, 1, 1], [], []>} : vector<16x16xbf16>, vector<16x32xbf16>, vector<16x32xf32> -> vector<16x32xf32>
    %283 = arith.addf %204, %282 : vector<16x32xf32>
    %c7 = arith.constant 7 : index
    %c0_156 = arith.constant 0 : index
    %c0_157 = arith.constant 0 : index
    %284 = vector.load %arg7[%c7, %c0_156, %c0_157] : memref<18x32x16xbf16, #tpu.memory_space<vmem>>, vector<1x32x16xbf16>
    %285 = vector.shape_cast %284 : vector<1x32x16xbf16> to vector<32x16xbf16>
    %cst_158 = arith.constant dense<0.000000e+00> : vector<16x16xf32>
    %286 = tpu.matmul %233, %285, %cst_158 {dimension_numbers = #tpu.dot_dimension_numbers<[1], [0], [0], [1], [0, 0, 1, 1], [], []>} : vector<16x32xbf16>, vector<32x16xbf16>, vector<16x16xf32> -> vector<16x16xf32>
    %c7_159 = arith.constant 7 : index
    %c0_160 = arith.constant 0 : index
    %c0_161 = arith.constant 0 : index
    %287 = vector.load %arg8[%c7_159, %c0_160, %c0_161] : memref<18x1x16xbf16, #tpu.memory_space<vmem>>, vector<1x1x16xbf16>
    %288 = vector.shape_cast %287 : vector<1x1x16xbf16> to vector<1x16xbf16>
    %289 = arith.extf %288 : vector<1x16xbf16> to vector<1x16xf32>
    %290 = vector.broadcast %289 : vector<1x16xf32> to vector<16x16xf32>
    %291 = arith.addf %286, %290 : vector<16x16xf32>
    %c9 = arith.constant 9 : index
    %c0_162 = arith.constant 0 : index
    %c0_163 = arith.constant 0 : index
    %292 = vector.load %arg7[%c9, %c0_162, %c0_163] : memref<18x32x16xbf16, #tpu.memory_space<vmem>>, vector<1x32x16xbf16>
    %293 = vector.shape_cast %292 : vector<1x32x16xbf16> to vector<32x16xbf16>
    %cst_164 = arith.constant dense<0.000000e+00> : vector<16x16xf32>
    %294 = tpu.matmul %233, %293, %cst_164 {dimension_numbers = #tpu.dot_dimension_numbers<[1], [0], [0], [1], [0, 0, 1, 1], [], []>} : vector<16x32xbf16>, vector<32x16xbf16>, vector<16x16xf32> -> vector<16x16xf32>
    %c9_165 = arith.constant 9 : index
    %c0_166 = arith.constant 0 : index
    %c0_167 = arith.constant 0 : index
    %295 = vector.load %arg8[%c9_165, %c0_166, %c0_167] : memref<18x1x16xbf16, #tpu.memory_space<vmem>>, vector<1x1x16xbf16>
    %296 = vector.shape_cast %295 : vector<1x1x16xbf16> to vector<1x16xbf16>
    %297 = arith.extf %296 : vector<1x16xbf16> to vector<1x16xf32>
    %298 = vector.broadcast %297 : vector<1x16xf32> to vector<16x16xf32>
    %299 = arith.addf %294, %298 : vector<16x16xf32>
    %c11 = arith.constant 11 : index
    %c0_168 = arith.constant 0 : index
    %c0_169 = arith.constant 0 : index
    %300 = vector.load %arg7[%c11, %c0_168, %c0_169] : memref<18x32x16xbf16, #tpu.memory_space<vmem>>, vector<1x32x16xbf16>
    %301 = vector.shape_cast %300 : vector<1x32x16xbf16> to vector<32x16xbf16>
    %cst_170 = arith.constant dense<0.000000e+00> : vector<16x16xf32>
    %302 = tpu.matmul %233, %301, %cst_170 {dimension_numbers = #tpu.dot_dimension_numbers<[1], [0], [0], [1], [0, 0, 1, 1], [], []>} : vector<16x32xbf16>, vector<32x16xbf16>, vector<16x16xf32> -> vector<16x16xf32>
    %c11_171 = arith.constant 11 : index
    %c0_172 = arith.constant 0 : index
    %c0_173 = arith.constant 0 : index
    %303 = vector.load %arg8[%c11_171, %c0_172, %c0_173] : memref<18x1x16xbf16, #tpu.memory_space<vmem>>, vector<1x1x16xbf16>
    %304 = vector.shape_cast %303 : vector<1x1x16xbf16> to vector<1x16xbf16>
    %305 = arith.extf %304 : vector<1x16xbf16> to vector<1x16xf32>
    %306 = vector.broadcast %305 : vector<1x16xf32> to vector<16x16xf32>
    %307 = arith.addf %302, %306 : vector<16x16xf32>
    %cst_174 = arith.constant 2.500000e-01 : f32
    %308 = vector.broadcast %cst_174 : f32 to vector<16x16xf32>
    %309 = arith.mulf %291, %308 : vector<16x16xf32>
    %310 = arith.truncf %309 : vector<16x16xf32> to vector<16x16xbf16>
    %311 = arith.truncf %299 : vector<16x16xf32> to vector<16x16xbf16>
    %cst_175 = arith.constant dense<0.000000e+00> : vector<16x16xf32>
    %312 = tpu.matmul %310, %311, %cst_175 {dimension_numbers = #tpu.dot_dimension_numbers<[1], [1], [0], [0], [0, 0, 1, 0], [], []>} : vector<16x16xbf16>, vector<16x16xbf16>, vector<16x16xf32> -> vector<16x16xf32>
    %cst_176 = arith.constant dense<0xFF800000> : vector<16xf32>
    %313 = vector.multi_reduction <maximumf>, %312, %cst_176 [1] : vector<16x16xf32> to vector<16xf32>
    %314 = vector.shape_cast %313 : vector<16xf32> to vector<16x1xf32>
    %315 = vector.broadcast %314 : vector<16x1xf32> to vector<16x16xf32>
    %316 = arith.subf %312, %315 : vector<16x16xf32>
    %317 = math.exp %316 : vector<16x16xf32>
    %cst_177 = arith.constant dense<0.000000e+00> : vector<16xf32>
    %318 = vector.multi_reduction <add>, %317, %cst_177 [1] : vector<16x16xf32> to vector<16xf32>
    %319 = vector.shape_cast %318 : vector<16xf32> to vector<16x1xf32>
    %320 = vector.broadcast %319 : vector<16x1xf32> to vector<16x16xf32>
    %321 = arith.divf %317, %320 : vector<16x16xf32>
    %322 = arith.truncf %321 : vector<16x16xf32> to vector<16x16xbf16>
    %c0_178 = arith.constant 0 : index
    %c3_179 = arith.constant 3 : index
    %c0_180 = arith.constant 0 : index
    %c0_181 = arith.constant 0 : index
    %323 = vector.load %arg22[%c0_178, %c3_179, %c0_180, %c0_181] : memref<1x6x16x16xbf16, #tpu.memory_space<vmem>>, vector<1x1x16x16xbf16>
    %324 = vector.shape_cast %323 : vector<1x1x16x16xbf16> to vector<16x16xbf16>
    %325 = vector.shape_cast %322 : vector<16x16xbf16> to vector<1x1x16x16xbf16>
    tpu.vector_store %arg22[%c0_178, %c3_179, %c0_180, %c0_181], %325 {strides = array<i32>} : memref<1x6x16x16xbf16, #tpu.memory_space<vmem>>, vector<1x1x16x16xbf16>,
    %326 = arith.truncf %321 : vector<16x16xf32> to vector<16x16xbf16>
    %327 = arith.truncf %307 : vector<16x16xf32> to vector<16x16xbf16>
    %cst_182 = arith.constant dense<0.000000e+00> : vector<16x16xf32>
    %328 = tpu.matmul %326, %327, %cst_182 {dimension_numbers = #tpu.dot_dimension_numbers<[1], [0], [0], [1], [0, 0, 1, 1], [], []>} : vector<16x16xbf16>, vector<16x16xbf16>, vector<16x16xf32> -> vector<16x16xf32>
    %329 = arith.truncf %328 : vector<16x16xf32> to vector<16x16xbf16>
    %c3_183 = arith.constant 3 : index
    %c0_184 = arith.constant 0 : index
    %c0_185 = arith.constant 0 : index
    %330 = vector.load %arg9[%c3_183, %c0_184, %c0_185] : memref<6x16x32xbf16, #tpu.memory_space<vmem>>, vector<1x16x32xbf16>
    %331 = vector.shape_cast %330 : vector<1x16x32xbf16> to vector<16x32xbf16>
    %cst_186 = arith.constant dense<0.000000e+00> : vector<16x32xf32>
    %332 = tpu.matmul %329, %331, %cst_186 {dimension_numbers = #tpu.dot_dimension_numbers<[1], [0], [0], [1], [0, 0, 1, 1], [], []>} : vector<16x16xbf16>, vector<16x32xbf16>, vector<16x32xf32> -> vector<16x32xf32>
    %333 = arith.addf %283, %332 : vector<16x32xf32>
    %c1_187 = arith.constant 1 : index
    %c0_188 = arith.constant 0 : index
    %c0_189 = arith.constant 0 : index
    %334 = vector.load %arg10[%c1_187, %c0_188, %c0_189] : memref<3x1x32xbf16, #tpu.memory_space<vmem>>, vector<1x1x32xbf16>
    %335 = vector.shape_cast %334 : vector<1x1x32xbf16> to vector<1x32xbf16>
    %336 = arith.extf %335 : vector<1x32xbf16> to vector<1x32xf32>
    %337 = vector.broadcast %336 : vector<1x32xf32> to vector<16x32xf32>
    %338 = arith.addf %333, %337 : vector<16x32xf32>
    %c1_190 = arith.constant 1 : index
    %c0_191 = arith.constant 0 : index
    %c0_192 = arith.constant 0 : index
    %339 = vector.load %arg11[%c1_190, %c0_191, %c0_192] : memref<3x1x32xbf16, #tpu.memory_space<vmem>>, vector<1x1x32xbf16>
    %340 = vector.shape_cast %339 : vector<1x1x32xbf16> to vector<1x32xbf16>
    %c1_193 = arith.constant 1 : index
    %c0_194 = arith.constant 0 : index
    %c0_195 = arith.constant 0 : index
    %341 = vector.load %arg12[%c1_193, %c0_194, %c0_195] : memref<3x1x32xbf16, #tpu.memory_space<vmem>>, vector<1x1x32xbf16>
    %342 = vector.shape_cast %341 : vector<1x1x32xbf16> to vector<1x32xbf16>
    %cst_196 = arith.constant dense<0.000000e+00> : vector<16xf32>
    %343 = vector.multi_reduction <add>, %338, %cst_196 [1] : vector<16x32xf32> to vector<16xf32>
    %344 = vector.shape_cast %343 : vector<16xf32> to vector<16x1xf32>
    %cst_197 = arith.constant 3.200000e+01 : f32
    %345 = vector.broadcast %cst_197 : f32 to vector<16x1xf32>
    %346 = arith.divf %344, %345 : vector<16x1xf32>
    %347 = vector.broadcast %346 : vector<16x1xf32> to vector<16x32xf32>
    %348 = arith.subf %338, %347 : vector<16x32xf32>
    %349 = arith.mulf %348, %348 : vector<16x32xf32>
    %cst_198 = arith.constant dense<0.000000e+00> : vector<16xf32>
    %350 = vector.multi_reduction <add>, %349, %cst_198 [1] : vector<16x32xf32> to vector<16xf32>
    %351 = vector.shape_cast %350 : vector<16xf32> to vector<16x1xf32>
    %cst_199 = arith.constant 3.200000e+01 : f32
    %352 = vector.broadcast %cst_199 : f32 to vector<16x1xf32>
    %353 = arith.divf %351, %352 : vector<16x1xf32>
    %354 = vector.broadcast %346 : vector<16x1xf32> to vector<16x32xf32>
    %355 = arith.subf %338, %354 : vector<16x32xf32>
    %cst_200 = arith.constant 9.99999974E-6 : f32
    %356 = vector.broadcast %cst_200 : f32 to vector<16x1xf32>
    %357 = arith.addf %353, %356 : vector<16x1xf32>
    %358 = math.rsqrt %357 : vector<16x1xf32>
    %359 = vector.broadcast %358 : vector<16x1xf32> to vector<16x32xf32>
    %360 = arith.mulf %355, %359 : vector<16x32xf32>
    %361 = arith.extf %340 : vector<1x32xbf16> to vector<1x32xf32>
    %362 = vector.broadcast %361 : vector<1x32xf32> to vector<16x32xf32>
    %363 = arith.mulf %360, %362 : vector<16x32xf32>
    %364 = arith.extf %342 : vector<1x32xbf16> to vector<1x32xf32>
    %365 = vector.broadcast %364 : vector<1x32xf32> to vector<16x32xf32>
    %366 = arith.addf %363, %365 : vector<16x32xf32>
    %367 = arith.truncf %366 : vector<16x32xf32> to vector<16x32xbf16>
    %c1_201 = arith.constant 1 : index
    %c0_202 = arith.constant 0 : index
    %c0_203 = arith.constant 0 : index
    %368 = vector.load %arg13[%c1_201, %c0_202, %c0_203] : memref<3x32x64xbf16, #tpu.memory_space<vmem>>, vector<1x32x64xbf16>
    %369 = vector.shape_cast %368 : vector<1x32x64xbf16> to vector<32x64xbf16>
    %cst_204 = arith.constant dense<0.000000e+00> : vector<16x64xf32>
    %370 = tpu.matmul %367, %369, %cst_204 {dimension_numbers = #tpu.dot_dimension_numbers<[1], [0], [0], [1], [0, 0, 1, 1], [], []>} : vector<16x32xbf16>, vector<32x64xbf16>, vector<16x64xf32> -> vector<16x64xf32>
    %c1_205 = arith.constant 1 : index
    %c0_206 = arith.constant 0 : index
    %c0_207 = arith.constant 0 : index
    %371 = vector.load %arg14[%c1_205, %c0_206, %c0_207] : memref<3x1x64xbf16, #tpu.memory_space<vmem>>, vector<1x1x64xbf16>
    %372 = vector.shape_cast %371 : vector<1x1x64xbf16> to vector<1x64xbf16>
    %373 = arith.extf %372 : vector<1x64xbf16> to vector<1x64xf32>
    %374 = vector.broadcast %373 : vector<1x64xf32> to vector<16x64xf32>
    %375 = arith.addf %370, %374 : vector<16x64xf32>
    %376 = arith.mulf %375, %375 : vector<16x64xf32>
    %377 = arith.mulf %375, %376 : vector<16x64xf32>
    %cst_208 = arith.constant 4.471500e-02 : f32
    %378 = vector.broadcast %cst_208 : f32 to vector<16x64xf32>
    %379 = arith.mulf %378, %377 : vector<16x64xf32>
    %380 = arith.addf %375, %379 : vector<16x64xf32>
    %cst_209 = arith.constant 0.797884583 : f32
    %381 = vector.broadcast %cst_209 : f32 to vector<16x64xf32>
    %382 = arith.mulf %381, %380 : vector<16x64xf32>
    %383 = math.tanh %382 : vector<16x64xf32>
    %cst_210 = arith.constant 1.000000e+00 : f32
    %384 = vector.broadcast %cst_210 : f32 to vector<16x64xf32>
    %385 = arith.addf %384, %383 : vector<16x64xf32>
    %cst_211 = arith.constant 5.000000e-01 : f32
    %386 = vector.broadcast %cst_211 : f32 to vector<16x64xf32>
    %387 = arith.mulf %386, %385 : vector<16x64xf32>
    %388 = arith.mulf %375, %387 : vector<16x64xf32>
    %389 = arith.truncf %388 : vector<16x64xf32> to vector<16x64xbf16>
    %c1_212 = arith.constant 1 : index
    %c0_213 = arith.constant 0 : index
    %c0_214 = arith.constant 0 : index
    %390 = vector.load %arg15[%c1_212, %c0_213, %c0_214] : memref<3x64x32xbf16, #tpu.memory_space<vmem>>, vector<1x64x32xbf16>
    %391 = vector.shape_cast %390 : vector<1x64x32xbf16> to vector<64x32xbf16>
    %cst_215 = arith.constant dense<0.000000e+00> : vector<16x32xf32>
    %392 = tpu.matmul %389, %391, %cst_215 {dimension_numbers = #tpu.dot_dimension_numbers<[1], [0], [0], [1], [0, 0, 1, 1], [], []>} : vector<16x64xbf16>, vector<64x32xbf16>, vector<16x32xf32> -> vector<16x32xf32>
    %c1_216 = arith.constant 1 : index
    %c0_217 = arith.constant 0 : index
    %c0_218 = arith.constant 0 : index
    %393 = vector.load %arg16[%c1_216, %c0_217, %c0_218] : memref<3x1x32xbf16, #tpu.memory_space<vmem>>, vector<1x1x32xbf16>
    %394 = vector.shape_cast %393 : vector<1x1x32xbf16> to vector<1x32xbf16>
    %395 = arith.extf %394 : vector<1x32xbf16> to vector<1x32xf32>
    %396 = vector.broadcast %395 : vector<1x32xf32> to vector<16x32xf32>
    %397 = arith.addf %392, %396 : vector<16x32xf32>
    %398 = arith.addf %338, %397 : vector<16x32xf32>
    %c2_219 = arith.constant 2 : index
    %c0_220 = arith.constant 0 : index
    %c0_221 = arith.constant 0 : index
    %399 = vector.load %arg5[%c2_219, %c0_220, %c0_221] : memref<3x1x32xbf16, #tpu.memory_space<vmem>>, vector<1x1x32xbf16>
    %400 = vector.shape_cast %399 : vector<1x1x32xbf16> to vector<1x32xbf16>
    %c2_222 = arith.constant 2 : index
    %c0_223 = arith.constant 0 : index
    %c0_224 = arith.constant 0 : index
    %401 = vector.load %arg6[%c2_222, %c0_223, %c0_224] : memref<3x1x32xbf16, #tpu.memory_space<vmem>>, vector<1x1x32xbf16>
    %402 = vector.shape_cast %401 : vector<1x1x32xbf16> to vector<1x32xbf16>
    %cst_225 = arith.constant dense<0.000000e+00> : vector<16xf32>
    %403 = vector.multi_reduction <add>, %398, %cst_225 [1] : vector<16x32xf32> to vector<16xf32>
    %404 = vector.shape_cast %403 : vector<16xf32> to vector<16x1xf32>
    %cst_226 = arith.constant 3.200000e+01 : f32
    %405 = vector.broadcast %cst_226 : f32 to vector<16x1xf32>
    %406 = arith.divf %404, %405 : vector<16x1xf32>
    %407 = vector.broadcast %406 : vector<16x1xf32> to vector<16x32xf32>
    %408 = arith.subf %398, %407 : vector<16x32xf32>
    %409 = arith.mulf %408, %408 : vector<16x32xf32>
    %cst_227 = arith.constant dense<0.000000e+00> : vector<16xf32>
    %410 = vector.multi_reduction <add>, %409, %cst_227 [1] : vector<16x32xf32> to vector<16xf32>
    %411 = vector.shape_cast %410 : vector<16xf32> to vector<16x1xf32>
    %cst_228 = arith.constant 3.200000e+01 : f32
    %412 = vector.broadcast %cst_228 : f32 to vector<16x1xf32>
    %413 = arith.divf %411, %412 : vector<16x1xf32>
    %414 = vector.broadcast %406 : vector<16x1xf32> to vector<16x32xf32>
    %415 = arith.subf %398, %414 : vector<16x32xf32>
    %cst_229 = arith.constant 9.99999974E-6 : f32
    %416 = vector.broadcast %cst_229 : f32 to vector<16x1xf32>
    %417 = arith.addf %413, %416 : vector<16x1xf32>
    %418 = math.rsqrt %417 : vector<16x1xf32>
    %419 = vector.broadcast %418 : vector<16x1xf32> to vector<16x32xf32>
    %420 = arith.mulf %415, %419 : vector<16x32xf32>
    %421 = arith.extf %400 : vector<1x32xbf16> to vector<1x32xf32>
    %422 = vector.broadcast %421 : vector<1x32xf32> to vector<16x32xf32>
    %423 = arith.mulf %420, %422 : vector<16x32xf32>
    %424 = arith.extf %402 : vector<1x32xbf16> to vector<1x32xf32>
    %425 = vector.broadcast %424 : vector<1x32xf32> to vector<16x32xf32>
    %426 = arith.addf %423, %425 : vector<16x32xf32>
    %427 = arith.truncf %426 : vector<16x32xf32> to vector<16x32xbf16>
    %c12 = arith.constant 12 : index
    %c0_230 = arith.constant 0 : index
    %c0_231 = arith.constant 0 : index
    %428 = vector.load %arg7[%c12, %c0_230, %c0_231] : memref<18x32x16xbf16, #tpu.memory_space<vmem>>, vector<1x32x16xbf16>
    %429 = vector.shape_cast %428 : vector<1x32x16xbf16> to vector<32x16xbf16>
    %cst_232 = arith.constant dense<0.000000e+00> : vector<16x16xf32>
    %430 = tpu.matmul %427, %429, %cst_232 {dimension_numbers = #tpu.dot_dimension_numbers<[1], [0], [0], [1], [0, 0, 1, 1], [], []>} : vector<16x32xbf16>, vector<32x16xbf16>, vector<16x16xf32> -> vector<16x16xf32>
    %c12_233 = arith.constant 12 : index
    %c0_234 = arith.constant 0 : index
    %c0_235 = arith.constant 0 : index
    %431 = vector.load %arg8[%c12_233, %c0_234, %c0_235] : memref<18x1x16xbf16, #tpu.memory_space<vmem>>, vector<1x1x16xbf16>
    %432 = vector.shape_cast %431 : vector<1x1x16xbf16> to vector<1x16xbf16>
    %433 = arith.extf %432 : vector<1x16xbf16> to vector<1x16xf32>
    %434 = vector.broadcast %433 : vector<1x16xf32> to vector<16x16xf32>
    %435 = arith.addf %430, %434 : vector<16x16xf32>
    %c14 = arith.constant 14 : index
    %c0_236 = arith.constant 0 : index
    %c0_237 = arith.constant 0 : index
    %436 = vector.load %arg7[%c14, %c0_236, %c0_237] : memref<18x32x16xbf16, #tpu.memory_space<vmem>>, vector<1x32x16xbf16>
    %437 = vector.shape_cast %436 : vector<1x32x16xbf16> to vector<32x16xbf16>
    %cst_238 = arith.constant dense<0.000000e+00> : vector<16x16xf32>
    %438 = tpu.matmul %427, %437, %cst_238 {dimension_numbers = #tpu.dot_dimension_numbers<[1], [0], [0], [1], [0, 0, 1, 1], [], []>} : vector<16x32xbf16>, vector<32x16xbf16>, vector<16x16xf32> -> vector<16x16xf32>
    %c14_239 = arith.constant 14 : index
    %c0_240 = arith.constant 0 : index
    %c0_241 = arith.constant 0 : index
    %439 = vector.load %arg8[%c14_239, %c0_240, %c0_241] : memref<18x1x16xbf16, #tpu.memory_space<vmem>>, vector<1x1x16xbf16>
    %440 = vector.shape_cast %439 : vector<1x1x16xbf16> to vector<1x16xbf16>
    %441 = arith.extf %440 : vector<1x16xbf16> to vector<1x16xf32>
    %442 = vector.broadcast %441 : vector<1x16xf32> to vector<16x16xf32>
    %443 = arith.addf %438, %442 : vector<16x16xf32>
    %c16 = arith.constant 16 : index
    %c0_242 = arith.constant 0 : index
    %c0_243 = arith.constant 0 : index
    %444 = vector.load %arg7[%c16, %c0_242, %c0_243] : memref<18x32x16xbf16, #tpu.memory_space<vmem>>, vector<1x32x16xbf16>
    %445 = vector.shape_cast %444 : vector<1x32x16xbf16> to vector<32x16xbf16>
    %cst_244 = arith.constant dense<0.000000e+00> : vector<16x16xf32>
    %446 = tpu.matmul %427, %445, %cst_244 {dimension_numbers = #tpu.dot_dimension_numbers<[1], [0], [0], [1], [0, 0, 1, 1], [], []>} : vector<16x32xbf16>, vector<32x16xbf16>, vector<16x16xf32> -> vector<16x16xf32>
    %c16_245 = arith.constant 16 : index
    %c0_246 = arith.constant 0 : index
    %c0_247 = arith.constant 0 : index
    %447 = vector.load %arg8[%c16_245, %c0_246, %c0_247] : memref<18x1x16xbf16, #tpu.memory_space<vmem>>, vector<1x1x16xbf16>
    %448 = vector.shape_cast %447 : vector<1x1x16xbf16> to vector<1x16xbf16>
    %449 = arith.extf %448 : vector<1x16xbf16> to vector<1x16xf32>
    %450 = vector.broadcast %449 : vector<1x16xf32> to vector<16x16xf32>
    %451 = arith.addf %446, %450 : vector<16x16xf32>
    %cst_248 = arith.constant 2.500000e-01 : f32
    %452 = vector.broadcast %cst_248 : f32 to vector<16x16xf32>
    %453 = arith.mulf %435, %452 : vector<16x16xf32>
    %454 = arith.truncf %453 : vector<16x16xf32> to vector<16x16xbf16>
    %455 = arith.truncf %443 : vector<16x16xf32> to vector<16x16xbf16>
    %cst_249 = arith.constant dense<0.000000e+00> : vector<16x16xf32>
    %456 = tpu.matmul %454, %455, %cst_249 {dimension_numbers = #tpu.dot_dimension_numbers<[1], [1], [0], [0], [0, 0, 1, 0], [], []>} : vector<16x16xbf16>, vector<16x16xbf16>, vector<16x16xf32> -> vector<16x16xf32>
    %cst_250 = arith.constant dense<0xFF800000> : vector<16xf32>
    %457 = vector.multi_reduction <maximumf>, %456, %cst_250 [1] : vector<16x16xf32> to vector<16xf32>
    %458 = vector.shape_cast %457 : vector<16xf32> to vector<16x1xf32>
    %459 = vector.broadcast %458 : vector<16x1xf32> to vector<16x16xf32>
    %460 = arith.subf %456, %459 : vector<16x16xf32>
    %461 = math.exp %460 : vector<16x16xf32>
    %cst_251 = arith.constant dense<0.000000e+00> : vector<16xf32>
    %462 = vector.multi_reduction <add>, %461, %cst_251 [1] : vector<16x16xf32> to vector<16xf32>
    %463 = vector.shape_cast %462 : vector<16xf32> to vector<16x1xf32>
    %464 = vector.broadcast %463 : vector<16x1xf32> to vector<16x16xf32>
    %465 = arith.divf %461, %464 : vector<16x16xf32>
    %466 = arith.truncf %465 : vector<16x16xf32> to vector<16x16xbf16>
    %c0_252 = arith.constant 0 : index
    %c4_253 = arith.constant 4 : index
    %c0_254 = arith.constant 0 : index
    %c0_255 = arith.constant 0 : index
    %467 = vector.load %arg22[%c0_252, %c4_253, %c0_254, %c0_255] : memref<1x6x16x16xbf16, #tpu.memory_space<vmem>>, vector<1x1x16x16xbf16>
    %468 = vector.shape_cast %467 : vector<1x1x16x16xbf16> to vector<16x16xbf16>
    %469 = vector.shape_cast %466 : vector<16x16xbf16> to vector<1x1x16x16xbf16>
    tpu.vector_store %arg22[%c0_252, %c4_253, %c0_254, %c0_255], %469 {strides = array<i32>} : memref<1x6x16x16xbf16, #tpu.memory_space<vmem>>, vector<1x1x16x16xbf16>,
    %470 = arith.truncf %465 : vector<16x16xf32> to vector<16x16xbf16>
    %471 = arith.truncf %451 : vector<16x16xf32> to vector<16x16xbf16>
    %cst_256 = arith.constant dense<0.000000e+00> : vector<16x16xf32>
    %472 = tpu.matmul %470, %471, %cst_256 {dimension_numbers = #tpu.dot_dimension_numbers<[1], [0], [0], [1], [0, 0, 1, 1], [], []>} : vector<16x16xbf16>, vector<16x16xbf16>, vector<16x16xf32> -> vector<16x16xf32>
    %473 = arith.truncf %472 : vector<16x16xf32> to vector<16x16xbf16>
    %c4_257 = arith.constant 4 : index
    %c0_258 = arith.constant 0 : index
    %c0_259 = arith.constant 0 : index
    %474 = vector.load %arg9[%c4_257, %c0_258, %c0_259] : memref<6x16x32xbf16, #tpu.memory_space<vmem>>, vector<1x16x32xbf16>
    %475 = vector.shape_cast %474 : vector<1x16x32xbf16> to vector<16x32xbf16>
    %cst_260 = arith.constant dense<0.000000e+00> : vector<16x32xf32>
    %476 = tpu.matmul %473, %475, %cst_260 {dimension_numbers = #tpu.dot_dimension_numbers<[1], [0], [0], [1], [0, 0, 1, 1], [], []>} : vector<16x16xbf16>, vector<16x32xbf16>, vector<16x32xf32> -> vector<16x32xf32>
    %477 = arith.addf %398, %476 : vector<16x32xf32>
    %c13 = arith.constant 13 : index
    %c0_261 = arith.constant 0 : index
    %c0_262 = arith.constant 0 : index
    %478 = vector.load %arg7[%c13, %c0_261, %c0_262] : memref<18x32x16xbf16, #tpu.memory_space<vmem>>, vector<1x32x16xbf16>
    %479 = vector.shape_cast %478 : vector<1x32x16xbf16> to vector<32x16xbf16>
    %cst_263 = arith.constant dense<0.000000e+00> : vector<16x16xf32>
    %480 = tpu.matmul %427, %479, %cst_263 {dimension_numbers = #tpu.dot_dimension_numbers<[1], [0], [0], [1], [0, 0, 1, 1], [], []>} : vector<16x32xbf16>, vector<32x16xbf16>, vector<16x16xf32> -> vector<16x16xf32>
    %c13_264 = arith.constant 13 : index
    %c0_265 = arith.constant 0 : index
    %c0_266 = arith.constant 0 : index
    %481 = vector.load %arg8[%c13_264, %c0_265, %c0_266] : memref<18x1x16xbf16, #tpu.memory_space<vmem>>, vector<1x1x16xbf16>
    %482 = vector.shape_cast %481 : vector<1x1x16xbf16> to vector<1x16xbf16>
    %483 = arith.extf %482 : vector<1x16xbf16> to vector<1x16xf32>
    %484 = vector.broadcast %483 : vector<1x16xf32> to vector<16x16xf32>
    %485 = arith.addf %480, %484 : vector<16x16xf32>
    %c15 = arith.constant 15 : index
    %c0_267 = arith.constant 0 : index
    %c0_268 = arith.constant 0 : index
    %486 = vector.load %arg7[%c15, %c0_267, %c0_268] : memref<18x32x16xbf16, #tpu.memory_space<vmem>>, vector<1x32x16xbf16>
    %487 = vector.shape_cast %486 : vector<1x32x16xbf16> to vector<32x16xbf16>
    %cst_269 = arith.constant dense<0.000000e+00> : vector<16x16xf32>
    %488 = tpu.matmul %427, %487, %cst_269 {dimension_numbers = #tpu.dot_dimension_numbers<[1], [0], [0], [1], [0, 0, 1, 1], [], []>} : vector<16x32xbf16>, vector<32x16xbf16>, vector<16x16xf32> -> vector<16x16xf32>
    %c15_270 = arith.constant 15 : index
    %c0_271 = arith.constant 0 : index
    %c0_272 = arith.constant 0 : index
    %489 = vector.load %arg8[%c15_270, %c0_271, %c0_272] : memref<18x1x16xbf16, #tpu.memory_space<vmem>>, vector<1x1x16xbf16>
    %490 = vector.shape_cast %489 : vector<1x1x16xbf16> to vector<1x16xbf16>
    %491 = arith.extf %490 : vector<1x16xbf16> to vector<1x16xf32>
    %492 = vector.broadcast %491 : vector<1x16xf32> to vector<16x16xf32>
    %493 = arith.addf %488, %492 : vector<16x16xf32>
    %c17 = arith.constant 17 : index
    %c0_273 = arith.constant 0 : index
    %c0_274 = arith.constant 0 : index
    %494 = vector.load %arg7[%c17, %c0_273, %c0_274] : memref<18x32x16xbf16, #tpu.memory_space<vmem>>, vector<1x32x16xbf16>
    %495 = vector.shape_cast %494 : vector<1x32x16xbf16> to vector<32x16xbf16>
    %cst_275 = arith.constant dense<0.000000e+00> : vector<16x16xf32>
    %496 = tpu.matmul %427, %495, %cst_275 {dimension_numbers = #tpu.dot_dimension_numbers<[1], [0], [0], [1], [0, 0, 1, 1], [], []>} : vector<16x32xbf16>, vector<32x16xbf16>, vector<16x16xf32> -> vector<16x16xf32>
    %c17_276 = arith.constant 17 : index
    %c0_277 = arith.constant 0 : index
    %c0_278 = arith.constant 0 : index
    %497 = vector.load %arg8[%c17_276, %c0_277, %c0_278] : memref<18x1x16xbf16, #tpu.memory_space<vmem>>, vector<1x1x16xbf16>
    %498 = vector.shape_cast %497 : vector<1x1x16xbf16> to vector<1x16xbf16>
    %499 = arith.extf %498 : vector<1x16xbf16> to vector<1x16xf32>
    %500 = vector.broadcast %499 : vector<1x16xf32> to vector<16x16xf32>
    %501 = arith.addf %496, %500 : vector<16x16xf32>
    %cst_279 = arith.constant 2.500000e-01 : f32
    %502 = vector.broadcast %cst_279 : f32 to vector<16x16xf32>
    %503 = arith.mulf %485, %502 : vector<16x16xf32>
    %504 = arith.truncf %503 : vector<16x16xf32> to vector<16x16xbf16>
    %505 = arith.truncf %493 : vector<16x16xf32> to vector<16x16xbf16>
    %cst_280 = arith.constant dense<0.000000e+00> : vector<16x16xf32>
    %506 = tpu.matmul %504, %505, %cst_280 {dimension_numbers = #tpu.dot_dimension_numbers<[1], [1], [0], [0], [0, 0, 1, 0], [], []>} : vector<16x16xbf16>, vector<16x16xbf16>, vector<16x16xf32> -> vector<16x16xf32>
    %cst_281 = arith.constant dense<0xFF800000> : vector<16xf32>
    %507 = vector.multi_reduction <maximumf>, %506, %cst_281 [1] : vector<16x16xf32> to vector<16xf32>
    %508 = vector.shape_cast %507 : vector<16xf32> to vector<16x1xf32>
    %509 = vector.broadcast %508 : vector<16x1xf32> to vector<16x16xf32>
    %510 = arith.subf %506, %509 : vector<16x16xf32>
    %511 = math.exp %510 : vector<16x16xf32>
    %cst_282 = arith.constant dense<0.000000e+00> : vector<16xf32>
    %512 = vector.multi_reduction <add>, %511, %cst_282 [1] : vector<16x16xf32> to vector<16xf32>
    %513 = vector.shape_cast %512 : vector<16xf32> to vector<16x1xf32>
    %514 = vector.broadcast %513 : vector<16x1xf32> to vector<16x16xf32>
    %515 = arith.divf %511, %514 : vector<16x16xf32>
    %516 = arith.truncf %515 : vector<16x16xf32> to vector<16x16xbf16>
    %c0_283 = arith.constant 0 : index
    %c5_284 = arith.constant 5 : index
    %c0_285 = arith.constant 0 : index
    %c0_286 = arith.constant 0 : index
    %517 = vector.load %arg22[%c0_283, %c5_284, %c0_285, %c0_286] : memref<1x6x16x16xbf16, #tpu.memory_space<vmem>>, vector<1x1x16x16xbf16>
    %518 = vector.shape_cast %517 : vector<1x1x16x16xbf16> to vector<16x16xbf16>
    %519 = vector.shape_cast %516 : vector<16x16xbf16> to vector<1x1x16x16xbf16>
    tpu.vector_store %arg22[%c0_283, %c5_284, %c0_285, %c0_286], %519 {strides = array<i32>} : memref<1x6x16x16xbf16, #tpu.memory_space<vmem>>, vector<1x1x16x16xbf16>,
    %520 = arith.truncf %515 : vector<16x16xf32> to vector<16x16xbf16>
    %521 = arith.truncf %501 : vector<16x16xf32> to vector<16x16xbf16>
    %cst_287 = arith.constant dense<0.000000e+00> : vector<16x16xf32>
    %522 = tpu.matmul %520, %521, %cst_287 {dimension_numbers = #tpu.dot_dimension_numbers<[1], [0], [0], [1], [0, 0, 1, 1], [], []>} : vector<16x16xbf16>, vector<16x16xbf16>, vector<16x16xf32> -> vector<16x16xf32>
    %523 = arith.truncf %522 : vector<16x16xf32> to vector<16x16xbf16>
    %c5_288 = arith.constant 5 : index
    %c0_289 = arith.constant 0 : index
    %c0_290 = arith.constant 0 : index
    %524 = vector.load %arg9[%c5_288, %c0_289, %c0_290] : memref<6x16x32xbf16, #tpu.memory_space<vmem>>, vector<1x16x32xbf16>
    %525 = vector.shape_cast %524 : vector<1x16x32xbf16> to vector<16x32xbf16>
    %cst_291 = arith.constant dense<0.000000e+00> : vector<16x32xf32>
    %526 = tpu.matmul %523, %525, %cst_291 {dimension_numbers = #tpu.dot_dimension_numbers<[1], [0], [0], [1], [0, 0, 1, 1], [], []>} : vector<16x16xbf16>, vector<16x32xbf16>, vector<16x32xf32> -> vector<16x32xf32>
    %527 = arith.addf %477, %526 : vector<16x32xf32>
    %c2_292 = arith.constant 2 : index
    %c0_293 = arith.constant 0 : index
    %c0_294 = arith.constant 0 : index
    %528 = vector.load %arg10[%c2_292, %c0_293, %c0_294] : memref<3x1x32xbf16, #tpu.memory_space<vmem>>, vector<1x1x32xbf16>
    %529 = vector.shape_cast %528 : vector<1x1x32xbf16> to vector<1x32xbf16>
    %530 = arith.extf %529 : vector<1x32xbf16> to vector<1x32xf32>
    %531 = vector.broadcast %530 : vector<1x32xf32> to vector<16x32xf32>
    %532 = arith.addf %527, %531 : vector<16x32xf32>
    %c2_295 = arith.constant 2 : index
    %c0_296 = arith.constant 0 : index
    %c0_297 = arith.constant 0 : index
    %533 = vector.load %arg11[%c2_295, %c0_296, %c0_297] : memref<3x1x32xbf16, #tpu.memory_space<vmem>>, vector<1x1x32xbf16>
    %534 = vector.shape_cast %533 : vector<1x1x32xbf16> to vector<1x32xbf16>
    %c2_298 = arith.constant 2 : index
    %c0_299 = arith.constant 0 : index
    %c0_300 = arith.constant 0 : index
    %535 = vector.load %arg12[%c2_298, %c0_299, %c0_300] : memref<3x1x32xbf16, #tpu.memory_space<vmem>>, vector<1x1x32xbf16>
    %536 = vector.shape_cast %535 : vector<1x1x32xbf16> to vector<1x32xbf16>
    %cst_301 = arith.constant dense<0.000000e+00> : vector<16xf32>
    %537 = vector.multi_reduction <add>, %532, %cst_301 [1] : vector<16x32xf32> to vector<16xf32>
    %538 = vector.shape_cast %537 : vector<16xf32> to vector<16x1xf32>
    %cst_302 = arith.constant 3.200000e+01 : f32
    %539 = vector.broadcast %cst_302 : f32 to vector<16x1xf32>
    %540 = arith.divf %538, %539 : vector<16x1xf32>
    %541 = vector.broadcast %540 : vector<16x1xf32> to vector<16x32xf32>
    %542 = arith.subf %532, %541 : vector<16x32xf32>
    %543 = arith.mulf %542, %542 : vector<16x32xf32>
    %cst_303 = arith.constant dense<0.000000e+00> : vector<16xf32>
    %544 = vector.multi_reduction <add>, %543, %cst_303 [1] : vector<16x32xf32> to vector<16xf32>
    %545 = vector.shape_cast %544 : vector<16xf32> to vector<16x1xf32>
    %cst_304 = arith.constant 3.200000e+01 : f32
    %546 = vector.broadcast %cst_304 : f32 to vector<16x1xf32>
    %547 = arith.divf %545, %546 : vector<16x1xf32>
    %548 = vector.broadcast %540 : vector<16x1xf32> to vector<16x32xf32>
    %549 = arith.subf %532, %548 : vector<16x32xf32>
    %cst_305 = arith.constant 9.99999974E-6 : f32
    %550 = vector.broadcast %cst_305 : f32 to vector<16x1xf32>
    %551 = arith.addf %547, %550 : vector<16x1xf32>
    %552 = math.rsqrt %551 : vector<16x1xf32>
    %553 = vector.broadcast %552 : vector<16x1xf32> to vector<16x32xf32>
    %554 = arith.mulf %549, %553 : vector<16x32xf32>
    %555 = arith.extf %534 : vector<1x32xbf16> to vector<1x32xf32>
    %556 = vector.broadcast %555 : vector<1x32xf32> to vector<16x32xf32>
    %557 = arith.mulf %554, %556 : vector<16x32xf32>
    %558 = arith.extf %536 : vector<1x32xbf16> to vector<1x32xf32>
    %559 = vector.broadcast %558 : vector<1x32xf32> to vector<16x32xf32>
    %560 = arith.addf %557, %559 : vector<16x32xf32>
    %561 = arith.truncf %560 : vector<16x32xf32> to vector<16x32xbf16>
    %c2_306 = arith.constant 2 : index
    %c0_307 = arith.constant 0 : index
    %c0_308 = arith.constant 0 : index
    %562 = vector.load %arg13[%c2_306, %c0_307, %c0_308] : memref<3x32x64xbf16, #tpu.memory_space<vmem>>, vector<1x32x64xbf16>
    %563 = vector.shape_cast %562 : vector<1x32x64xbf16> to vector<32x64xbf16>
    %cst_309 = arith.constant dense<0.000000e+00> : vector<16x64xf32>
    %564 = tpu.matmul %561, %563, %cst_309 {dimension_numbers = #tpu.dot_dimension_numbers<[1], [0], [0], [1], [0, 0, 1, 1], [], []>} : vector<16x32xbf16>, vector<32x64xbf16>, vector<16x64xf32> -> vector<16x64xf32>
    %c2_310 = arith.constant 2 : index
    %c0_311 = arith.constant 0 : index
    %c0_312 = arith.constant 0 : index
    %565 = vector.load %arg14[%c2_310, %c0_311, %c0_312] : memref<3x1x64xbf16, #tpu.memory_space<vmem>>, vector<1x1x64xbf16>
    %566 = vector.shape_cast %565 : vector<1x1x64xbf16> to vector<1x64xbf16>
    %567 = arith.extf %566 : vector<1x64xbf16> to vector<1x64xf32>
    %568 = vector.broadcast %567 : vector<1x64xf32> to vector<16x64xf32>
    %569 = arith.addf %564, %568 : vector<16x64xf32>
    %570 = arith.mulf %569, %569 : vector<16x64xf32>
    %571 = arith.mulf %569, %570 : vector<16x64xf32>
    %cst_313 = arith.constant 4.471500e-02 : f32
    %572 = vector.broadcast %cst_313 : f32 to vector<16x64xf32>
    %573 = arith.mulf %572, %571 : vector<16x64xf32>
    %574 = arith.addf %569, %573 : vector<16x64xf32>
    %cst_314 = arith.constant 0.797884583 : f32
    %575 = vector.broadcast %cst_314 : f32 to vector<16x64xf32>
    %576 = arith.mulf %575, %574 : vector<16x64xf32>
    %577 = math.tanh %576 : vector<16x64xf32>
    %cst_315 = arith.constant 1.000000e+00 : f32
    %578 = vector.broadcast %cst_315 : f32 to vector<16x64xf32>
    %579 = arith.addf %578, %577 : vector<16x64xf32>
    %cst_316 = arith.constant 5.000000e-01 : f32
    %580 = vector.broadcast %cst_316 : f32 to vector<16x64xf32>
    %581 = arith.mulf %580, %579 : vector<16x64xf32>
    %582 = arith.mulf %569, %581 : vector<16x64xf32>
    %583 = arith.truncf %582 : vector<16x64xf32> to vector<16x64xbf16>
    %c2_317 = arith.constant 2 : index
    %c0_318 = arith.constant 0 : index
    %c0_319 = arith.constant 0 : index
    %584 = vector.load %arg15[%c2_317, %c0_318, %c0_319] : memref<3x64x32xbf16, #tpu.memory_space<vmem>>, vector<1x64x32xbf16>
    %585 = vector.shape_cast %584 : vector<1x64x32xbf16> to vector<64x32xbf16>
    %cst_320 = arith.constant dense<0.000000e+00> : vector<16x32xf32>
    %586 = tpu.matmul %583, %585, %cst_320 {dimension_numbers = #tpu.dot_dimension_numbers<[1], [0], [0], [1], [0, 0, 1, 1], [], []>} : vector<16x64xbf16>, vector<64x32xbf16>, vector<16x32xf32> -> vector<16x32xf32>
    %c2_321 = arith.constant 2 : index
    %c0_322 = arith.constant 0 : index
    %c0_323 = arith.constant 0 : index
    %587 = vector.load %arg16[%c2_321, %c0_322, %c0_323] : memref<3x1x32xbf16, #tpu.memory_space<vmem>>, vector<1x1x32xbf16>
    %588 = vector.shape_cast %587 : vector<1x1x32xbf16> to vector<1x32xbf16>
    %589 = arith.extf %588 : vector<1x32xbf16> to vector<1x32xf32>
    %590 = vector.broadcast %589 : vector<1x32xf32> to vector<16x32xf32>
    %591 = arith.addf %586, %590 : vector<16x32xf32>
    %592 = arith.addf %532, %591 : vector<16x32xf32>
    %cst_324 = arith.constant dense<0.000000e+00> : vector<32xf32>
    %593 = vector.multi_reduction <add>, %592, %cst_324 [0] : vector<16x32xf32> to vector<32xf32>
    %594 = vector.shape_cast %593 : vector<32xf32> to vector<1x32xf32>
    %cst_325 = arith.constant 1.600000e+01 : f32
    %595 = vector.broadcast %cst_325 : f32 to vector<1x32xf32>
    %596 = arith.divf %594, %595 : vector<1x32xf32>
    %c0_326 = arith.constant 0 : index
    %c0_327 = arith.constant 0 : index
    %597 = vector.load %arg17[%c0_326, %c0_327] : memref<1x32xbf16, #tpu.memory_space<vmem>>, vector<1x32xbf16>
    %c0_328 = arith.constant 0 : index
    %c0_329 = arith.constant 0 : index
    %598 = vector.load %arg18[%c0_328, %c0_329] : memref<1x32xbf16, #tpu.memory_space<vmem>>, vector<1x32xbf16>
    %cst_330 = arith.constant dense<0.000000e+00> : vector<1xf32>
    %599 = vector.multi_reduction <add>, %596, %cst_330 [1] : vector<1x32xf32> to vector<1xf32>
    %600 = vector.shape_cast %599 : vector<1xf32> to vector<1x1xf32>
    %cst_331 = arith.constant 3.200000e+01 : f32
    %601 = vector.broadcast %cst_331 : f32 to vector<1x1xf32>
    %602 = arith.divf %600, %601 : vector<1x1xf32>
    %603 = vector.broadcast %602 : vector<1x1xf32> to vector<1x32xf32>
    %604 = arith.subf %596, %603 : vector<1x32xf32>
    %605 = arith.mulf %604, %604 : vector<1x32xf32>
    %cst_332 = arith.constant dense<0.000000e+00> : vector<1xf32>
    %606 = vector.multi_reduction <add>, %605, %cst_332 [1] : vector<1x32xf32> to vector<1xf32>
    %607 = vector.shape_cast %606 : vector<1xf32> to vector<1x1xf32>
    %cst_333 = arith.constant 3.200000e+01 : f32
    %608 = vector.broadcast %cst_333 : f32 to vector<1x1xf32>
    %609 = arith.divf %607, %608 : vector<1x1xf32>
    %610 = vector.broadcast %602 : vector<1x1xf32> to vector<1x32xf32>
    %611 = arith.subf %596, %610 : vector<1x32xf32>
    %cst_334 = arith.constant 9.99999974E-6 : f32
    %612 = vector.broadcast %cst_334 : f32 to vector<1x1xf32>
    %613 = arith.addf %609, %612 : vector<1x1xf32>
    %614 = math.rsqrt %613 : vector<1x1xf32>
    %615 = vector.broadcast %614 : vector<1x1xf32> to vector<1x32xf32>
    %616 = arith.mulf %611, %615 : vector<1x32xf32>
    %617 = arith.extf %597 : vector<1x32xbf16> to vector<1x32xf32>
    %618 = arith.mulf %616, %617 : vector<1x32xf32>
    %619 = arith.extf %598 : vector<1x32xbf16> to vector<1x32xf32>
    %620 = arith.addf %618, %619 : vector<1x32xf32>
    %621 = arith.truncf %620 : vector<1x32xf32> to vector<1x32xbf16>
    %c0_335 = arith.constant 0 : index
    %c0_336 = arith.constant 0 : index
    %622 = vector.load %arg19[%c0_335, %c0_336] : memref<32x10xbf16, #tpu.memory_space<vmem>>, vector<32x10xbf16>
    %cst_337 = arith.constant dense<0.000000e+00> : vector<1x10xf32>
    %623 = tpu.matmul %621, %622, %cst_337 {dimension_numbers = #tpu.dot_dimension_numbers<[1], [0], [0], [1], [0, 0, 1, 1], [], []>} : vector<1x32xbf16>, vector<32x10xbf16>, vector<1x10xf32> -> vector<1x10xf32>
    %c0_338 = arith.constant 0 : index
    %c0_339 = arith.constant 0 : index
    %624 = vector.load %arg20[%c0_338, %c0_339] : memref<1x10xbf16, #tpu.memory_space<vmem>>, vector<1x10xbf16>
    %625 = arith.extf %624 : vector<1x10xbf16> to vector<1x10xf32>
    %626 = arith.addf %623, %625 : vector<1x10xf32>
    %c0_340 = arith.constant 0 : index
    %c0_341 = arith.constant 0 : index
    %c0_342 = arith.constant 0 : index
    %627 = vector.load %arg21[%c0_340, %c0_341, %c0_342] : memref<1x1x10xf32, #tpu.memory_space<vmem>>, vector<1x1x10xf32>
    %628 = vector.shape_cast %627 : vector<1x1x10xf32> to vector<1x10xf32>
    %629 = vector.shape_cast %626 : vector<1x10xf32> to vector<1x1x10xf32>
    tpu.vector_store %arg21[%c0_340, %c0_341, %c0_342], %629 {strides = array<i32>} : memref<1x1x10xf32, #tpu.memory_space<vmem>>, vector<1x1x10xf32>,
    return
  }
  func.func @transform_0(%arg0: i32) -> (i32, i32, i32) {
    %c0_i32 = arith.constant 0 : i32
    %c0_i32_0 = arith.constant 0 : i32
    %c0_i32_1 = arith.constant 0 : i32
    return %arg0, %c0_i32, %c0_i32_0 : i32, i32, i32
  }
  func.func @transform_1(%arg0: i32) -> (i32, i32) {
    %c0_i32 = arith.constant 0 : i32
    %c0_i32_0 = arith.constant 0 : i32
    %c0_i32_1 = arith.constant 0 : i32
    return %c0_i32, %c0_i32_0 : i32, i32
  }
  func.func @transform_2(%arg0: i32) -> (i32, i32) {
    %c0_i32 = arith.constant 0 : i32
    %c0_i32_0 = arith.constant 0 : i32
    %c0_i32_1 = arith.constant 0 : i32
    return %c0_i32, %c0_i32_0 : i32, i32
  }
  func.func @transform_3(%arg0: i32) -> (i32, i32) {
    %c0_i32 = arith.constant 0 : i32
    %c0_i32_0 = arith.constant 0 : i32
    %c0_i32_1 = arith.constant 0 : i32
    return %c0_i32, %c0_i32_0 : i32, i32
  }
  func.func @transform_4(%arg0: i32) -> (i32, i32, i32) {
    %c0_i32 = arith.constant 0 : i32
    %c0_i32_0 = arith.constant 0 : i32
    %c0_i32_1 = arith.constant 0 : i32
    %c0_i32_2 = arith.constant 0 : i32
    return %c0_i32, %c0_i32_0, %c0_i32_1 : i32, i32, i32
  }
  func.func @transform_5(%arg0: i32) -> (i32, i32, i32) {
    %c0_i32 = arith.constant 0 : i32
    %c0_i32_0 = arith.constant 0 : i32
    %c0_i32_1 = arith.constant 0 : i32
    %c0_i32_2 = arith.constant 0 : i32
    return %c0_i32, %c0_i32_0, %c0_i32_1 : i32, i32, i32
  }
  func.func @transform_6(%arg0: i32) -> (i32, i32, i32) {
    %c0_i32 = arith.constant 0 : i32
    %c0_i32_0 = arith.constant 0 : i32
    %c0_i32_1 = arith.constant 0 : i32
    %c0_i32_2 = arith.constant 0 : i32
    return %c0_i32, %c0_i32_0, %c0_i32_1 : i32, i32, i32
  }
  func.func @transform_7(%arg0: i32) -> (i32, i32, i32) {
    %c0_i32 = arith.constant 0 : i32
    %c0_i32_0 = arith.constant 0 : i32
    %c0_i32_1 = arith.constant 0 : i32
    %c0_i32_2 = arith.constant 0 : i32
    return %c0_i32, %c0_i32_0, %c0_i32_1 : i32, i32, i32
  }
  func.func @transform_8(%arg0: i32) -> (i32, i32, i32) {
    %c0_i32 = arith.constant 0 : i32
    %c0_i32_0 = arith.constant 0 : i32
    %c0_i32_1 = arith.constant 0 : i32
    %c0_i32_2 = arith.constant 0 : i32
    return %c0_i32, %c0_i32_0, %c0_i32_1 : i32, i32, i32
  }
  func.func @transform_9(%arg0: i32) -> (i32, i32, i32) {
    %c0_i32 = arith.constant 0 : i32
    %c0_i32_0 = arith.constant 0 : i32
    %c0_i32_1 = arith.constant 0 : i32
    %c0_i32_2 = arith.constant 0 : i32
    return %c0_i32, %c0_i32_0, %c0_i32_1 : i32, i32, i32
  }
  func.func @transform_10(%arg0: i32) -> (i32, i32, i32) {
    %c0_i32 = arith.constant 0 : i32
    %c0_i32_0 = arith.constant 0 : i32
    %c0_i32_1 = arith.constant 0 : i32
    %c0_i32_2 = arith.constant 0 : i32
    return %c0_i32, %c0_i32_0, %c0_i32_1 : i32, i32, i32
  }
  func.func @transform_11(%arg0: i32) -> (i32, i32, i32) {
    %c0_i32 = arith.constant 0 : i32
    %c0_i32_0 = arith.constant 0 : i32
    %c0_i32_1 = arith.constant 0 : i32
    %c0_i32_2 = arith.constant 0 : i32
    return %c0_i32, %c0_i32_0, %c0_i32_1 : i32, i32, i32
  }
  func.func @transform_12(%arg0: i32) -> (i32, i32, i32) {
    %c0_i32 = arith.constant 0 : i32
    %c0_i32_0 = arith.constant 0 : i32
    %c0_i32_1 = arith.constant 0 : i32
    %c0_i32_2 = arith.constant 0 : i32
    return %c0_i32, %c0_i32_0, %c0_i32_1 : i32, i32, i32
  }
  func.func @transform_13(%arg0: i32) -> (i32, i32, i32) {
    %c0_i32 = arith.constant 0 : i32
    %c0_i32_0 = arith.constant 0 : i32
    %c0_i32_1 = arith.constant 0 : i32
    %c0_i32_2 = arith.constant 0 : i32
    return %c0_i32, %c0_i32_0, %c0_i32_1 : i32, i32, i32
  }
  func.func @transform_14(%arg0: i32) -> (i32, i32, i32) {
    %c0_i32 = arith.constant 0 : i32
    %c0_i32_0 = arith.constant 0 : i32
    %c0_i32_1 = arith.constant 0 : i32
    %c0_i32_2 = arith.constant 0 : i32
    return %c0_i32, %c0_i32_0, %c0_i32_1 : i32, i32, i32
  }
  func.func @transform_15(%arg0: i32) -> (i32, i32, i32) {
    %c0_i32 = arith.constant 0 : i32
    %c0_i32_0 = arith.constant 0 : i32
    %c0_i32_1 = arith.constant 0 : i32
    %c0_i32_2 = arith.constant 0 : i32
    return %c0_i32, %c0_i32_0, %c0_i32_1 : i32, i32, i32
  }
  func.func @transform_16(%arg0: i32) -> (i32, i32) {
    %c0_i32 = arith.constant 0 : i32
    %c0_i32_0 = arith.constant 0 : i32
    %c0_i32_1 = arith.constant 0 : i32
    return %c0_i32, %c0_i32_0 : i32, i32
  }
  func.func @transform_17(%arg0: i32) -> (i32, i32) {
    %c0_i32 = arith.constant 0 : i32
    %c0_i32_0 = arith.constant 0 : i32
    %c0_i32_1 = arith.constant 0 : i32
    return %c0_i32, %c0_i32_0 : i32, i32
  }
  func.func @transform_18(%arg0: i32) -> (i32, i32) {
    %c0_i32 = arith.constant 0 : i32
    %c0_i32_0 = arith.constant 0 : i32
    %c0_i32_1 = arith.constant 0 : i32
    return %c0_i32, %c0_i32_0 : i32, i32
  }
  func.func @transform_19(%arg0: i32) -> (i32, i32) {
    %c0_i32 = arith.constant 0 : i32
    %c0_i32_0 = arith.constant 0 : i32
    %c0_i32_1 = arith.constant 0 : i32
    return %c0_i32, %c0_i32_0 : i32, i32
  }
  func.func @transform_20(%arg0: i32) -> (i32, i32, i32) {
    %c0_i32 = arith.constant 0 : i32
    %c0_i32_0 = arith.constant 0 : i32
    %c0_i32_1 = arith.constant 0 : i32
    return %arg0, %c0_i32, %c0_i32_0 : i32, i32, i32
  }
  func.func @transform_21(%arg0: i32) -> (i32, i32, i32, i32) {
    %c0_i32 = arith.constant 0 : i32
    %c0_i32_0 = arith.constant 0 : i32
    %c0_i32_1 = arith.constant 0 : i32
    %c0_i32_2 = arith.constant 0 : i32
    return %arg0, %c0_i32, %c0_i32_0, %c0_i32_1 : i32, i32, i32, i32
  }
}

</mosaic_0001>

<bundles_post_ra>
// kernel: vit_forward.1
= control target key start
LH: loop header
LB: loop body
LE: loop exit
PB: predicated region body
PF: predicated region fallthrough
CT: control target
= control target key end

     0   :  { %s6029_s0 = inlined_call_operand.vmem [shape: bf16[2,16,48], index: 0, kind: input, shape index: {}]   ;;  %s6030_s1 = inlined_call_operand.vmem [shape: bf16[48,32], index: 1, kind: input, shape index: {}]   ;;  %s6031_s2 = inlined_call_operand.vmem [shape: bf16[1,32], index: 2, kind: input, shape index: {}]   ;;  %s6032_s3 = inlined_call_operand.vmem [shape: bf16[16,32], index: 3, kind: input, shape index: {}]   ;;  %s6033_s4 = inlined_call_operand.vmem [shape: bf16[3,1,32], index: 4, kind: input, shape index: {}]   ;;  %s6034_s5 = inlined_call_operand.vmem [shape: bf16[3,1,32], index: 5, kind: input, shape index: {}]   ;;  %s6035_s6 = inlined_call_operand.vmem [shape: bf16[18,32,16], index: 6, kind: input, shape index: {}]   ;;  %s6036_s7 = inlined_call_operand.vmem [shape: bf16[18,1,16], index: 7, kind: input, shape index: {}]   ;;  %s6037_s8 = inlined_call_operand.vmem [shape: bf16[6,16,32], index: 8, kind: input, shape index: {}]   ;;  %s6038_s9 = inlined_call_operand.vmem [shape: bf16[3,1,32], index: 9, kind: input, shape index: {}]   ;;  %s6039_s10 = inlined_call_operand.vmem [shape: bf16[3,1,32], index: 10, kind: input, shape index: {}]   ;;  %s6040_s11 = inlined_call_operand.vmem [shape: bf16[3,1,32], index: 11, kind: input, shape index: {}]   ;;  %s6041_s12 = inlined_call_operand.vmem [shape: bf16[3,32,64], index: 12, kind: input, shape index: {}]   ;;  %s6042_s13 = inlined_call_operand.vmem [shape: bf16[3,1,64], index: 13, kind: input, shape index: {}]   ;;  %s6043_s14 = inlined_call_operand.vmem [shape: bf16[3,64,32], index: 14, kind: input, shape index: {}]   ;;  %s6044_s15 = inlined_call_operand.vmem [shape: bf16[3,1,32], index: 15, kind: input, shape index: {}]   ;;  %s6045_s16 = inlined_call_operand.vmem [shape: bf16[1,32], index: 16, kind: input, shape index: {}]   ;;  %s6046_s17 = inlined_call_operand.vmem [shape: bf16[1,32], index: 17, kind: input, shape index: {}]   ;;  %s6047_s18 = inlined_call_operand.vmem [shape: bf16[32,10], index: 18, kind: input, shape index: {}]   ;;  %s6048_s19 = inlined_call_operand.vmem [shape: bf16[1,10], index: 19, kind: input, shape index: {}]   ;;  %s6049_s20 = inlined_call_operand.hbm [shape: f32[2,1,10], index: 20, kind: output, shape index: {0}]   ;;  %s6050_s21 = inlined_call_operand.vmem [shape: bf16[2,6,16,16], index: 21, kind: output, shape index: {1}]  }
   0x1   :  { %6060 = sst [smem:[#allocation9_spill]] %s6029_s0 }
   0x2   :  { %6061 = sst [smem:[#allocation10_spill]] %s6030_s1 }
   0x3   :  { %6062 = sst [smem:[#allocation11_spill]] %s6031_s2 }
   0x4   :  { %6063 = sst [smem:[#allocation12_spill]] %s6032_s3 }
   0x5   :  { %6064 = sst [smem:[#allocation13_spill]] %s6033_s4 }
   0x6   :  { %6065 = sst [smem:[#allocation14_spill]] %s6034_s5 }
   0x7   :  { %6066 = sst [smem:[#allocation15_spill]] %s6035_s6 }
   0x8   :  { %6067 = sst [smem:[#allocation16_spill]] %s6050_s21 }
   0x9   :  { %27 = vsyncpa [#allocation3], 0 }
   0xa   :  { %29 = vsyncpa [#allocation3 + $0x1], 0  ;;  %s5160_s2 = smov 0   ;;  %s5162_s25 = smov 0  }
   0xb   :  { %s5164_s26 = smov 0   ;;  %s5166_s27 = smov 0  }
   0xc LB: > { %6068 = sst [smem:[#allocation5_spill]] %s5041_s26  ;;  %s5181_s3 = sadd.s32 4294967295, %s5045_s27   ;;  %s5045_s27 = sphi %s5166_s27, %s6083_s27   ;;  %s5041_s26 = sphi %s5164_s26, %s6085_s26   ;;  %s5037_s25 = sphi %s5162_s25, %s6087_s25   ;;  %s5033_s2 = sphi %s5160_s2, %s6086_s2  }
   0xd   : > { %s4048_s28 = sadd.s32 4294967294, %s5045_s27   ;;  %s5185_s29 = sadd.s32 1, %s5045_s27  }
   0xe   : > { %6069 = sst [smem:[#allocation6_spill]] %s5185_s29  ;;  %s467_s0 = sadd.s32 1, %s5041_s26 }
   0xf   : > { %s464_s4 = ssub.s32 %s5045_s27, %s5185_s29  ;;  %p477_p0 = scmp.ne.s32.totalorder %s5041_s26, %s5037_s25 }
  0x10   : > { %p465_p1 = scmp.eq.s32.totalorder %s464_s4, 0  ;;  %p478_p2 = scmp.eq.s32.totalorder %s5181_s3, 1 }
  0x11   : > { %p483_p3 = scmp.ne.s32.totalorder %s5037_s25, %s5033_s2  ;;  %p484_p4 = scmp.eq.s32.totalorder %s4048_s28, 1 }
  0x12   : > { %s5196_s30 = scalar_select %p465_p1, %s5041_s26, %s467_s0  }
  0x13   : > { %p5198_p5 = por %p478_p2, %p477_p0  ;;  %p5202_p6 = por %p484_p4, %p483_p3 }
  0x14   : > { %6070 = sst [smem:[#allocation7_spill]] %s5196_s30  ;;  %p4051_p7 = scmp.ge.s32.totalorder %s5045_s27, 1 }
  0x15   : > { %s6072_s22 = scalar_select %p5202_p6, 1, 0 }
  0x16   : > { %p593_p8 = scmp.lt.s32.totalorder %s5045_s27, 3 }
  0x17   : > { %6073 = sst [smem:[#allocation8_spill]] %s6072_s22 }
  0x18   : > { %p594_p9 = pnand %p4051_p7, %p593_p8 }
  0x19   : > { %s6074_s24 = sld [smem:[#allocation10_spill]] (!%p594_p9)  ;;  %p657_p10 = scmp.lt.s32.totalorder (!%p594_p9), %s5181_s3, 1 }
  0x1a   : > { %597 = sbr.rel (%p594_p9) target bundleno = 10102 (0x2776), region = 100  ;;  %s6075_s26 = sld [smem:[#allocation9_spill]] (!%p594_p9) }
  0x1b   : > { %s6078_s6 = sld [smem:[#allocation15_spill]] (!%p594_p9)  ;;  %s5049_s22 = smov (!%p594_p9), [#allocation2]  }
  0x1c   : > { %s6079_s0 = sld [smem:[#allocation13_spill]] (!%p594_p9) }
  0x1d   : > { %s6080_s30 = sld [smem:[#allocation14_spill]] (!%p594_p9) }
  0x1e   : > { %s6081_s21 = sld [smem:[#allocation16_spill]] (!%p594_p9) }
  0x1f   : > { %v4833_v0 = vld [vmem:[%s6074_s24 + $0x10] sm:$0xff]   ;;  %v5047_v1 = vmov 0.0   ;;  %v4834_v2 = vld [vmem:[%s6074_s24 + $0x8] sm:$0xff]   ;;  %vm5048_vm0 = vmmov 0   ;;  %s5223_s4 = scalar_select %p657_p10, %s5181_s3, 1  ;;  %v4835_v3 = vld [vmem:[%s6074_s24] sm:$0xff]   ;;  %v678_v5 = vlaneseq }
  0x20   : > { %4461 = vmatprep.subr.bf16.mxu0 %v5047_v1  ;;  %4471 = vmatprep.subr.bf16.mxu1 %v5047_v1  ;;  %vm705_vm1 = vcmask 392192   ;;  %s6076_s24 = sld [smem:[#allocation11_spill]]  ;;  %vm758_vm2 = vcmask 261120   ;;  %v4075_v61 = vld [vmem:[%s6036_s7 + $0x4] sm:$0x1]  ;;  %vm1001_vm3 = vcmask 130048  }
  0x21   : > { %4462 = vmatpush3.bf16.msra.mxu0 %v4833_v0  ;;  %4467 = vmatprep.mubr.msk.bf16.mxu0 %vm5048_vm0, %v5047_v1  ;;  %s4323_s28 = sshll.u32 %s5223_s4, 3  ;;  %v679_v6 = vshrl.u32 %v678_v5, 7  ;;  %v4837_v34 = vld [vmem:[%s6078_s6 + $0x8] sm:$0xff]   ;;  %v4839_v36 = vld [vmem:[%s6078_s6] sm:$0xff]   ;;  %v939_v62 = vunpack.c.l.bf16 %v4075_v61  ;;  %s4791_s23 = smul.u32 48, %s5223_s4  ;;  %vm1079_vm4 = vcmask 125952  }
  0x22   : > { %4463 = vmatprep.subr.bf16.mxu0 %v5047_v1  ;;  %4475 = vmatprep.mubr.msk.bf16.mxu1 %vm5048_vm0, %v5047_v1  ;;  %s661_s29 = scalar_lea.vmem %s6075_s26, %s4323_s28  ;;  %v4838_v35 = vld [vmem:[%s6078_s6 + $0x48] sm:$0xff]   ;;  %v4840_v37 = vld [vmem:[%s6078_s6 + $0x40] sm:$0xff]   ;;  %v4844_v61 = vld [vmem:[%s6078_s6 + $0x10] sm:$0xff]   ;;  %vm1736_vm5 = vcmask 523264   ;;  %s4320_s4 = sshll.u32 %s5181_s3, 4  ;;  %vm3945_vm6 = vcmask 73728  }
  0x23   : > { %v4836_v4 = vld [vmem:[%s661_s29] sm:$0xff]   ;;  %v5239_v9 = vsub.s32 0, %v679_v6  ;;  %s6077_s29 = sld [smem:[#allocation12_spill]]  ;;  %4472 = vmatpush3.bf16.msra.mxu1 %v4837_v34  ;;  %v4841_v58 = vld [vmem:[%s6078_s6 + $0x28] sm:$0xff]   ;;  %s5988_s26 = scalar_lea.hbm %s6049_s20, %s4320_s4 }
  0x24   : > { %4473 = vmatprep.subr.bf16.mxu1 %v5047_v1  ;;  %v756_v44 = vld [vmem:[%s6079_s0] sm:$0x1]  ;;  %v4067_v5 = vld [vmem:[%s6036_s7 + $0x2] sm:$0x1] }
  0x25   : > { %4464 = vmatpush3.bf16.msra.mxu0 %v4834_v2  ;;  %v786_v45 = vunpack.c.l.bf16 %v756_v44  ;;  %v757_v46 = vld [vmem:[%s6080_s30] sm:$0x1]  ;;  %v943_v2 = vrot.slane %v939_v62, %v5239_v9  ;;  %v4845_v62 = vld [vmem:[%s6078_s6 + $0x58] sm:$0xff]  }
  0x26   : > { %4465 = vmatprep.subr.bf16.mxu0 %v5047_v1  ;;  %v676_v7 = vld [vmem:[%s6076_s24] sm:$0x1]  ;;  %v793_v50 = vunpack.c.l.bf16 %v757_v46  ;;  %s648_s24 = sand.u32 1, %s5037_s25  }
  0x27   : > { %v677_v8 = vunpack.c.l.bf16 %v676_v7  ;;  %4474 = vmatpush3.bf16.msra.mxu1 %v4839_v36  ;;  %v790_v48 = vrot.slane %v786_v45, %v5239_v9  ;;  %v4842_v60 = vld [vmem:[%s6078_s6 + $0x20] sm:$0xff]   ;;  %s3948_s28 = scalar_lea.sflag [#allocation3], %s648_s24 }
  0x28   : > { %4479 = vmatprep.subr.bf16.mxu1 %v5047_v1  ;;  %v797_v54 = vrot.slane %v793_v50, %v5239_v9 }
  0x29   : > { %4466 = vmatpush3.bf16.msra.mxu0 %v4835_v3  ;;  %v4337_v10 = vld [vmem:[%s6077_s29] sm:$0xff]   ;;  %v681_v11 = vrot.slane %v677_v8, %v5239_v9  ;;  %s5329_s29 = scalar_lea.vmem %s6081_s21, %s4791_s23  ;;  %s649_s23 = scalar_lea.vmem [#allocation2], %s648_s24 }
  0x2a   : > { %4487 = vmatprep.subr.bf16.mxu0 %v5047_v1  ;;  %v4338_v12 = vunpack.c.l.bf16 %v4337_v10  ;;  %v4339_v17 = vunpack.c.h.bf16 %v4337_v10  ;;  %s3965_s1 = sshll.u32 %s649_s23, 4  ;;  %s5990_s1 = int_to_ptr.vmem [resolvable:$true] %s3965_s1 }
  0x2b   : > { %s4985_s3 = scalar_lea.vmem %s5990_s1, 16 }
  0x2c   : > { %4468 = vmatmul.mubr.msk.bf16.vlgmr.msra.gmra.mxu0 %vm705_vm1, %v4836_v4  ;;  %p4986_p11 = scmp.ne.s32.totalorder %s5990_s1, %s4985_s3 }
  0x2d   : > { %4491 = vmatprep.mubr.msk.bf16.mxu0 %vm5048_vm0, %v5047_v1  ;;  %4488 = vmatpush3.bf16.msra.mxu0 %v4838_v35 }
  0x2e   : > { %4489 = vmatprep.subr.bf16.mxu0 %v5047_v1  ;;  %p4987_p12 = pnand %p4986_p11, %p5198_p5 }
  0x30   : > { %p4988_p13 = pneg %p4987_p12 }
  0x31   : > { %4490 = vmatpush3.bf16.msra.mxu0 %v4840_v37 }
  0x32   : > { %4501 = vmatprep.subr.bf16.mxu0 %v5047_v1 }
  0xec   : > { %v743_v13 = vpop.f32.mrf.mxu0 }
  0xed   : > { %v744_v14 = vadd.f32 %v743_v13, %v681_v11 }
  0xee   : > { %v4469_v15 = vpop.f32.mrf.mxu0 }
  0xef   : > { %v5245_v16 = vadd.f32 %v4338_v12, %v744_v14  ;;  %v805_v12 = vld [vmem:[%s6036_s7] sm:$0x1] }
  0xf0   : > { %v746_v18 = vpop.f32.mrf.mxu0 }
  0xf1   : > { %v747_v19 = vadd.f32 %v746_v18, %v681_v11  ;;  %v759_v20 = vsel %vm758_vm2, %v5245_v16, 0.0  ;;  %v874_v11 = vunpack.c.l.bf16 %v4067_v5  ;;  %v806_v18 = vunpack.c.l.bf16 %v805_v12 }
  0xf2   : > { %760 = vadd.xlane.f32.xlu0 %v759_v20  ;;  %v4470_v21 = vpop.f32.mrf.mxu0 }
  0xf3   : > { %v5249_v22 = vadd.f32 %v4339_v17, %v747_v19  ;;  %v878_v19 = vrot.slane %v874_v11, %v5239_v9 }
  0xf5   : > { %v762_v23 = vsel %vm758_vm2, %v5249_v22, 0.0 }
  0xf6   : > { %763 = vadd.xlane.f32.xlu0 %v762_v23  ;;  %v810_v23 = vrot.slane %v806_v18, %v5239_v9 }
 0x17b   : > { %v761_v24 = vpop.xlane.xlu0 %760 }
 0x17c   : > { %v766_v25 = vmul.f32 0.03125, %v761_v24 }
 0x17e   : > { %v768_v26 = vsub.f32 %v5245_v16, %v766_v25 }
 0x17f   : > { %v764_v27 = vpop.xlane.xlu0 %763 }
 0x180   : > { %v767_v28 = vmul.f32 0.03125, %v764_v27  ;;  %v770_v29 = vmul.f32 %v768_v26, %v768_v26 }
 0x182   : > { %v769_v30 = vsub.f32 %v5249_v22, %v767_v28  ;;  %v772_v31 = vsel %vm758_vm2, %v770_v29, 0.0 }
 0x183   : > { %773 = vadd.xlane.f32.xlu1 %v772_v31 }
 0x184   : > { %v771_v32 = vmul.f32 %v769_v30, %v769_v30 }
 0x186   : > { %v775_v33 = vsel %vm758_vm2, %v771_v32, 0.0 }
 0x187   : > { %776 = vadd.xlane.f32.xlu1 %v775_v33 }
 0x20c   : > { %v774_v38 = vpop.xlane.xlu1 %773 }
 0x20d   : > { %v778_v39 = vmul.f32 0.03125, %v774_v38 }
 0x20f   : > { %v780_v40 = vadd.f32 1e-05, %v778_v39 }
 0x210   : > { %v777_v41 = vpop.xlane.xlu1 %776 }
 0x211   : > { %4899 = vrsqrt.f32 %v780_v40  ;;  %v779_v42 = vmul.f32 0.03125, %v777_v41 }
 0x213   : > { %v781_v43 = vadd.f32 1e-05, %v779_v42 }
 0x215   : > { %4901 = vrsqrt.f32 %v781_v43 }
 0x21e   : > { %v4900_v47 = vpop.eup %4899 }
 0x21f   : > { %v784_v49 = vmul.f32 %v4900_v47, %v768_v26 }
 0x221   : > { %v791_v52 = vmul.f32 %v790_v48, %v784_v49 }
 0x222   : > { %v4902_v51 = vpop.eup %4901 }
 0x223   : > { %v785_v53 = vmul.f32 %v4902_v51, %v769_v30  ;;  %v798_v56 = vadd.f32 %v797_v54, %v791_v52 }
 0x225   : > { %v792_v55 = vmul.f32 %v790_v48, %v785_v53 }
 0x227   : > { %v799_v57 = vadd.f32 %v797_v54, %v792_v55 }
 0x229   : > { %v5284_v59 = vpack.c.bf16 %v799_v57, %v798_v56  ;;  %v4843_v57 = vld [vmem:[%s6078_s6 + $0x18] sm:$0xff]  }
 0x22b   : > { %4476 = vmatmul.mubr.msk.bf16.vlgmr.msra.gmra.mxu1 %vm758_vm2, %v5284_v59  ;;  %4492 = vmatmul.mubr.msk.bf16.vlgmr.msra.gmra.mxu0 %vm758_vm2, %v5284_v59 }
 0x22c   : > { %4480 = vmatpush3.bf16.msra.mxu1 %v4841_v58  ;;  %4483 = vmatprep.mubr.msk.bf16.mxu1 %vm5048_vm0, %v5047_v1 }
 0x22d   : > { %4481 = vmatprep.subr.bf16.mxu1 %v5047_v1  ;;  %4503 = vmatprep.mubr.msk.bf16.mxu0 %vm5048_vm0, %v5047_v1 }
 0x230   : > { %4482 = vmatpush3.bf16.msra.mxu1 %v4842_v60 }
 0x231   : > { %4495 = vmatprep.subr.bf16.mxu1 %v5047_v1 }
 0x233   : > { %4484 = vmatmul.mubr.msk.bf16.vlgmr.msra.gmra.mxu1 %vm758_vm2, %v5284_v59 }
 0x234   : > { %4497 = vmatprep.mubr.msk.bf16.mxu1 %vm5048_vm0, %v5047_v1 }
 0x2eb   : > { %v860_v63 = vpop.f32.mrf.mxu1  ;;  %v990_v0 = vpop.f32.mrf.mxu0 }
 0x2ec   : > { %v991_v8 = vadd.f32 %v990_v0, %v943_v2  ;;  %v861_v29 = vadd.f32 %v860_v63, %v810_v23  ;;  %v4846_v63 = vld [vmem:[%s6078_s6 + $0x50] sm:$0xff]   ;;  %v4847_v0 = vld [vmem:[%s6037_s8] sm:$0xff]  }
 0x2ed   : > { %v4477_v3 = vpop.f32.mrf.mxu1  ;;  %v4493_v4 = vpop.f32.mrf.mxu0 }
 0x2ee   : > { %v997_v32 = vmul.f32 0.25, %v861_v29  ;;  %v4089_v3 = vld [vmem:[%s6036_s7 + $0x1] sm:$0x1] }
 0x2ef   : > { %v863_v6 = vpop.f32.mrf.mxu1  ;;  %v993_v7 = vpop.f32.mrf.mxu0  ;;  %v1189_v5 = vunpack.c.l.bf16 %v4089_v3 }
 0x2f0   : > { %v994_v10 = vadd.f32 %v993_v7, %v943_v2  ;;  %v864_v27 = vadd.f32 %v863_v6, %v810_v23  ;;  %v4848_v7 = vld [vmem:[%s6078_s6 + $0x38] sm:$0xff]  }
 0x2f1   : > { %v4478_v13 = vpop.f32.mrf.mxu1  ;;  %v4494_v14 = vpop.f32.mrf.mxu0  ;;  %v1193_v11 = vrot.slane %v1189_v5, %v5239_v9 }
 0x2f2   : > { %v1082_v15 = vpack.c.bf16 %v994_v10, %v991_v8  ;;  %v998_v31 = vmul.f32 0.25, %v864_v27  ;;  %v4849_v13 = vld [vmem:[%s6078_s6 + $0x30] sm:$0xff]  }
 0x2f3   : > { %v925_v17 = vpop.f32.mrf.mxu1 }
 0x2f4   : > { %4502 = vmatpush3.bf16.msra.mxu0 %v1082_v15  ;;  %v926_v24 = vadd.f32 %v925_v17, %v878_v19  ;;  %v999_v33 = vpack.c.bf16 %v998_v31, %v997_v32  ;;  %v4105_v15 = vld [vmem:[%s6036_s7 + $0x5] sm:$0x1] }
 0x2f5   : > { %v4485_v20 = vpop.f32.mrf.mxu1  ;;  %4513 = vmatprep.subr.bf16.mxu0 %v5047_v1 }
 0x2f6   : > { %v1319_v20 = vunpack.c.l.bf16 %v4105_v15 }
 0x2f7   : > { %v928_v21 = vpop.f32.mrf.mxu1 }
 0x2f8   : > { %v929_v25 = vadd.f32 %v928_v21, %v878_v19  ;;  %v1323_v27 = vrot.slane %v1319_v20, %v5239_v9 }
 0x2f9   : > { %v4486_v26 = vpop.f32.mrf.mxu1 }
 0x2fa   : > { %v1000_v28 = vpack.c.bf16 %v929_v25, %v926_v24 }
 0x2fc   : > { %v1006_v30 = vsel %vm1001_vm3, %v1000_v28, 0 }
 0x2fd   : > { %4496 = vmatpush3.bf16.xpose.msra.mxu1 %v1006_v30 }
 0x2fe   : > { %4507 = vmatprep.subr.bf16.mxu1 %v5047_v1 }
 0x304   : > { %4498 = vmatmul.mubr.msk.bf16.vlgmr.msra.gmra.mxu1 %vm1001_vm3, %v999_v33 }
 0x305   : > { %4509 = vmatprep.mubr.msk.bf16.mxu1 %vm5048_vm0, %v5047_v1  ;;  %4508 = vmatpush3.bf16.msra.mxu1 %v4847_v0 }
 0x306   : > { %4521 = vmatprep.subr.bf16.mxu1 %v5047_v1 }
 0x3c4   : > { %v1042_v34 = vpop.f32.mrf.mxu1 }
 0x3c5   : > { %v1049_v35 = vsel %vm1001_vm3, %v1042_v34, -inf }
 0x3c6   : > { %1050 = vmax.xlane.f32.xlu0 %v1049_v35  ;;  %v4499_v36 = vpop.f32.mrf.mxu1 }
 0x3c8   : > { %v1045_v37 = vpop.f32.mrf.mxu1 }
 0x3c9   : > { %v1052_v38 = vsel %vm1001_vm3, %v1045_v37, -inf }
 0x3ca   : > { %1053 = vmax.xlane.f32.xlu1 %v1052_v38  ;;  %v4500_v39 = vpop.f32.mrf.mxu1 }
 0x44f   : > { %v1051_v40 = vpop.xlane.xlu0 %1050 }
 0x450   : > { %v1055_v41 = vsub.f32 %v1042_v34, %v1051_v40 }
 0x452   : > { %v1057_v42 = vmul.f32 1.442695, %v1055_v41 }
 0x453   : > { %v1054_v43 = vpop.xlane.xlu1 %1053 }
 0x454   : > { %4903 = vpow2.f32 %v1057_v42  ;;  %v1056_v44 = vsub.f32 %v1045_v37, %v1054_v43 }
 0x456   : > { %v1059_v45 = vmul.f32 1.442695, %v1056_v44 }
 0x458   : > { %4905 = vpow2.f32 %v1059_v45 }
 0x461   : > { %v4904_v46 = vpop.eup %4903 }
 0x462   : > { %v1061_v47 = vsel %vm1001_vm3, %v4904_v46, 0.0 }
 0x463   : > { %1062 = vadd.xlane.f32.xlu0 %v1061_v47 }
 0x465   : > { %v4906_v48 = vpop.eup %4905 }
 0x466   : > { %v1064_v49 = vsel %vm1001_vm3, %v4906_v48, 0.0 }
 0x467   : > { %1065 = vadd.xlane.f32.xlu1 %v1064_v49 }
 0x4ec   : > { %v1063_v50 = vpop.xlane.xlu0 %1062 }
 0x4ed   : > { %4907 = vrcp.f32 %v1063_v50 }
 0x4f0   : > { %v1066_v51 = vpop.xlane.xlu1 %1065 }
 0x4f1   : > { %4909 = vrcp.f32 %v1066_v51 }
 0x4fa   : > { %v4908_v52 = vpop.eup %4907 }
 0x4fb   : > { %v1068_v53 = vmul.f32 %v4908_v52, %v4904_v46 }
 0x4fd   : > { %v4324_v54 = vpack.c.bf16 %v1068_v53, %v1068_v53 }
 0x4fe   : > { %v4910_v55 = vpop.eup %4909 }
 0x4ff   : > { %v1070_v56 = vmul.f32 %v4910_v55, %v4906_v48  ;;  %1080 = vst.msk [vmem:[%s5329_s29] sm:$0xf] %vm1079_vm4, %v4324_v54 }
 0x501   : > { %v1071_v58 = vpack.c.bf16 %v1070_v56, %v1068_v53  ;;  %v4325_v60 = vpack.c.bf16 %v1070_v56, %v1070_v56 }
 0x503   : > { %1081 = vst.msk [vmem:[%s5329_s29 + $0x4] sm:$0xf] %vm1079_vm4, %v4325_v60  ;;  %4504 = vmatmul.mubr.msk.bf16.vlgmr.msra.gmra.mxu0 %vm1001_vm3, %v1071_v58 }
 0x504   : > { %4514 = vmatpush3.bf16.msra.mxu0 %v4843_v57  ;;  %4517 = vmatprep.mubr.msk.bf16.mxu0 %vm5048_vm0, %v5047_v1 }
 0x505   : > { %4515 = vmatprep.subr.bf16.mxu0 %v5047_v1 }
 0x508   : > { %4516 = vmatpush3.bf16.msra.mxu0 %v4844_v61 }
 0x509   : > { %4529 = vmatprep.subr.bf16.mxu0 %v5047_v1 }
 0x50b   : > { %4518 = vmatmul.mubr.msk.bf16.vlgmr.msra.gmra.mxu0 %vm758_vm2, %v5284_v59 }
 0x50c   : > { %4530 = vmatpush3.bf16.msra.mxu0 %v4845_v62  ;;  %4533 = vmatprep.mubr.msk.bf16.mxu0 %vm5048_vm0, %v5047_v1 }
 0x50d   : > { %4531 = vmatprep.subr.bf16.mxu0 %v5047_v1 }
 0x510   : > { %4532 = vmatpush3.bf16.msra.mxu0 %v4846_v63 }
 0x511   : > { %4543 = vmatprep.subr.bf16.mxu0 %v5047_v1 }
 0x513   : > { %4534 = vmatmul.mubr.msk.bf16.vlgmr.msra.gmra.mxu0 %vm758_vm2, %v5284_v59 }
 0x514   : > { %4545 = vmatprep.mubr.msk.bf16.mxu0 %vm5048_vm0, %v5047_v1 }
 0x5c3   : > { %v1120_v2 = vpop.f32.mrf.mxu0 }
 0x5c5   : > { %v4505_v4 = vpop.f32.mrf.mxu0 }
 0x5c7   : > { %v1123_v6 = vpop.f32.mrf.mxu0 }
 0x5c8   : > { %v1127_v8 = vpack.c.bf16 %v1123_v6, %v1120_v2 }
 0x5c9   : > { %v4506_v10 = vpop.f32.mrf.mxu0 }
 0x5ca   : > { %4510 = vmatmul.mubr.msk.bf16.vlgmr.msra.gmra.mxu1 %vm1001_vm3, %v1127_v8 }
 0x5cb   : > { %v1240_v12 = vpop.f32.mrf.mxu0  ;;  %4522 = vmatpush3.bf16.msra.mxu1 %v4848_v7  ;;  %4525 = vmatprep.mubr.msk.bf16.mxu1 %vm5048_vm0, %v5047_v1 }
 0x5cc   : > { %4523 = vmatprep.subr.bf16.mxu1 %v5047_v1  ;;  %v1241_v17 = vadd.f32 %v1240_v12, %v1193_v11  ;;  %v4850_v12 = vld [vmem:[%s6037_s8 + $0x8] sm:$0xff]  }
 0x5cd   : > { %v4519_v14 = vpop.f32.mrf.mxu0 }
 0x5ce   : > { %v1377_v23 = vmul.f32 0.25, %v1241_v17 }
 0x5cf   : > { %v1243_v18 = vpop.f32.mrf.mxu0  ;;  %4524 = vmatpush3.bf16.msra.mxu1 %v4849_v13 }
 0x5d0   : > { %v1244_v19 = vadd.f32 %v1243_v18, %v1193_v11  ;;  %4537 = vmatprep.subr.bf16.mxu1 %v5047_v1 }
 0x5d1   : > { %v4520_v21 = vpop.f32.mrf.mxu0 }
 0x5d2   : > { %v1378_v24 = vmul.f32 0.25, %v1244_v19  ;;  %4526 = vmatmul.mubr.msk.bf16.vlgmr.msra.gmra.mxu1 %vm758_vm2, %v5284_v59  ;;  %v4097_v59 = vld [vmem:[%s6036_s7 + $0x3] sm:$0x1]  ;;  %v1562_v19 = vld [vmem:[%s6038_s9] sm:$0x1] }
 0x5d3   : > { %v1370_v25 = vpop.f32.mrf.mxu0  ;;  %4539 = vmatprep.mubr.msk.bf16.mxu1 %vm5048_vm0, %v5047_v1  ;;  %v1254_v37 = vunpack.c.l.bf16 %v4097_v59  ;;  %v1563_v20 = vunpack.c.l.bf16 %v1562_v19 }
 0x5d4   : > { %v1379_v26 = vpack.c.bf16 %v1378_v24, %v1377_v23  ;;  %v1371_v30 = vadd.f32 %v1370_v25, %v1323_v27 }
 0x5d5   : > { %v4535_v28 = vpop.f32.mrf.mxu0  ;;  %v1258_v40 = vrot.slane %v1254_v37, %v5239_v9  ;;  %v1567_v23 = vrot.slane %v1563_v20, %v5239_v9 }
 0x5d7   : > { %v1373_v29 = vpop.f32.mrf.mxu0 }
 0x5d8   : > { %v1374_v31 = vadd.f32 %v1373_v29, %v1323_v27 }
 0x5d9   : > { %v4536_v32 = vpop.f32.mrf.mxu0 }
 0x5da   : > { %v1461_v33 = vpack.c.bf16 %v1374_v31, %v1371_v30 }
 0x5dc   : > { %4544 = vmatpush3.bf16.msra.mxu0 %v1461_v33 }
 0x5dd   : > { %4555 = vmatprep.subr.bf16.mxu0 %v5047_v1 }
 0x68a   : > { %v5390_v34 = vpop.f32.mrf.mxu1 }
 0x68b   : > { %v1180_v21 = vadd.f32 %v5390_v34, %v5245_v16 }
 0x68c   : > { %v4511_v35 = vpop.f32.mrf.mxu1 }
 0x68e   : > { %v5395_v36 = vpop.f32.mrf.mxu1 }
 0x68f   : > { %v1181_v27 = vadd.f32 %v5395_v36, %v5249_v22 }
 0x690   : > { %v4512_v38 = vpop.f32.mrf.mxu1 }
 0x692   : > { %v1305_v39 = vpop.f32.mrf.mxu1 }
 0x693   : > { %v1306_v43 = vadd.f32 %v1305_v39, %v1258_v40 }
 0x694   : > { %v4527_v41 = vpop.f32.mrf.mxu1 }
 0x696   : > { %v1308_v42 = vpop.f32.mrf.mxu1 }
 0x697   : > { %v1309_v44 = vadd.f32 %v1308_v42, %v1258_v40  ;;  %v4851_v42 = vld [vmem:[%s6041_s12 + $0x8] sm:$0xff]  }
 0x698   : > { %v4528_v45 = vpop.f32.mrf.mxu1 }
 0x699   : > { %v1380_v46 = vpack.c.bf16 %v1309_v44, %v1306_v43  ;;  %v4852_v43 = vld [vmem:[%s6041_s12] sm:$0xff]  }
 0x69b   : > { %v1385_v47 = vsel %vm1001_vm3, %v1380_v46, 0 }
 0x69c   : > { %4538 = vmatpush3.bf16.xpose.msra.mxu1 %v1385_v47 }
 0x69d   : > { %4549 = vmatprep.subr.bf16.mxu1 %v5047_v1 }
 0x6a3   : > { %4540 = vmatmul.mubr.msk.bf16.vlgmr.msra.gmra.mxu1 %vm1001_vm3, %v1379_v26 }
 0x6a4   : > { %4551 = vmatprep.mubr.msk.bf16.mxu1 %vm5048_vm0, %v5047_v1  ;;  %4550 = vmatpush3.bf16.msra.mxu1 %v4850_v12 }
 0x6a5   : > { %4563 = vmatprep.subr.bf16.mxu1 %v5047_v1 }
 0x763   : > { %v1421_v48 = vpop.f32.mrf.mxu1 }
 0x764   : > { %v1428_v49 = vsel %vm1001_vm3, %v1421_v48, -inf }
 0x765   : > { %1429 = vmax.xlane.f32.xlu0 %v1428_v49  ;;  %v4541_v50 = vpop.f32.mrf.mxu1 }
 0x766   : > { %v1570_v50 = vld [vmem:[%s6039_s10] sm:$0x1] }
 0x767   : > { %v1424_v51 = vpop.f32.mrf.mxu1 }
 0x768   : > { %v1431_v52 = vsel %vm1001_vm3, %v1424_v51, -inf }
 0x769   : > { %1432 = vmax.xlane.f32.xlu1 %v1431_v52  ;;  %v4542_v53 = vpop.f32.mrf.mxu1  ;;  %v1571_v52 = vld [vmem:[%s6040_s11] sm:$0x1] }
 0x7ee   : > { %v1430_v54 = vpop.xlane.xlu0 %1429 }
 0x7ef   : > { %v1434_v55 = vsub.f32 %v1421_v48, %v1430_v54 }
 0x7f1   : > { %v1436_v56 = vmul.f32 1.442695, %v1434_v55 }
 0x7f2   : > { %v1433_v57 = vpop.xlane.xlu1 %1432 }
 0x7f3   : > { %4911 = vpow2.f32 %v1436_v56  ;;  %v1435_v58 = vsub.f32 %v1424_v51, %v1433_v57  ;;  %v1598_v51 = vunpack.c.l.bf16 %v1570_v50  ;;  %v1605_v56 = vunpack.c.l.bf16 %v1571_v52 }
 0x7f5   : > { %v1438_v60 = vmul.f32 1.442695, %v1435_v58  ;;  %v1602_v55 = vrot.slane %v1598_v51, %v5239_v9 }
 0x7f7   : > { %4913 = vpow2.f32 %v1438_v60 }
 0x800   : > { %v4912_v61 = vpop.eup %4911 }
 0x801   : > { %v1440_v62 = vsel %vm1001_vm3, %v4912_v61, 0.0 }
 0x802   : > { %1441 = vadd.xlane.f32.xlu0 %v1440_v62 }
 0x804   : > { %v4914_v63 = vpop.eup %4913 }
 0x805   : > { %v1443_v0 = vsel %vm1001_vm3, %v4914_v63, 0.0 }
 0x806   : > { %1444 = vadd.xlane.f32.xlu1 %v1443_v0 }
 0x88b   : > { %v1442_v2 = vpop.xlane.xlu0 %1441 }
 0x88c   : > { %4915 = vrcp.f32 %v1442_v2 }
 0x88f   : > { %v1445_v3 = vpop.xlane.xlu1 %1444 }
 0x890   : > { %4917 = vrcp.f32 %v1445_v3  ;;  %v4853_v3 = vld [vmem:[%s6043_s14 + $0x18] sm:$0xff]  }
 0x899   : > { %v4916_v4 = vpop.eup %4915 }
 0x89a   : > { %v1447_v5 = vmul.f32 %v4916_v4, %v4912_v61  ;;  %v1609_v61 = vrot.slane %v1605_v56, %v5239_v9  ;;  %v4854_v4 = vld [vmem:[%s6043_s14 + $0x10] sm:$0xff]  }
 0x89c   : > { %v4326_v6 = vpack.c.bf16 %v1447_v5, %v1447_v5 }
 0x89d   : > { %v4918_v7 = vpop.eup %4917 }
 0x89e   : > { %v1449_v8 = vmul.f32 %v4918_v7, %v4914_v63  ;;  %4112 = vst.msk [vmem:[%s5329_s29 + $0x8] sm:$0xf] %vm1079_vm4, %v4326_v6  ;;  %v4856_v6 = vld [vmem:[%s6043_s14] sm:$0xff]  }
 0x89f   : > { %v1617_v7 = vld [vmem:[%s6042_s13] sm:$0x1] }
 0x8a0   : > { %v1450_v10 = vpack.c.bf16 %v1449_v8, %v1447_v5  ;;  %v4327_v11 = vpack.c.bf16 %v1449_v8, %v1449_v8  ;;  %v4855_v5 = vld [vmem:[%s6043_s14 + $0x8] sm:$0xff]   ;;  %v1618_v8 = vunpack.c.l.bf16 %v1617_v7 }
 0x8a2   : > { %4113 = vst.msk [vmem:[%s5329_s29 + $0xc] sm:$0xf] %vm1079_vm4, %v4327_v11  ;;  %4546 = vmatmul.mubr.msk.bf16.vlgmr.msra.gmra.mxu0 %vm1001_vm3, %v1450_v10  ;;  %v1622_v10 = vrot.slane %v1618_v8, %v5239_v9  ;;  %v4128_v8 = vld [vmem:[%s6080_s30 + $0x1] sm:$0x1] }
 0x8a3   : > { %4559 = vmatprep.mubr.msk.bf16.mxu0 %vm5048_vm0, %v5047_v1  ;;  %4556 = vmatpush3.bf16.msra.mxu0 %v4851_v42 }
 0x8a4   : > { %4557 = vmatprep.subr.bf16.mxu0 %v5047_v1 }
 0x8a7   : > { %4558 = vmatpush3.bf16.msra.mxu0 %v4852_v43 }
 0x8a8   : > { %4575 = vmatprep.subr.bf16.mxu0 %v5047_v1 }
 0x962   : > { %v1499_v13 = vpop.f32.mrf.mxu0 }
 0x964   : > { %v4547_v14 = vpop.f32.mrf.mxu0 }
 0x966   : > { %v1502_v15 = vpop.f32.mrf.mxu0 }
 0x967   : > { %v1506_v17 = vpack.c.bf16 %v1502_v15, %v1499_v13 }
 0x968   : > { %v4548_v18 = vpop.f32.mrf.mxu0 }
 0x969   : > { %4552 = vmatmul.mubr.msk.bf16.vlgmr.msra.gmra.mxu1 %vm1001_vm3, %v1506_v17 }
 0x96a   : > { %4571 = vmatprep.mubr.msk.bf16.mxu1 %vm5048_vm0, %v5047_v1  ;;  %4564 = vmatpush3.bf16.msra.mxu1 %v4853_v3 }
 0x96b   : > { %4565 = vmatprep.subr.bf16.mxu1 %v5047_v1 }
 0x96e   : > { %4566 = vmatpush3.bf16.msra.mxu1 %v4854_v4 }
 0x96f   : > { %4567 = vmatprep.subr.bf16.mxu1 %v5047_v1 }
 0x972   : > { %4568 = vmatpush3.bf16.msra.mxu1 %v4855_v5 }
 0x973   : > { %4569 = vmatprep.subr.bf16.mxu1 %v5047_v1 }
 0x976   : > { %4570 = vmatpush3.bf16.msra.mxu1 %v4856_v6  ;;  %v4127_v6 = vld [vmem:[%s6079_s0 + $0x1] sm:$0x1] }
 0x977   : > { %4591 = vmatprep.subr.bf16.mxu1 %v5047_v1  ;;  %v1813_v7 = vunpack.c.l.bf16 %v4127_v6 }
 0xa29   : > { %v1553_v24 = vpop.f32.mrf.mxu1 }
 0xa2a   : > { %v1560_v25 = vadd.f32 %v1553_v24, %v1180_v21 }
 0xa2b   : > { %v4553_v26 = vpop.f32.mrf.mxu1 }
 0xa2c   : > { %v5429_v28 = vadd.f32 %v1567_v23, %v1560_v25 }
 0xa2d   : > { %v1556_v29 = vpop.f32.mrf.mxu1 }
 0xa2e   : > { %v1561_v30 = vadd.f32 %v1556_v29, %v1181_v27  ;;  %v1572_v31 = vsel %vm758_vm2, %v5429_v28, 0.0 }
 0xa2f   : > { %1573 = vadd.xlane.f32.xlu0 %v1572_v31  ;;  %v4554_v32 = vpop.f32.mrf.mxu1 }
 0xa30   : > { %v5433_v33 = vadd.f32 %v1567_v23, %v1561_v30 }
 0xa32   : > { %v1575_v16 = vsel %vm758_vm2, %v5433_v33, 0.0 }
 0xa33   : > { %1576 = vadd.xlane.f32.xlu1 %v1575_v16 }
 0xab8   : > { %v1574_v34 = vpop.xlane.xlu0 %1573 }
 0xab9   : > { %v1578_v35 = vmul.f32 0.03125, %v1574_v34 }
 0xabb   : > { %v1580_v59 = vsub.f32 %v5429_v28, %v1578_v35 }
 0xabc   : > { %v1577_v22 = vpop.xlane.xlu1 %1576 }
 0xabd   : > { %v1579_v36 = vmul.f32 0.03125, %v1577_v22  ;;  %v1582_v37 = vmul.f32 %v1580_v59, %v1580_v59 }
 0xabf   : > { %v1581_v38 = vsub.f32 %v5433_v33, %v1579_v36  ;;  %v1584_v39 = vsel %vm758_vm2, %v1582_v37, 0.0  ;;  %v1706_v37 = vld [vmem:[%s6044_s15] sm:$0x1] }
 0xac0   : > { %1585 = vadd.xlane.f32.xlu0 %v1584_v39 }
 0xac1   : > { %v1583_v40 = vmul.f32 %v1581_v38, %v1581_v38 }
 0xac3   : > { %v1587_v41 = vsel %vm758_vm2, %v1583_v40, 0.0 }
 0xac4   : > { %1588 = vadd.xlane.f32.xlu1 %v1587_v41 }
 0xb49   : > { %v1586_v44 = vpop.xlane.xlu0 %1585 }
 0xb4a   : > { %v1590_v45 = vmul.f32 0.03125, %v1586_v44 }
 0xb4c   : > { %v1592_v46 = vadd.f32 1e-05, %v1590_v45 }
 0xb4d   : > { %v1589_v47 = vpop.xlane.xlu1 %1588 }
 0xb4e   : > { %4919 = vrsqrt.f32 %v1592_v46  ;;  %v1591_v48 = vmul.f32 0.03125, %v1589_v47 }
 0xb50   : > { %v1593_v49 = vadd.f32 1e-05, %v1591_v48 }
 0xb52   : > { %4921 = vrsqrt.f32 %v1593_v49 }
 0xb5b   : > { %v4920_v53 = vpop.eup %4919 }
 0xb5c   : > { %v1596_v54 = vmul.f32 %v4920_v53, %v1580_v59 }
 0xb5e   : > { %v1603_v60 = vmul.f32 %v1602_v55, %v1596_v54 }
 0xb5f   : > { %v4922_v57 = vpop.eup %4921 }
 0xb60   : > { %v1597_v58 = vmul.f32 %v4922_v57, %v1581_v38  ;;  %v1610_v63 = vadd.f32 %v1609_v61, %v1603_v60  ;;  %v1707_v38 = vunpack.c.l.bf16 %v1706_v37  ;;  %v4858_v60 = vld [vmem:[%s6078_s6 + $0xa8] sm:$0xff]  }
 0xb62   : > { %v1604_v62 = vmul.f32 %v1602_v55, %v1597_v58  ;;  %v1711_v39 = vrot.slane %v1707_v38, %v5239_v9  ;;  %v4857_v58 = vld [vmem:[%s6078_s6 + $0x68] sm:$0xff]   ;;  %v4133_v38 = vld [vmem:[%s6036_s7 + $0x6] sm:$0x1] }
 0xb64   : > { %v1611_v0 = vadd.f32 %v1609_v61, %v1604_v62  ;;  %v4859_v61 = vld [vmem:[%s6078_s6 + $0x60] sm:$0xff]  }
 0xb65   : > { %v4860_v62 = vld [vmem:[%s6078_s6 + $0xa0] sm:$0xff]  }
 0xb66   : > { %v1612_v2 = vpack.c.bf16 %v1611_v0, %v1610_v63 }
 0xb68   : > { %4560 = vmatmul.mubr.msk.bf16.vlgmr.msra.gmra.mxu0 %vm758_vm2, %v1612_v2 }
 0xb69   : > { %4579 = vmatprep.mubr.msk.bf16.mxu0 %vm5048_vm0, %v5047_v1  ;;  %4576 = vmatpush3.bf16.msra.mxu0 %v4857_v58 }
 0xb6a   : > { %4577 = vmatprep.subr.bf16.mxu0 %v5047_v1 }
 0xb6d   : > { %4578 = vmatpush3.bf16.msra.mxu0 %v4859_v61 }
 0xb6e   : > { %4583 = vmatprep.subr.bf16.mxu0 %v5047_v1 }
 0xc28   : > { %v1672_v11 = vpop.f32.mrf.mxu0 }
 0xc29   : > { %v1673_v12 = vadd.f32 %v1672_v11, %v1622_v10  ;;  %v1817_v11 = vrot.slane %v1813_v7, %v5239_v9 }
 0xc2a   : > { %v4561_v13 = vpop.f32.mrf.mxu0 }
 0xc2b   : > { %v1679_v14 = vmul.f32 %v1673_v12, %v1673_v12  ;;  %v1820_v13 = vunpack.c.l.bf16 %v4128_v8 }
 0xc2c   : > { %v1675_v15 = vpop.f32.mrf.mxu0 }
 0xc2d   : > { %v1681_v17 = vmul.f32 %v1679_v14, %v1673_v12  ;;  %v1676_v18 = vadd.f32 %v1675_v15, %v1622_v10 }
 0xc2e   : > { %v4562_v19 = vpop.f32.mrf.mxu0 }
 0xc2f   : > { %v1683_v20 = vmul.f32 0.044715, %v1681_v17  ;;  %v1680_v21 = vmul.f32 %v1676_v18, %v1676_v18 }
 0xc31   : > { %v1685_v23 = vadd.f32 %v1683_v20, %v1673_v12  ;;  %v1682_v24 = vmul.f32 %v1680_v21, %v1676_v18 }
 0xc33   : > { %v1687_v25 = vmul.f32 0.7978846, %v1685_v23  ;;  %v1684_v26 = vmul.f32 0.044715, %v1682_v24  ;;  %v4861_v23 = vld [vmem:[%s6078_s6 + $0x88] sm:$0xff]  }
 0xc35   : > { %4923 = vtanh.f32 %v1687_v25  ;;  %v1686_v27 = vadd.f32 %v1684_v26, %v1676_v18  ;;  %v4862_v25 = vld [vmem:[%s6078_s6 + $0x80] sm:$0xff]   ;;  %v4149_v26 = vld [vmem:[%s6036_s7 + $0xa] sm:$0x1] }
 0xc37   : > { %v1688_v29 = vmul.f32 0.7978846, %v1686_v27  ;;  %v1968_v27 = vunpack.c.l.bf16 %v4149_v26  ;;  %v4864_v26 = vld [vmem:[%s6078_s6 + $0x70] sm:$0xff]  }
 0xc39   : > { %4925 = vtanh.f32 %v1688_v29 }
 0xc42   : > { %v4924_v30 = vpop.eup %4923 }
 0xc43   : > { %v1691_v31 = vadd.f32 1.0, %v4924_v30 }
 0xc45   : > { %v1693_v16 = vmul.f32 0.5, %v1691_v31  ;;  %v1972_v31 = vrot.slane %v1968_v27, %v5239_v9  ;;  %v4865_v27 = vld [vmem:[%s6078_s6 + $0xb8] sm:$0xff]  }
 0xc46   : > { %v4926_v32 = vpop.eup %4925 }
 0xc47   : > { %v1692_v34 = vadd.f32 1.0, %v4926_v32  ;;  %v1695_v59 = vmul.f32 %v1693_v16, %v1673_v12 }
 0xc49   : > { %v1694_v35 = vmul.f32 0.5, %v1692_v34  ;;  %v4141_v34 = vld [vmem:[%s6036_s7 + $0x8] sm:$0x1] }
 0xc4a   : > { %v1903_v37 = vunpack.c.l.bf16 %v4141_v34 }
 0xc4b   : > { %v1696_v22 = vmul.f32 %v1694_v35, %v1676_v18  ;;  %v1824_v18 = vrot.slane %v1820_v13, %v5239_v9 }
 0xc4d   : > { %v1697_v36 = vpack.c.bf16 %v1696_v22, %v1695_v59 }
 0xc4f   : > { %4572 = vmatmul.mubr.msk.bf16.vlgmr.msra.gmra.mxu1 %vm1736_vm5, %v1697_v36 }
 0xc50   : > { %4595 = vmatprep.mubr.msk.bf16.mxu1 %vm5048_vm0, %v5047_v1  ;;  %4592 = vmatpush3.bf16.msra.mxu1 %v4858_v60 }
 0xc51   : > { %4593 = vmatprep.subr.bf16.mxu1 %v5047_v1 }
 0xc54   : > { %4594 = vmatpush3.bf16.msra.mxu1 %v4860_v62 }
 0xc55   : > { %4605 = vmatprep.subr.bf16.mxu1 %v5047_v1 }
 0xd0f   : > { %v1774_v40 = vpop.f32.mrf.mxu1 }
 0xd10   : > { %v1775_v41 = vadd.f32 %v1774_v40, %v1711_v39 }
 0xd11   : > { %v4573_v42 = vpop.f32.mrf.mxu1 }
 0xd12   : > { %v5488_v43 = vadd.f32 %v1775_v41, %v5429_v28 }
 0xd13   : > { %v1777_v44 = vpop.f32.mrf.mxu1 }
 0xd14   : > { %v1778_v45 = vadd.f32 %v1777_v44, %v1711_v39  ;;  %v1787_v46 = vsel %vm758_vm2, %v5488_v43, 0.0  ;;  %v1835_v44 = vunpack.c.l.bf16 %v4133_v38 }
 0xd15   : > { %1788 = vadd.xlane.f32.xlu0 %v1787_v46  ;;  %v4574_v47 = vpop.f32.mrf.mxu1 }
 0xd16   : > { %v5493_v48 = vadd.f32 %v1778_v45, %v5433_v33  ;;  %v1907_v45 = vrot.slane %v1903_v37, %v5239_v9 }
 0xd18   : > { %v1790_v49 = vsel %vm758_vm2, %v5493_v48, 0.0 }
 0xd19   : > { %1791 = vadd.xlane.f32.xlu1 %v1790_v49  ;;  %v1839_v49 = vrot.slane %v1835_v44, %v5239_v9 }
 0xd9e   : > { %v1789_v50 = vpop.xlane.xlu0 %1788 }
 0xd9f   : > { %v1793_v51 = vmul.f32 0.03125, %v1789_v50 }
 0xda1   : > { %v1795_v52 = vsub.f32 %v5488_v43, %v1793_v51 }
 0xda2   : > { %v1792_v28 = vpop.xlane.xlu1 %1791 }
 0xda3   : > { %v1794_v53 = vmul.f32 0.03125, %v1792_v28  ;;  %v1797_v54 = vmul.f32 %v1795_v52, %v1795_v52 }
 0xda5   : > { %v1796_v55 = vsub.f32 %v5493_v48, %v1794_v53  ;;  %v1799_v56 = vsel %vm758_vm2, %v1797_v54, 0.0 }
 0xda6   : > { %1800 = vadd.xlane.f32.xlu0 %v1799_v56 }
 0xda7   : > { %v1798_v57 = vmul.f32 %v1796_v55, %v1796_v55 }
 0xda9   : > { %v1802_v33 = vsel %vm758_vm2, %v1798_v57, 0.0 }
 0xdaa   : > { %1803 = vadd.xlane.f32.xlu1 %v1802_v33 }
 0xe2f   : > { %v1801_v63 = vpop.xlane.xlu0 %1800 }
 0xe30   : > { %v1805_v0 = vmul.f32 0.03125, %v1801_v63 }
 0xe32   : > { %v1807_v2 = vadd.f32 1e-05, %v1805_v0 }
 0xe33   : > { %v1804_v3 = vpop.xlane.xlu1 %1803 }
 0xe34   : > { %4927 = vrsqrt.f32 %v1807_v2  ;;  %v1806_v4 = vmul.f32 0.03125, %v1804_v3 }
 0xe36   : > { %v1808_v5 = vadd.f32 1e-05, %v1806_v4 }
 0xe38   : > { %4929 = vrsqrt.f32 %v1808_v5 }
 0xe41   : > { %v4928_v10 = vpop.eup %4927 }
 0xe42   : > { %v1811_v12 = vmul.f32 %v4928_v10, %v1795_v52 }
 0xe44   : > { %v1818_v15 = vmul.f32 %v1817_v11, %v1811_v12 }
 0xe45   : > { %v4930_v14 = vpop.eup %4929 }
 0xe46   : > { %v1812_v17 = vmul.f32 %v4930_v14, %v1796_v55  ;;  %v1825_v20 = vadd.f32 %v1824_v18, %v1818_v15 }
 0xe48   : > { %v1819_v19 = vmul.f32 %v1817_v11, %v1812_v17 }
 0xe4a   : > { %v1826_v21 = vadd.f32 %v1824_v18, %v1819_v19 }
 0xe4c   : > { %v5528_v24 = vpack.c.bf16 %v1826_v21, %v1825_v20  ;;  %v4863_v21 = vld [vmem:[%s6078_s6 + $0x78] sm:$0xff]  }
 0xe4e   : > { %4580 = vmatmul.mubr.msk.bf16.vlgmr.msra.gmra.mxu0 %vm758_vm2, %v5528_v24  ;;  %4596 = vmatmul.mubr.msk.bf16.vlgmr.msra.gmra.mxu1 %vm758_vm2, %v5528_v24 }
 0xe4f   : > { %4584 = vmatpush3.bf16.msra.mxu0 %v4861_v23  ;;  %4587 = vmatprep.mubr.msk.bf16.mxu0 %vm5048_vm0, %v5047_v1 }
 0xe50   : > { %4585 = vmatprep.subr.bf16.mxu0 %v5047_v1  ;;  %4607 = vmatprep.mubr.msk.bf16.mxu1 %vm5048_vm0, %v5047_v1 }
 0xe53   : > { %4586 = vmatpush3.bf16.msra.mxu0 %v4862_v25 }
 0xe54   : > { %4599 = vmatprep.subr.bf16.mxu0 %v5047_v1 }
 0xe56   : > { %4588 = vmatmul.mubr.msk.bf16.vlgmr.msra.gmra.mxu0 %vm758_vm2, %v5528_v24 }
 0xe57   : > { %4601 = vmatprep.mubr.msk.bf16.mxu0 %vm5048_vm0, %v5047_v1 }
 0xf0e   : > { %v1889_v29 = vpop.f32.mrf.mxu0  ;;  %v2019_v30 = vpop.f32.mrf.mxu1 }
 0xf0f   : > { %v2020_v22 = vadd.f32 %v2019_v30, %v1972_v31  ;;  %v1890_v54 = vadd.f32 %v1889_v29, %v1839_v49  ;;  %v4866_v29 = vld [vmem:[%s6078_s6 + $0xb0] sm:$0xff]  }
 0xf10   : > { %v4581_v32 = vpop.f32.mrf.mxu0  ;;  %v4597_v16 = vpop.f32.mrf.mxu1  ;;  %v4867_v30 = vld [vmem:[%s6037_s8 + $0x10] sm:$0xff]  }
 0xf11   : > { %v2026_v57 = vmul.f32 0.25, %v1890_v54  ;;  %v4167_v32 = vld [vmem:[%s6036_s7 + $0x7] sm:$0x1] }
 0xf12   : > { %v1892_v35 = vpop.f32.mrf.mxu0  ;;  %v2022_v59 = vpop.f32.mrf.mxu1  ;;  %v2218_v34 = vunpack.c.l.bf16 %v4167_v32 }
 0xf13   : > { %v2023_v36 = vadd.f32 %v2022_v59, %v1972_v31  ;;  %v1893_v28 = vadd.f32 %v1892_v35, %v1839_v49  ;;  %v4868_v59 = vld [vmem:[%s6078_s6 + $0x98] sm:$0xff]  }
 0xf14   : > { %v4582_v39 = vpop.f32.mrf.mxu0  ;;  %v4598_v40 = vpop.f32.mrf.mxu1  ;;  %v2222_v37 = vrot.slane %v2218_v34, %v5239_v9 }
 0xf15   : > { %v2110_v41 = vpack.c.bf16 %v2023_v36, %v2020_v22  ;;  %v2027_v56 = vmul.f32 0.25, %v1893_v28  ;;  %v4869_v39 = vld [vmem:[%s6078_s6 + $0x90] sm:$0xff]  }
 0xf16   : > { %v1954_v42 = vpop.f32.mrf.mxu0 }
 0xf17   : > { %4606 = vmatpush3.bf16.msra.mxu1 %v2110_v41  ;;  %v1955_v50 = vadd.f32 %v1954_v42, %v1907_v45  ;;  %v2028_v33 = vpack.c.bf16 %v2027_v56, %v2026_v57  ;;  %v4183_v41 = vld [vmem:[%s6036_s7 + $0xb] sm:$0x1] }
 0xf18   : > { %v4589_v46 = vpop.f32.mrf.mxu0  ;;  %4617 = vmatprep.subr.bf16.mxu1 %v5047_v1 }
 0xf19   : > { %v2348_v46 = vunpack.c.l.bf16 %v4183_v41 }
 0xf1a   : > { %v1957_v47 = vpop.f32.mrf.mxu0 }
 0xf1b   : > { %v1958_v51 = vadd.f32 %v1957_v47, %v1907_v45  ;;  %v2352_v28 = vrot.slane %v2348_v46, %v5239_v9 }
 0xf1c   : > { %v4590_v52 = vpop.f32.mrf.mxu0 }
 0xf1d   : > { %v2029_v53 = vpack.c.bf16 %v1958_v51, %v1955_v50 }
 0xf1f   : > { %v2034_v55 = vsel %vm1001_vm3, %v2029_v53, 0 }
 0xf20   : > { %4600 = vmatpush3.bf16.xpose.msra.mxu0 %v2034_v55 }
 0xf21   : > { %4611 = vmatprep.subr.bf16.mxu0 %v5047_v1 }
 0xf27   : > { %4602 = vmatmul.mubr.msk.bf16.vlgmr.msra.gmra.mxu0 %vm1001_vm3, %v2028_v33 }
 0xf28   : > { %4613 = vmatprep.mubr.msk.bf16.mxu0 %vm5048_vm0, %v5047_v1  ;;  %4612 = vmatpush3.bf16.msra.mxu0 %v4867_v30 }
 0xf29   : > { %4625 = vmatprep.subr.bf16.mxu0 %v5047_v1 }
 0xfe7   : > { %v2070_v58 = vpop.f32.mrf.mxu0 }
 0xfe8   : > { %v2077_v60 = vsel %vm1001_vm3, %v2070_v58, -inf }
 0xfe9   : > { %2078 = vmax.xlane.f32.xlu0 %v2077_v60  ;;  %v4603_v61 = vpop.f32.mrf.mxu0 }
 0xfeb   : > { %v2073_v62 = vpop.f32.mrf.mxu0 }
 0xfec   : > { %v2080_v63 = vsel %vm1001_vm3, %v2073_v62, -inf }
 0xfed   : > { %2081 = vmax.xlane.f32.xlu1 %v2080_v63  ;;  %v4604_v0 = vpop.f32.mrf.mxu0 }
0x1072   : > { %v2079_v2 = vpop.xlane.xlu0 %2078 }
0x1073   : > { %v2083_v3 = vsub.f32 %v2070_v58, %v2079_v2 }
0x1075   : > { %v2085_v4 = vmul.f32 1.442695, %v2083_v3 }
0x1076   : > { %v2082_v5 = vpop.xlane.xlu1 %2081 }
0x1077   : > { %4931 = vpow2.f32 %v2085_v4  ;;  %v2084_v6 = vsub.f32 %v2073_v62, %v2082_v5 }
0x1079   : > { %v2087_v7 = vmul.f32 1.442695, %v2084_v6 }
0x107b   : > { %4933 = vpow2.f32 %v2087_v7 }
0x1084   : > { %v4932_v8 = vpop.eup %4931 }
0x1085   : > { %v2089_v10 = vsel %vm1001_vm3, %v4932_v8, 0.0 }
0x1086   : > { %2090 = vadd.xlane.f32.xlu0 %v2089_v10 }
0x1088   : > { %v4934_v11 = vpop.eup %4933 }
0x1089   : > { %v2092_v12 = vsel %vm1001_vm3, %v4934_v11, 0.0 }
0x108a   : > { %2093 = vadd.xlane.f32.xlu1 %v2092_v12 }
0x110f   : > { %v2091_v13 = vpop.xlane.xlu0 %2090 }
0x1110   : > { %4935 = vrcp.f32 %v2091_v13 }
0x1113   : > { %v2094_v14 = vpop.xlane.xlu1 %2093 }
0x1114   : > { %4937 = vrcp.f32 %v2094_v14 }
0x111d   : > { %v4936_v15 = vpop.eup %4935 }
0x111e   : > { %v2096_v17 = vmul.f32 %v4936_v15, %v4932_v8 }
0x1120   : > { %v4328_v18 = vpack.c.bf16 %v2096_v17, %v2096_v17 }
0x1121   : > { %v4938_v19 = vpop.eup %4937 }
0x1122   : > { %v2098_v20 = vmul.f32 %v4938_v19, %v4934_v11  ;;  %4156 = vst.msk [vmem:[%s5329_s29 + $0x10] sm:$0xf] %vm1079_vm4, %v4328_v18 }
0x1124   : > { %v2099_v23 = vpack.c.bf16 %v2098_v20, %v2096_v17  ;;  %v4329_v25 = vpack.c.bf16 %v2098_v20, %v2098_v20 }
0x1126   : > { %4157 = vst.msk [vmem:[%s5329_s29 + $0x14] sm:$0xf] %vm1079_vm4, %v4329_v25  ;;  %4608 = vmatmul.mubr.msk.bf16.vlgmr.msra.gmra.mxu1 %vm1001_vm3, %v2099_v23 }
0x1127   : > { %4618 = vmatpush3.bf16.msra.mxu1 %v4863_v21  ;;  %4621 = vmatprep.mubr.msk.bf16.mxu1 %vm5048_vm0, %v5047_v1 }
0x1128   : > { %4619 = vmatprep.subr.bf16.mxu1 %v5047_v1 }
0x112b   : > { %4620 = vmatpush3.bf16.msra.mxu1 %v4864_v26 }
0x112c   : > { %4633 = vmatprep.subr.bf16.mxu1 %v5047_v1 }
0x112e   : > { %4622 = vmatmul.mubr.msk.bf16.vlgmr.msra.gmra.mxu1 %vm758_vm2, %v5528_v24 }
0x112f   : > { %4634 = vmatpush3.bf16.msra.mxu1 %v4865_v27  ;;  %4637 = vmatprep.mubr.msk.bf16.mxu1 %vm5048_vm0, %v5047_v1 }
0x1130   : > { %4635 = vmatprep.subr.bf16.mxu1 %v5047_v1 }
0x1133   : > { %4636 = vmatpush3.bf16.msra.mxu1 %v4866_v29 }
0x1134   : > { %4647 = vmatprep.subr.bf16.mxu1 %v5047_v1 }
0x1136   : > { %4638 = vmatmul.mubr.msk.bf16.vlgmr.msra.gmra.mxu1 %vm758_vm2, %v5528_v24 }
0x1137   : > { %4649 = vmatprep.mubr.msk.bf16.mxu1 %vm5048_vm0, %v5047_v1 }
0x11e6   : > { %v2148_v31 = vpop.f32.mrf.mxu1 }
0x11e8   : > { %v4609_v16 = vpop.f32.mrf.mxu1 }
0x11ea   : > { %v2151_v35 = vpop.f32.mrf.mxu1 }
0x11eb   : > { %v2155_v22 = vpack.c.bf16 %v2151_v35, %v2148_v31 }
0x11ec   : > { %v4610_v36 = vpop.f32.mrf.mxu1 }
0x11ed   : > { %4614 = vmatmul.mubr.msk.bf16.vlgmr.msra.gmra.mxu0 %vm1001_vm3, %v2155_v22 }
0x11ee   : > { %v2269_v38 = vpop.f32.mrf.mxu1  ;;  %4626 = vmatpush3.bf16.msra.mxu0 %v4868_v59  ;;  %4629 = vmatprep.mubr.msk.bf16.mxu0 %vm5048_vm0, %v5047_v1 }
0x11ef   : > { %4627 = vmatprep.subr.bf16.mxu0 %v5047_v1  ;;  %v2270_v42 = vadd.f32 %v2269_v38, %v2222_v37  ;;  %v4870_v38 = vld [vmem:[%s6037_s8 + $0x18] sm:$0xff]  }
0x11f0   : > { %v4623_v40 = vpop.f32.mrf.mxu1 }
0x11f1   : > { %v2406_v49 = vmul.f32 0.25, %v2270_v42 }
0x11f2   : > { %v2272_v44 = vpop.f32.mrf.mxu1  ;;  %4628 = vmatpush3.bf16.msra.mxu0 %v4869_v39 }
0x11f3   : > { %v2273_v45 = vadd.f32 %v2272_v44, %v2222_v37  ;;  %4641 = vmatprep.subr.bf16.mxu0 %v5047_v1 }
0x11f4   : > { %v4624_v47 = vpop.f32.mrf.mxu1 }
0x11f5   : > { %v2407_v50 = vmul.f32 0.25, %v2273_v45  ;;  %4630 = vmatmul.mubr.msk.bf16.vlgmr.msra.gmra.mxu0 %vm758_vm2, %v5528_v24  ;;  %v4175_v24 = vld [vmem:[%s6036_s7 + $0x9] sm:$0x1]  ;;  %v4197_v45 = vld [vmem:[%s6038_s9 + $0x1] sm:$0x1] }
0x11f6   : > { %v2399_v51 = vpop.f32.mrf.mxu1  ;;  %4643 = vmatprep.mubr.msk.bf16.mxu0 %vm5048_vm0, %v5047_v1  ;;  %v2283_v62 = vunpack.c.l.bf16 %v4175_v24  ;;  %v2593_v46 = vunpack.c.l.bf16 %v4197_v45 }
0x11f7   : > { %v2408_v52 = vpack.c.bf16 %v2407_v50, %v2406_v49  ;;  %v2400_v55 = vadd.f32 %v2399_v51, %v2352_v28 }
0x11f8   : > { %v4639_v53 = vpop.f32.mrf.mxu1  ;;  %v2287_v2 = vrot.slane %v2283_v62, %v5239_v9  ;;  %v2597_v49 = vrot.slane %v2593_v46, %v5239_v9 }
0x11fa   : > { %v2402_v54 = vpop.f32.mrf.mxu1 }
0x11fb   : > { %v2403_v56 = vadd.f32 %v2402_v54, %v2352_v28 }
0x11fc   : > { %v4640_v57 = vpop.f32.mrf.mxu1 }
0x11fd   : > { %v2490_v33 = vpack.c.bf16 %v2403_v56, %v2400_v55 }
0x11ff   : > { %4648 = vmatpush3.bf16.msra.mxu1 %v2490_v33 }
0x1200   : > { %4659 = vmatprep.subr.bf16.mxu1 %v5047_v1 }
0x12ad   : > { %v5628_v58 = vpop.f32.mrf.mxu0 }
0x12ae   : > { %v2209_v47 = vadd.f32 %v5628_v58, %v5488_v43 }
0x12af   : > { %v4615_v60 = vpop.f32.mrf.mxu0 }
0x12b1   : > { %v5633_v61 = vpop.f32.mrf.mxu0 }
0x12b2   : > { %v2210_v28 = vadd.f32 %v5633_v61, %v5493_v48 }
0x12b3   : > { %v4616_v63 = vpop.f32.mrf.mxu0 }
0x12b5   : > { %v2334_v0 = vpop.f32.mrf.mxu0 }
0x12b6   : > { %v2335_v5 = vadd.f32 %v2334_v0, %v2287_v2 }
0x12b7   : > { %v4631_v3 = vpop.f32.mrf.mxu0 }
0x12b9   : > { %v2337_v4 = vpop.f32.mrf.mxu0 }
0x12ba   : > { %v2338_v6 = vadd.f32 %v2337_v4, %v2287_v2  ;;  %v4871_v4 = vld [vmem:[%s6041_s12 + $0x18] sm:$0xff]  }
0x12bb   : > { %v4632_v7 = vpop.f32.mrf.mxu0 }
0x12bc   : > { %v2409_v8 = vpack.c.bf16 %v2338_v6, %v2335_v5  ;;  %v4872_v5 = vld [vmem:[%s6041_s12 + $0x10] sm:$0xff]  }
0x12be   : > { %v2414_v10 = vsel %vm1001_vm3, %v2409_v8, 0 }
0x12bf   : > { %4642 = vmatpush3.bf16.xpose.msra.mxu0 %v2414_v10 }
0x12c0   : > { %4653 = vmatprep.subr.bf16.mxu0 %v5047_v1 }
0x12c6   : > { %4644 = vmatmul.mubr.msk.bf16.vlgmr.msra.gmra.mxu0 %vm1001_vm3, %v2408_v52 }
0x12c7   : > { %4655 = vmatprep.mubr.msk.bf16.mxu0 %vm5048_vm0, %v5047_v1  ;;  %4654 = vmatpush3.bf16.msra.mxu0 %v4870_v38 }
0x12c8   : > { %4667 = vmatprep.subr.bf16.mxu0 %v5047_v1 }
0x1386   : > { %v2450_v11 = vpop.f32.mrf.mxu0 }
0x1387   : > { %v2457_v12 = vsel %vm1001_vm3, %v2450_v11, -inf }
0x1388   : > { %2458 = vmax.xlane.f32.xlu0 %v2457_v12  ;;  %v4645_v13 = vpop.f32.mrf.mxu0 }
0x1389   : > { %v4198_v13 = vld [vmem:[%s6039_s10 + $0x1] sm:$0x1] }
0x138a   : > { %v2453_v14 = vpop.f32.mrf.mxu0 }
0x138b   : > { %v2460_v15 = vsel %vm1001_vm3, %v2453_v14, -inf }
0x138c   : > { %2461 = vmax.xlane.f32.xlu1 %v2460_v15  ;;  %v4646_v17 = vpop.f32.mrf.mxu0  ;;  %v4199_v15 = vld [vmem:[%s6040_s11 + $0x1] sm:$0x1] }
0x1411   : > { %v2459_v18 = vpop.xlane.xlu0 %2458 }
0x1412   : > { %v2463_v19 = vsub.f32 %v2450_v11, %v2459_v18 }
0x1414   : > { %v2465_v20 = vmul.f32 1.442695, %v2463_v19 }
0x1415   : > { %v2462_v21 = vpop.xlane.xlu1 %2461 }
0x1416   : > { %4939 = vpow2.f32 %v2465_v20  ;;  %v2464_v23 = vsub.f32 %v2453_v14, %v2462_v21  ;;  %v2630_v14 = vunpack.c.l.bf16 %v4198_v13  ;;  %v2637_v20 = vunpack.c.l.bf16 %v4199_v15 }
0x1418   : > { %v2467_v25 = vmul.f32 1.442695, %v2464_v23  ;;  %v2634_v19 = vrot.slane %v2630_v14, %v5239_v9 }
0x141a   : > { %4941 = vpow2.f32 %v2467_v25 }
0x1423   : > { %v4940_v26 = vpop.eup %4939 }
0x1424   : > { %v2469_v27 = vsel %vm1001_vm3, %v4940_v26, 0.0 }
0x1425   : > { %2470 = vadd.xlane.f32.xlu0 %v2469_v27 }
0x1427   : > { %v4942_v29 = vpop.eup %4941 }
0x1428   : > { %v2472_v30 = vsel %vm1001_vm3, %v4942_v29, 0.0 }
0x1429   : > { %2473 = vadd.xlane.f32.xlu1 %v2472_v30 }
0x14ae   : > { %v2471_v31 = vpop.xlane.xlu0 %2470 }
0x14af   : > { %4943 = vrcp.f32 %v2471_v31 }
0x14b2   : > { %v2474_v32 = vpop.xlane.xlu1 %2473 }
0x14b3   : > { %4945 = vrcp.f32 %v2474_v32  ;;  %v4873_v32 = vld [vmem:[%s6043_s14 + $0x38] sm:$0xff]  }
0x14bc   : > { %v4944_v16 = vpop.eup %4943 }
0x14bd   : > { %v2476_v34 = vmul.f32 %v4944_v16, %v4940_v26  ;;  %v2641_v26 = vrot.slane %v2637_v20, %v5239_v9  ;;  %v4874_v16 = vld [vmem:[%s6043_s14 + $0x30] sm:$0xff]  }
0x14bf   : > { %v4330_v35 = vpack.c.bf16 %v2476_v34, %v2476_v34 }
0x14c0   : > { %v4946_v59 = vpop.eup %4945 }
0x14c1   : > { %v2478_v22 = vmul.f32 %v4946_v59, %v4942_v29  ;;  %4190 = vst.msk [vmem:[%s5329_s29 + $0x18] sm:$0xf] %vm1079_vm4, %v4330_v35  ;;  %v4876_v35 = vld [vmem:[%s6043_s14 + $0x20] sm:$0xff]  }
0x14c2   : > { %v4204_v59 = vld [vmem:[%s6042_s13 + $0x1] sm:$0x1] }
0x14c3   : > { %v2479_v36 = vpack.c.bf16 %v2478_v22, %v2476_v34  ;;  %v4331_v37 = vpack.c.bf16 %v2478_v22, %v2478_v22  ;;  %v4875_v34 = vld [vmem:[%s6043_s14 + $0x28] sm:$0xff]   ;;  %v2652_v22 = vunpack.c.l.bf16 %v4204_v59 }
0x14c5   : > { %4191 = vst.msk [vmem:[%s5329_s29 + $0x1c] sm:$0xf] %vm1079_vm4, %v4331_v37  ;;  %4650 = vmatmul.mubr.msk.bf16.vlgmr.msra.gmra.mxu1 %vm1001_vm3, %v2479_v36  ;;  %v2656_v36 = vrot.slane %v2652_v22, %v5239_v9  ;;  %v4223_v22 = vld [vmem:[%s6080_s30 + $0x2] sm:$0x1] }
0x14c6   : > { %4663 = vmatprep.mubr.msk.bf16.mxu1 %vm5048_vm0, %v5047_v1  ;;  %4660 = vmatpush3.bf16.msra.mxu1 %v4871_v4 }
0x14c7   : > { %4661 = vmatprep.subr.bf16.mxu1 %v5047_v1 }
0x14ca   : > { %4662 = vmatpush3.bf16.msra.mxu1 %v4872_v5 }
0x14cb   : > { %4679 = vmatprep.subr.bf16.mxu1 %v5047_v1 }
0x1585   : > { %v2528_v39 = vpop.f32.mrf.mxu1 }
0x1587   : > { %v4651_v40 = vpop.f32.mrf.mxu1 }
0x1589   : > { %v2531_v41 = vpop.f32.mrf.mxu1 }
0x158a   : > { %v2535_v42 = vpack.c.bf16 %v2531_v41, %v2528_v39 }
0x158b   : > { %v4652_v44 = vpop.f32.mrf.mxu1 }
0x158c   : > { %4656 = vmatmul.mubr.msk.bf16.vlgmr.msra.gmra.mxu0 %vm1001_vm3, %v2535_v42 }
0x158d   : > { %4675 = vmatprep.mubr.msk.bf16.mxu0 %vm5048_vm0, %v5047_v1  ;;  %4668 = vmatpush3.bf16.msra.mxu0 %v4873_v32 }
0x158e   : > { %4669 = vmatprep.subr.bf16.mxu0 %v5047_v1 }
0x1591   : > { %4670 = vmatpush3.bf16.msra.mxu0 %v4874_v16 }
0x1592   : > { %4671 = vmatprep.subr.bf16.mxu0 %v5047_v1 }
0x1595   : > { %4672 = vmatpush3.bf16.msra.mxu0 %v4875_v34 }
0x1596   : > { %4673 = vmatprep.subr.bf16.mxu0 %v5047_v1 }
0x1599   : > { %4674 = vmatpush3.bf16.msra.mxu0 %v4876_v35  ;;  %v4222_v35 = vld [vmem:[%s6079_s0 + $0x2] sm:$0x1]  ;;  %s4989_s0 = sshll.u32 %s5049_s22, 4  ;;  %s4990_s0 = int_to_ptr.vmem [resolvable:$false] %s4989_s0 }
0x159a   : > { %4695 = vmatprep.subr.bf16.mxu0 %v5047_v1  ;;  %v2848_v59 = vunpack.c.l.bf16 %v4222_v35  ;;  %p4992_p0 = scmp.lt.s32.totalorder %s5990_s1, %s4990_s0 }
0x164c   : > { %v2582_v50 = vpop.f32.mrf.mxu0 }
0x164d   : > { %v2589_v51 = vadd.f32 %v2582_v50, %v2209_v47 }
0x164e   : > { %v4657_v52 = vpop.f32.mrf.mxu0 }
0x164f   : > { %v5667_v53 = vadd.f32 %v2597_v49, %v2589_v51 }
0x1650   : > { %v2585_v54 = vpop.f32.mrf.mxu0 }
0x1651   : > { %v2590_v55 = vadd.f32 %v2585_v54, %v2210_v28  ;;  %v2604_v56 = vsel %vm758_vm2, %v5667_v53, 0.0 }
0x1652   : > { %2605 = vadd.xlane.f32.xlu0 %v2604_v56  ;;  %v4658_v57 = vpop.f32.mrf.mxu0 }
0x1653   : > { %v5671_v33 = vadd.f32 %v2597_v49, %v2590_v55 }
0x1655   : > { %v2607_v43 = vsel %vm758_vm2, %v5671_v33, 0.0 }
0x1656   : > { %2608 = vadd.xlane.f32.xlu1 %v2607_v43 }
0x16db   : > { %v2606_v58 = vpop.xlane.xlu0 %2605 }
0x16dc   : > { %v2610_v60 = vmul.f32 0.03125, %v2606_v58 }
0x16de   : > { %v2612_v24 = vsub.f32 %v5667_v53, %v2610_v60 }
0x16df   : > { %v2609_v48 = vpop.xlane.xlu1 %2608 }
0x16e0   : > { %v2611_v61 = vmul.f32 0.03125, %v2609_v48  ;;  %v2614_v62 = vmul.f32 %v2612_v24, %v2612_v24 }
0x16e2   : > { %v2613_v63 = vsub.f32 %v5671_v33, %v2611_v61  ;;  %v2616_v0 = vsel %vm758_vm2, %v2614_v62, 0.0  ;;  %v4216_v62 = vld [vmem:[%s6044_s15 + $0x1] sm:$0x1] }
0x16e3   : > { %2617 = vadd.xlane.f32.xlu0 %v2616_v0 }
0x16e4   : > { %v2615_v2 = vmul.f32 %v2613_v63, %v2613_v63 }
0x16e6   : > { %v2619_v3 = vsel %vm758_vm2, %v2615_v2, 0.0 }
0x16e7   : > { %2620 = vadd.xlane.f32.xlu1 %v2619_v3 }
0x176c   : > { %v2618_v6 = vpop.xlane.xlu0 %2617 }
0x176d   : > { %v2622_v7 = vmul.f32 0.03125, %v2618_v6 }
0x176f   : > { %v2624_v8 = vadd.f32 1e-05, %v2622_v7 }
0x1770   : > { %v2621_v10 = vpop.xlane.xlu1 %2620 }
0x1771   : > { %4947 = vrsqrt.f32 %v2624_v8  ;;  %v2623_v11 = vmul.f32 0.03125, %v2621_v10 }
0x1773   : > { %v2625_v12 = vadd.f32 1e-05, %v2623_v11 }
0x1775   : > { %4949 = vrsqrt.f32 %v2625_v12 }
0x177e   : > { %v4948_v17 = vpop.eup %4947 }
0x177f   : > { %v2628_v18 = vmul.f32 %v4948_v17, %v2612_v24 }
0x1781   : > { %v2635_v25 = vmul.f32 %v2634_v19, %v2628_v18 }
0x1782   : > { %v4950_v21 = vpop.eup %4949 }
0x1783   : > { %v2629_v23 = vmul.f32 %v4950_v21, %v2613_v63  ;;  %v2642_v29 = vadd.f32 %v2641_v26, %v2635_v25  ;;  %v2743_v63 = vunpack.c.l.bf16 %v4216_v62  ;;  %v4878_v25 = vld [vmem:[%s6078_s6 + $0x108] sm:$0xff]  }
0x1785   : > { %v2636_v27 = vmul.f32 %v2634_v19, %v2629_v23  ;;  %v2747_v0 = vrot.slane %v2743_v63, %v5239_v9  ;;  %v4877_v23 = vld [vmem:[%s6078_s6 + $0xc8] sm:$0xff]  }
0x1786   : > { %v4228_v63 = vld [vmem:[%s6036_s7 + $0xc] sm:$0x1] }
0x1787   : > { %v2643_v30 = vadd.f32 %v2641_v26, %v2636_v27  ;;  %v4879_v26 = vld [vmem:[%s6078_s6 + $0xc0] sm:$0xff]  }
0x1788   : > { %v4880_v27 = vld [vmem:[%s6078_s6 + $0x100] sm:$0xff]  }
0x1789   : > { %v2644_v31 = vpack.c.bf16 %v2643_v30, %v2642_v29 }
0x178b   : > { %4664 = vmatmul.mubr.msk.bf16.vlgmr.msra.gmra.mxu1 %vm758_vm2, %v2644_v31 }
0x178c   : > { %4683 = vmatprep.mubr.msk.bf16.mxu1 %vm5048_vm0, %v5047_v1  ;;  %4680 = vmatpush3.bf16.msra.mxu1 %v4877_v23 }
0x178d   : > { %4681 = vmatprep.subr.bf16.mxu1 %v5047_v1 }
0x1790   : > { %4682 = vmatpush3.bf16.msra.mxu1 %v4879_v26 }
0x1791   : > { %4687 = vmatprep.subr.bf16.mxu1 %v5047_v1 }
0x184b   : > { %v2706_v37 = vpop.f32.mrf.mxu1 }
0x184c   : > { %v2707_v38 = vadd.f32 %v2706_v37, %v2656_v36  ;;  %v2852_v37 = vrot.slane %v2848_v59, %v5239_v9 }
0x184d   : > { %v4665_v39 = vpop.f32.mrf.mxu1 }
0x184e   : > { %v2713_v40 = vmul.f32 %v2707_v38, %v2707_v38  ;;  %v2855_v39 = vunpack.c.l.bf16 %v4223_v22 }
0x184f   : > { %v2709_v41 = vpop.f32.mrf.mxu1 }
0x1850   : > { %v2715_v42 = vmul.f32 %v2713_v40, %v2707_v38  ;;  %v2710_v44 = vadd.f32 %v2709_v41, %v2656_v36 }
0x1851   : > { %v4666_v45 = vpop.f32.mrf.mxu1 }
0x1852   : > { %v2717_v46 = vmul.f32 0.044715, %v2715_v42  ;;  %v2714_v47 = vmul.f32 %v2710_v44, %v2710_v44 }
0x1854   : > { %v2719_v49 = vadd.f32 %v2717_v46, %v2707_v38  ;;  %v2716_v50 = vmul.f32 %v2714_v47, %v2710_v44 }
0x1856   : > { %v2721_v51 = vmul.f32 0.7978846, %v2719_v49  ;;  %v2718_v52 = vmul.f32 0.044715, %v2716_v50  ;;  %v4881_v49 = vld [vmem:[%s6078_s6 + $0xe8] sm:$0xff]  }
0x1858   : > { %4951 = vtanh.f32 %v2721_v51  ;;  %v2720_v28 = vadd.f32 %v2718_v52, %v2710_v44  ;;  %v4882_v51 = vld [vmem:[%s6078_s6 + $0xe0] sm:$0xff]   ;;  %v4244_v52 = vld [vmem:[%s6036_s7 + $0x10] sm:$0x1] }
0x185a   : > { %v2722_v54 = vmul.f32 0.7978846, %v2720_v28  ;;  %v3003_v28 = vunpack.c.l.bf16 %v4244_v52  ;;  %v4884_v52 = vld [vmem:[%s6078_s6 + $0xd0] sm:$0xff]  }
0x185c   : > { %4953 = vtanh.f32 %v2722_v54 }
0x1865   : > { %v4952_v55 = vpop.eup %4951 }
0x1866   : > { %v2725_v56 = vadd.f32 1.0, %v4952_v55 }
0x1868   : > { %v2727_v43 = vmul.f32 0.5, %v2725_v56  ;;  %v3007_v56 = vrot.slane %v3003_v28, %v5239_v9  ;;  %v4885_v28 = vld [vmem:[%s6078_s6 + $0x118] sm:$0xff]  }
0x1869   : > { %v4954_v57 = vpop.eup %4953 }
0x186a   : > { %v2726_v58 = vadd.f32 1.0, %v4954_v57  ;;  %v2729_v24 = vmul.f32 %v2727_v43, %v2707_v38 }
0x186c   : > { %v2728_v60 = vmul.f32 0.5, %v2726_v58  ;;  %v4236_v58 = vld [vmem:[%s6036_s7 + $0xe] sm:$0x1] }
0x186d   : > { %v2938_v62 = vunpack.c.l.bf16 %v4236_v58 }
0x186e   : > { %v2730_v48 = vmul.f32 %v2728_v60, %v2710_v44  ;;  %v2859_v44 = vrot.slane %v2855_v39, %v5239_v9 }
0x1870   : > { %v2731_v61 = vpack.c.bf16 %v2730_v48, %v2729_v24 }
0x1872   : > { %4676 = vmatmul.mubr.msk.bf16.vlgmr.msra.gmra.mxu0 %vm1736_vm5, %v2731_v61 }
0x1873   : > { %4699 = vmatprep.mubr.msk.bf16.mxu0 %vm5048_vm0, %v5047_v1  ;;  %4696 = vmatpush3.bf16.msra.mxu0 %v4878_v25 }
0x1874   : > { %4697 = vmatprep.subr.bf16.mxu0 %v5047_v1 }
0x1877   : > { %4698 = vmatpush3.bf16.msra.mxu0 %v4880_v27 }
0x1878   : > { %4709 = vmatprep.subr.bf16.mxu0 %v5047_v1 }
0x1932   : > { %v2809_v2 = vpop.f32.mrf.mxu0 }
0x1933   : > { %v2810_v3 = vadd.f32 %v2809_v2, %v2747_v0 }
0x1934   : > { %v4677_v4 = vpop.f32.mrf.mxu0 }
0x1935   : > { %v5726_v5 = vadd.f32 %v2810_v3, %v5667_v53 }
0x1936   : > { %v2812_v6 = vpop.f32.mrf.mxu0 }
0x1937   : > { %v2813_v7 = vadd.f32 %v2812_v6, %v2747_v0  ;;  %v2822_v8 = vsel %vm758_vm2, %v5726_v5, 0.0  ;;  %v2870_v6 = vunpack.c.l.bf16 %v4228_v63 }
0x1938   : > { %2823 = vadd.xlane.f32.xlu0 %v2822_v8  ;;  %v4678_v10 = vpop.f32.mrf.mxu0 }
0x1939   : > { %v5731_v11 = vadd.f32 %v2813_v7, %v5671_v33  ;;  %v2942_v7 = vrot.slane %v2938_v62, %v5239_v9 }
0x193b   : > { %v2825_v12 = vsel %vm758_vm2, %v5731_v11, 0.0 }
0x193c   : > { %2826 = vadd.xlane.f32.xlu1 %v2825_v12  ;;  %v2874_v12 = vrot.slane %v2870_v6, %v5239_v9 }
0x19c1   : > { %v2824_v13 = vpop.xlane.xlu0 %2823 }
0x19c2   : > { %v2828_v14 = vmul.f32 0.03125, %v2824_v13 }
0x19c4   : > { %v2830_v15 = vsub.f32 %v5726_v5, %v2828_v14 }
0x19c5   : > { %v2827_v53 = vpop.xlane.xlu1 %2826 }
0x19c6   : > { %v2829_v17 = vmul.f32 0.03125, %v2827_v53  ;;  %v2832_v18 = vmul.f32 %v2830_v15, %v2830_v15 }
0x19c8   : > { %v2831_v19 = vsub.f32 %v5731_v11, %v2829_v17  ;;  %v2834_v20 = vsel %vm758_vm2, %v2832_v18, 0.0 }
0x19c9   : > { %2835 = vadd.xlane.f32.xlu0 %v2834_v20 }
0x19ca   : > { %v2833_v21 = vmul.f32 %v2831_v19, %v2831_v19 }
0x19cc   : > { %v2837_v33 = vsel %vm758_vm2, %v2833_v21, 0.0 }
0x19cd   : > { %2838 = vadd.xlane.f32.xlu1 %v2837_v33 }
0x1a52   : > { %v2836_v29 = vpop.xlane.xlu0 %2835 }
0x1a53   : > { %v2840_v30 = vmul.f32 0.03125, %v2836_v29 }
0x1a55   : > { %v2842_v31 = vadd.f32 1e-05, %v2840_v30 }
0x1a56   : > { %v2839_v32 = vpop.xlane.xlu1 %2838 }
0x1a57   : > { %4955 = vrsqrt.f32 %v2842_v31  ;;  %v2841_v16 = vmul.f32 0.03125, %v2839_v32 }
0x1a59   : > { %v2843_v34 = vadd.f32 1e-05, %v2841_v16 }
0x1a5b   : > { %4957 = vrsqrt.f32 %v2843_v34 }
0x1a64   : > { %v4956_v36 = vpop.eup %4955 }
0x1a65   : > { %v2846_v38 = vmul.f32 %v4956_v36, %v2830_v15 }
0x1a67   : > { %v2853_v41 = vmul.f32 %v2852_v37, %v2846_v38 }
0x1a68   : > { %v4958_v40 = vpop.eup %4957 }
0x1a69   : > { %v2847_v42 = vmul.f32 %v4958_v40, %v2831_v19  ;;  %v2860_v46 = vadd.f32 %v2859_v44, %v2853_v41 }
0x1a6b   : > { %v2854_v45 = vmul.f32 %v2852_v37, %v2847_v42 }
0x1a6d   : > { %v2861_v47 = vadd.f32 %v2859_v44, %v2854_v45 }
0x1a6f   : > { %v5766_v50 = vpack.c.bf16 %v2861_v47, %v2860_v46  ;;  %v4883_v47 = vld [vmem:[%s6078_s6 + $0xd8] sm:$0xff]  }
0x1a71   : > { %4684 = vmatmul.mubr.msk.bf16.vlgmr.msra.gmra.mxu1 %vm758_vm2, %v5766_v50  ;;  %4700 = vmatmul.mubr.msk.bf16.vlgmr.msra.gmra.mxu0 %vm758_vm2, %v5766_v50 }
0x1a72   : > { %4688 = vmatpush3.bf16.msra.mxu1 %v4881_v49  ;;  %4691 = vmatprep.mubr.msk.bf16.mxu1 %vm5048_vm0, %v5047_v1 }
0x1a73   : > { %4689 = vmatprep.subr.bf16.mxu1 %v5047_v1  ;;  %4711 = vmatprep.mubr.msk.bf16.mxu0 %vm5048_vm0, %v5047_v1 }
0x1a76   : > { %4690 = vmatpush3.bf16.msra.mxu1 %v4882_v51 }
0x1a77   : > { %4703 = vmatprep.subr.bf16.mxu1 %v5047_v1 }
0x1a79   : > { %4692 = vmatmul.mubr.msk.bf16.vlgmr.msra.gmra.mxu1 %vm758_vm2, %v5766_v50 }
0x1a7a   : > { %4705 = vmatprep.mubr.msk.bf16.mxu1 %vm5048_vm0, %v5047_v1 }
0x1b31   : > { %v2924_v54 = vpop.f32.mrf.mxu1  ;;  %v3054_v55 = vpop.f32.mrf.mxu0 }
0x1b32   : > { %v3055_v48 = vadd.f32 %v3054_v55, %v3007_v56  ;;  %v2925_v18 = vadd.f32 %v2924_v54, %v2874_v12  ;;  %v4886_v54 = vld [vmem:[%s6078_s6 + $0x110] sm:$0xff]   ;;  %v4887_v55 = vld [vmem:[%s6037_s8 + $0x20] sm:$0xff]  }
0x1b33   : > { %v4685_v57 = vpop.f32.mrf.mxu1  ;;  %v4701_v43 = vpop.f32.mrf.mxu0 }
0x1b34   : > { %v3061_v21 = vmul.f32 0.25, %v2925_v18  ;;  %v4262_v57 = vld [vmem:[%s6036_s7 + $0xd] sm:$0x1] }
0x1b35   : > { %v2927_v60 = vpop.f32.mrf.mxu1  ;;  %v3057_v24 = vpop.f32.mrf.mxu0  ;;  %v3253_v58 = vunpack.c.l.bf16 %v4262_v57 }
0x1b36   : > { %v3058_v61 = vadd.f32 %v3057_v24, %v3007_v56  ;;  %v2928_v53 = vadd.f32 %v2927_v60, %v2874_v12  ;;  %v4888_v24 = vld [vmem:[%s6078_s6 + $0xf8] sm:$0xff]  }
0x1b37   : > { %v4686_v0 = vpop.f32.mrf.mxu1  ;;  %v4702_v2 = vpop.f32.mrf.mxu0  ;;  %v3257_v62 = vrot.slane %v3253_v58, %v5239_v9 }
0x1b38   : > { %v3145_v3 = vpack.c.bf16 %v3058_v61, %v3055_v48  ;;  %v3062_v20 = vmul.f32 0.25, %v2928_v53  ;;  %v4889_v0 = vld [vmem:[%s6078_s6 + $0xf0] sm:$0xff]  }
0x1b39   : > { %v2989_v4 = vpop.f32.mrf.mxu1 }
0x1b3a   : > { %4710 = vmatpush3.bf16.msra.mxu0 %v3145_v3  ;;  %v2990_v13 = vadd.f32 %v2989_v4, %v2942_v7  ;;  %v3063_v33 = vpack.c.bf16 %v3062_v20, %v3061_v21  ;;  %v4278_v3 = vld [vmem:[%s6036_s7 + $0x11] sm:$0x1] }
0x1b3b   : > { %v4693_v8 = vpop.f32.mrf.mxu1  ;;  %4721 = vmatprep.subr.bf16.mxu0 %v5047_v1 }
0x1b3c   : > { %v3383_v8 = vunpack.c.l.bf16 %v4278_v3 }
0x1b3d   : > { %v2992_v10 = vpop.f32.mrf.mxu1 }
0x1b3e   : > { %v2993_v14 = vadd.f32 %v2992_v10, %v2942_v7  ;;  %v3387_v53 = vrot.slane %v3383_v8, %v5239_v9 }
0x1b3f   : > { %v4694_v15 = vpop.f32.mrf.mxu1 }
0x1b40   : > { %v3064_v17 = vpack.c.bf16 %v2993_v14, %v2990_v13 }
0x1b42   : > { %v3069_v19 = vsel %vm1001_vm3, %v3064_v17, 0 }
0x1b43   : > { %4704 = vmatpush3.bf16.xpose.msra.mxu1 %v3069_v19 }
0x1b44   : > { %4715 = vmatprep.subr.bf16.mxu1 %v5047_v1 }
0x1b4a   : > { %4706 = vmatmul.mubr.msk.bf16.vlgmr.msra.gmra.mxu1 %vm1001_vm3, %v3063_v33 }
0x1b4b   : > { %4717 = vmatprep.mubr.msk.bf16.mxu1 %vm5048_vm0, %v5047_v1  ;;  %4716 = vmatpush3.bf16.msra.mxu1 %v4887_v55 }
0x1b4c   : > { %4729 = vmatprep.subr.bf16.mxu1 %v5047_v1 }
0x1c0a   : > { %v3105_v23 = vpop.f32.mrf.mxu1 }
0x1c0b   : > { %v3112_v25 = vsel %vm1001_vm3, %v3105_v23, -inf }
0x1c0c   : > { %3113 = vmax.xlane.f32.xlu0 %v3112_v25  ;;  %v4707_v26 = vpop.f32.mrf.mxu1 }
0x1c0e   : > { %v3108_v27 = vpop.f32.mrf.mxu1 }
0x1c0f   : > { %v3115_v29 = vsel %vm1001_vm3, %v3108_v27, -inf }
0x1c10   : > { %3116 = vmax.xlane.f32.xlu1 %v3115_v29  ;;  %v4708_v30 = vpop.f32.mrf.mxu1 }
0x1c95   : > { %v3114_v31 = vpop.xlane.xlu0 %3113 }
0x1c96   : > { %v3118_v32 = vsub.f32 %v3105_v23, %v3114_v31 }
0x1c98   : > { %v3120_v16 = vmul.f32 1.442695, %v3118_v32 }
0x1c99   : > { %v3117_v34 = vpop.xlane.xlu1 %3116 }
0x1c9a   : > { %4959 = vpow2.f32 %v3120_v16  ;;  %v3119_v35 = vsub.f32 %v3108_v27, %v3117_v34 }
0x1c9c   : > { %v3122_v59 = vmul.f32 1.442695, %v3119_v35 }
0x1c9e   : > { %4961 = vpow2.f32 %v3122_v59 }
0x1ca7   : > { %v4960_v22 = vpop.eup %4959 }
0x1ca8   : > { %v3124_v36 = vsel %vm1001_vm3, %v4960_v22, 0.0 }
0x1ca9   : > { %3125 = vadd.xlane.f32.xlu0 %v3124_v36 }
0x1cab   : > { %v4962_v37 = vpop.eup %4961 }
0x1cac   : > { %v3127_v38 = vsel %vm1001_vm3, %v4962_v37, 0.0 }
0x1cad   : > { %3128 = vadd.xlane.f32.xlu1 %v3127_v38 }
0x1d32   : > { %v3126_v39 = vpop.xlane.xlu0 %3125 }
0x1d33   : > { %4963 = vrcp.f32 %v3126_v39 }
0x1d36   : > { %v3129_v40 = vpop.xlane.xlu1 %3128 }
0x1d37   : > { %4965 = vrcp.f32 %v3129_v40 }
0x1d40   : > { %v4964_v41 = vpop.eup %4963 }
0x1d41   : > { %v3131_v42 = vmul.f32 %v4964_v41, %v4960_v22 }
0x1d43   : > { %v4332_v44 = vpack.c.bf16 %v3131_v42, %v3131_v42 }
0x1d44   : > { %v4966_v45 = vpop.eup %4965 }
0x1d45   : > { %v3133_v46 = vmul.f32 %v4966_v45, %v4962_v37  ;;  %4251 = vst.msk [vmem:[%s5329_s29 + $0x20] sm:$0xf] %vm1079_vm4, %v4332_v44 }
0x1d47   : > { %v3134_v49 = vpack.c.bf16 %v3133_v46, %v3131_v42  ;;  %v4333_v51 = vpack.c.bf16 %v3133_v46, %v3133_v46 }
0x1d49   : > { %4252 = vst.msk [vmem:[%s5329_s29 + $0x24] sm:$0xf] %vm1079_vm4, %v4333_v51  ;;  %4712 = vmatmul.mubr.msk.bf16.vlgmr.msra.gmra.mxu0 %vm1001_vm3, %v3134_v49 }
0x1d4a   : > { %4722 = vmatpush3.bf16.msra.mxu0 %v4883_v47  ;;  %4725 = vmatprep.mubr.msk.bf16.mxu0 %vm5048_vm0, %v5047_v1 }
0x1d4b   : > { %4723 = vmatprep.subr.bf16.mxu0 %v5047_v1 }
0x1d4e   : > { %4724 = vmatpush3.bf16.msra.mxu0 %v4884_v52 }
0x1d4f   : > { %4737 = vmatprep.subr.bf16.mxu0 %v5047_v1 }
0x1d51   : > { %4726 = vmatmul.mubr.msk.bf16.vlgmr.msra.gmra.mxu0 %vm758_vm2, %v5766_v50 }
0x1d52   : > { %4738 = vmatpush3.bf16.msra.mxu0 %v4885_v28  ;;  %4741 = vmatprep.mubr.msk.bf16.mxu0 %vm5048_vm0, %v5047_v1 }
0x1d53   : > { %4739 = vmatprep.subr.bf16.mxu0 %v5047_v1 }
0x1d56   : > { %4740 = vmatpush3.bf16.msra.mxu0 %v4886_v54 }
0x1d57   : > { %4751 = vmatprep.subr.bf16.mxu0 %v5047_v1 }
0x1d59   : > { %4742 = vmatmul.mubr.msk.bf16.vlgmr.msra.gmra.mxu0 %vm758_vm2, %v5766_v50 }
0x1d5a   : > { %4753 = vmatprep.mubr.msk.bf16.mxu0 %vm5048_vm0, %v5047_v1 }
0x1e09   : > { %v3183_v56 = vpop.f32.mrf.mxu0 }
0x1e0b   : > { %v4713_v43 = vpop.f32.mrf.mxu0 }
0x1e0d   : > { %v3186_v60 = vpop.f32.mrf.mxu0 }
0x1e0e   : > { %v3190_v48 = vpack.c.bf16 %v3186_v60, %v3183_v56 }
0x1e0f   : > { %v4714_v61 = vpop.f32.mrf.mxu0 }
0x1e10   : > { %4718 = vmatmul.mubr.msk.bf16.vlgmr.msra.gmra.mxu1 %vm1001_vm3, %v3190_v48 }
0x1e11   : > { %v3304_v63 = vpop.f32.mrf.mxu0  ;;  %4730 = vmatpush3.bf16.msra.mxu1 %v4888_v24  ;;  %4733 = vmatprep.mubr.msk.bf16.mxu1 %vm5048_vm0, %v5047_v1 }
0x1e12   : > { %4731 = vmatprep.subr.bf16.mxu1 %v5047_v1  ;;  %v3305_v4 = vadd.f32 %v3304_v63, %v3257_v62  ;;  %v4890_v63 = vld [vmem:[%s6037_s8 + $0x28] sm:$0xff]  }
0x1e13   : > { %v4727_v2 = vpop.f32.mrf.mxu0 }
0x1e14   : > { %v3441_v12 = vmul.f32 0.25, %v3305_v4 }
0x1e15   : > { %v3307_v6 = vpop.f32.mrf.mxu0  ;;  %4732 = vmatpush3.bf16.msra.mxu1 %v4889_v0 }
0x1e16   : > { %v3308_v7 = vadd.f32 %v3307_v6, %v3257_v62  ;;  %4745 = vmatprep.subr.bf16.mxu1 %v5047_v1 }
0x1e17   : > { %v4728_v10 = vpop.f32.mrf.mxu0 }
0x1e18   : > { %v3442_v13 = vmul.f32 0.25, %v3308_v7  ;;  %4734 = vmatmul.mubr.msk.bf16.vlgmr.msra.gmra.mxu1 %vm758_vm2, %v5766_v50  ;;  %v4270_v50 = vld [vmem:[%s6036_s7 + $0xf] sm:$0x1]  ;;  %v4292_v7 = vld [vmem:[%s6038_s9 + $0x2] sm:$0x1] }
0x1e19   : > { %v3434_v14 = vpop.f32.mrf.mxu0  ;;  %4747 = vmatprep.mubr.msk.bf16.mxu1 %vm5048_vm0, %v5047_v1  ;;  %v3318_v27 = vunpack.c.l.bf16 %v4270_v50  ;;  %v3628_v8 = vunpack.c.l.bf16 %v4292_v7 }
0x1e1a   : > { %v3443_v15 = vpack.c.bf16 %v3442_v13, %v3441_v12  ;;  %v3435_v19 = vadd.f32 %v3434_v14, %v3387_v53 }
0x1e1b   : > { %v4743_v17 = vpop.f32.mrf.mxu0  ;;  %v3322_v31 = vrot.slane %v3318_v27, %v5239_v9  ;;  %v3632_v12 = vrot.slane %v3628_v8, %v5239_v9 }
0x1e1d   : > { %v3437_v18 = vpop.f32.mrf.mxu0 }
0x1e1e   : > { %v3438_v20 = vadd.f32 %v3437_v18, %v3387_v53 }
0x1e1f   : > { %v4744_v21 = vpop.f32.mrf.mxu0 }
0x1e20   : > { %v3525_v33 = vpack.c.bf16 %v3438_v20, %v3435_v19 }
0x1e22   : > { %4752 = vmatpush3.bf16.msra.mxu0 %v3525_v33 }
0x1e23   : > { %4763 = vmatprep.subr.bf16.mxu0 %v5047_v1 }
0x1ed0   : > { %v5866_v23 = vpop.f32.mrf.mxu1 }
0x1ed1   : > { %v3244_v10 = vadd.f32 %v5866_v23, %v5726_v5 }
0x1ed2   : > { %v4719_v25 = vpop.f32.mrf.mxu1 }
0x1ed4   : > { %v5871_v26 = vpop.f32.mrf.mxu1 }
0x1ed5   : > { %v3245_v53 = vadd.f32 %v5871_v26, %v5731_v11 }
0x1ed6   : > { %v4720_v29 = vpop.f32.mrf.mxu1 }
0x1ed8   : > { %v3369_v30 = vpop.f32.mrf.mxu1 }
0x1ed9   : > { %v3370_v34 = vadd.f32 %v3369_v30, %v3322_v31 }
0x1eda   : > { %v4735_v32 = vpop.f32.mrf.mxu1 }
0x1edc   : > { %v3372_v16 = vpop.f32.mrf.mxu1 }
0x1edd   : > { %v3373_v35 = vadd.f32 %v3372_v16, %v3322_v31  ;;  %v4891_v16 = vld [vmem:[%s6041_s12 + $0x28] sm:$0xff]  }
0x1ede   : > { %v4736_v59 = vpop.f32.mrf.mxu1 }
0x1edf   : > { %v3444_v22 = vpack.c.bf16 %v3373_v35, %v3370_v34  ;;  %v4892_v34 = vld [vmem:[%s6041_s12 + $0x20] sm:$0xff]  }
0x1ee1   : > { %v3449_v36 = vsel %vm1001_vm3, %v3444_v22, 0 }
0x1ee2   : > { %4746 = vmatpush3.bf16.xpose.msra.mxu1 %v3449_v36 }
0x1ee3   : > { %4757 = vmatprep.subr.bf16.mxu1 %v5047_v1 }
0x1ee9   : > { %4748 = vmatmul.mubr.msk.bf16.vlgmr.msra.gmra.mxu1 %vm1001_vm3, %v3443_v15 }
0x1eea   : > { %4759 = vmatprep.mubr.msk.bf16.mxu1 %vm5048_vm0, %v5047_v1  ;;  %4758 = vmatpush3.bf16.msra.mxu1 %v4890_v63 }
0x1eeb   : > { %4771 = vmatprep.subr.bf16.mxu1 %v5047_v1 }
0x1fa9   : > { %v3485_v37 = vpop.f32.mrf.mxu1 }
0x1faa   : > { %v3492_v38 = vsel %vm1001_vm3, %v3485_v37, -inf }
0x1fab   : > { %3493 = vmax.xlane.f32.xlu0 %v3492_v38  ;;  %v4749_v39 = vpop.f32.mrf.mxu1 }
0x1fac   : > { %v4293_v39 = vld [vmem:[%s6039_s10 + $0x2] sm:$0x1] }
0x1fad   : > { %v3488_v40 = vpop.f32.mrf.mxu1 }
0x1fae   : > { %v3495_v41 = vsel %vm1001_vm3, %v3488_v40, -inf }
0x1faf   : > { %3496 = vmax.xlane.f32.xlu1 %v3495_v41  ;;  %v4750_v42 = vpop.f32.mrf.mxu1  ;;  %v4294_v41 = vld [vmem:[%s6040_s11 + $0x2] sm:$0x1] }
0x2034   : > { %v3494_v44 = vpop.xlane.xlu0 %3493 }
0x2035   : > { %v3498_v45 = vsub.f32 %v3485_v37, %v3494_v44 }
0x2037   : > { %v3500_v46 = vmul.f32 1.442695, %v3498_v45 }
0x2038   : > { %v3497_v47 = vpop.xlane.xlu1 %3496 }
0x2039   : > { %4967 = vpow2.f32 %v3500_v46  ;;  %v3499_v49 = vsub.f32 %v3488_v40, %v3497_v47  ;;  %v3665_v40 = vunpack.c.l.bf16 %v4293_v39  ;;  %v3672_v46 = vunpack.c.l.bf16 %v4294_v41 }
0x203b   : > { %v3502_v51 = vmul.f32 1.442695, %v3499_v49  ;;  %v3669_v45 = vrot.slane %v3665_v40, %v5239_v9 }
0x203d   : > { %4969 = vpow2.f32 %v3502_v51 }
0x2046   : > { %v4968_v52 = vpop.eup %4967 }
0x2047   : > { %v3504_v28 = vsel %vm1001_vm3, %v4968_v52, 0.0 }
0x2048   : > { %3505 = vadd.xlane.f32.xlu0 %v3504_v28 }
0x204a   : > { %v4970_v54 = vpop.eup %4969 }
0x204b   : > { %v3507_v55 = vsel %vm1001_vm3, %v4970_v54, 0.0 }
0x204c   : > { %3508 = vadd.xlane.f32.xlu1 %v3507_v55 }
0x20d1   : > { %v3506_v56 = vpop.xlane.xlu0 %3505 }
0x20d2   : > { %4971 = vrcp.f32 %v3506_v56 }
0x20d5   : > { %v3509_v57 = vpop.xlane.xlu1 %3508 }
0x20d6   : > { %4973 = vrcp.f32 %v3509_v57  ;;  %v4893_v57 = vld [vmem:[%s6043_s14 + $0x58] sm:$0xff]  }
0x20df   : > { %v4972_v43 = vpop.eup %4971 }
0x20e0   : > { %v3511_v58 = vmul.f32 %v4972_v43, %v4968_v52  ;;  %v3676_v52 = vrot.slane %v3672_v46, %v5239_v9  ;;  %v4894_v43 = vld [vmem:[%s6043_s14 + $0x50] sm:$0xff]  }
0x20e2   : > { %v4334_v60 = vpack.c.bf16 %v3511_v58, %v3511_v58 }
0x20e3   : > { %v4974_v24 = vpop.eup %4973 }
0x20e4   : > { %v3513_v48 = vmul.f32 %v4974_v24, %v4970_v54  ;;  %4285 = vst.msk [vmem:[%s5329_s29 + $0x28] sm:$0xf] %vm1079_vm4, %v4334_v60  ;;  %v4896_v60 = vld [vmem:[%s6043_s14 + $0x40] sm:$0xff]  }
0x20e5   : > { %v4299_v24 = vld [vmem:[%s6042_s13 + $0x2] sm:$0x1] }
0x20e6   : > { %v3514_v61 = vpack.c.bf16 %v3513_v48, %v3511_v58  ;;  %v4335_v62 = vpack.c.bf16 %v3513_v48, %v3513_v48  ;;  %v4895_v58 = vld [vmem:[%s6043_s14 + $0x48] sm:$0xff]   ;;  %v3687_v48 = vunpack.c.l.bf16 %v4299_v24 }
0x20e8   : > { %4286 = vst.msk [vmem:[%s5329_s29 + $0x2c] sm:$0xf] %vm1079_vm4, %v4335_v62  ;;  %4754 = vmatmul.mubr.msk.bf16.vlgmr.msra.gmra.mxu0 %vm1001_vm3, %v3514_v61  ;;  %v3691_v61 = vrot.slane %v3687_v48, %v5239_v9  ;;  %s4991_s29 = scalar_lea.vmem %s4990_s0, 32 }
0x20e9   : > { %4767 = vmatprep.mubr.msk.bf16.mxu0 %vm5048_vm0, %v5047_v1  ;;  %4764 = vmatpush3.bf16.msra.mxu0 %v4891_v16  ;;  %p4993_p1 = scmp.lt.s32.totalorder %s4991_s29, %s4985_s3 }
0x20ea   : > { %4765 = vmatprep.subr.bf16.mxu0 %v5047_v1 }
0x20eb   : > { %p4994_p2 = por %p4993_p1, %p4992_p0 }
0x20ed   : > { %4766 = vmatpush3.bf16.msra.mxu0 %v4892_v34  ;;  %p4995_p3 = pnand %p4994_p2, %p4988_p13 }
0x20ee   : > { %4783 = vmatprep.subr.bf16.mxu0 %v5047_v1 }
0x21a8   : > { %v3563_v0 = vpop.f32.mrf.mxu0 }
0x21aa   : > { %v4755_v2 = vpop.f32.mrf.mxu0 }
0x21ac   : > { %v3566_v3 = vpop.f32.mrf.mxu0 }
0x21ad   : > { %v3570_v4 = vpack.c.bf16 %v3566_v3, %v3563_v0 }
0x21ae   : > { %v4756_v6 = vpop.f32.mrf.mxu0 }
0x21af   : > { %4760 = vmatmul.mubr.msk.bf16.vlgmr.msra.gmra.mxu1 %vm1001_vm3, %v3570_v4 }
0x21b0   : > { %4779 = vmatprep.mubr.msk.bf16.mxu1 %vm5048_vm0, %v5047_v1  ;;  %4772 = vmatpush3.bf16.msra.mxu1 %v4893_v57 }
0x21b1   : > { %4773 = vmatprep.subr.bf16.mxu1 %v5047_v1 }
0x21b4   : > { %4774 = vmatpush3.bf16.msra.mxu1 %v4894_v43  ;;  %v3864_v43 = vld [vmem:[%s6045_s16] sm:$0x1] }
0x21b5   : > { %4775 = vmatprep.subr.bf16.mxu1 %v5047_v1 }
0x21b8   : > { %4776 = vmatpush3.bf16.msra.mxu1 %v4895_v58  ;;  %v3865_v58 = vld [vmem:[%s6046_s17] sm:$0x1] }
0x21b9   : > { %4777 = vmatprep.subr.bf16.mxu1 %v5047_v1 }
0x21bc   : > { %4778 = vmatpush3.bf16.msra.mxu1 %v4896_v60  ;;  %v3879_v60 = vunpack.c.l.bf16 %v3864_v43 }
0x226f   : > { %v3617_v13 = vpop.f32.mrf.mxu1 }
0x2270   : > { %v3624_v14 = vadd.f32 %v3617_v13, %v3244_v10 }
0x2271   : > { %v4761_v15 = vpop.f32.mrf.mxu1 }
0x2272   : > { %v5905_v17 = vadd.f32 %v3632_v12, %v3624_v14 }
0x2273   : > { %v3620_v18 = vpop.f32.mrf.mxu1 }
0x2274   : > { %v3625_v19 = vadd.f32 %v3620_v18, %v3245_v53  ;;  %v3639_v20 = vsel %vm758_vm2, %v5905_v17, 0.0 }
0x2275   : > { %3640 = vadd.xlane.f32.xlu0 %v3639_v20  ;;  %v4762_v21 = vpop.f32.mrf.mxu1 }
0x2276   : > { %v5909_v33 = vadd.f32 %v3632_v12, %v3625_v19 }
0x2278   : > { %v3642_v5 = vsel %vm758_vm2, %v5909_v33, 0.0 }
0x2279   : > { %3643 = vadd.xlane.f32.xlu1 %v3642_v5 }
0x22fe   : > { %v3641_v23 = vpop.xlane.xlu0 %3640 }
0x22ff   : > { %v3645_v25 = vmul.f32 0.03125, %v3641_v23 }
0x2301   : > { %v3647_v50 = vsub.f32 %v5905_v17, %v3645_v25 }
0x2302   : > { %v3644_v11 = vpop.xlane.xlu1 %3643 }
0x2303   : > { %v3646_v26 = vmul.f32 0.03125, %v3644_v11  ;;  %v3649_v27 = vmul.f32 %v3647_v50, %v3647_v50 }
0x2305   : > { %v3648_v29 = vsub.f32 %v5909_v33, %v3646_v26  ;;  %v3651_v30 = vsel %vm758_vm2, %v3649_v27, 0.0  ;;  %v4311_v27 = vld [vmem:[%s6044_s15 + $0x2] sm:$0x1] }
0x2306   : > { %3652 = vadd.xlane.f32.xlu0 %v3651_v30 }
0x2307   : > { %v3650_v31 = vmul.f32 %v3648_v29, %v3648_v29 }
0x2309   : > { %v3654_v32 = vsel %vm758_vm2, %v3650_v31, 0.0 }
0x230a   : > { %3655 = vadd.xlane.f32.xlu1 %v3654_v32 }
0x238f   : > { %v3653_v35 = vpop.xlane.xlu0 %3652 }
0x2390   : > { %v3657_v59 = vmul.f32 0.03125, %v3653_v35 }
0x2392   : > { %v3659_v22 = vadd.f32 1e-05, %v3657_v59 }
0x2393   : > { %v3656_v36 = vpop.xlane.xlu1 %3655 }
0x2394   : > { %4975 = vrsqrt.f32 %v3659_v22  ;;  %v3658_v37 = vmul.f32 0.03125, %v3656_v36 }
0x2396   : > { %v3660_v38 = vadd.f32 1e-05, %v3658_v37 }
0x2398   : > { %4977 = vrsqrt.f32 %v3660_v38 }
0x23a1   : > { %v4976_v42 = vpop.eup %4975 }
0x23a2   : > { %v3663_v44 = vmul.f32 %v4976_v42, %v3647_v50 }
0x23a4   : > { %v3670_v51 = vmul.f32 %v3669_v45, %v3663_v44 }
0x23a5   : > { %v4978_v47 = vpop.eup %4977 }
0x23a6   : > { %v3664_v49 = vmul.f32 %v4978_v47, %v3648_v29  ;;  %v3677_v54 = vadd.f32 %v3676_v52, %v3670_v51  ;;  %v3778_v29 = vunpack.c.l.bf16 %v4311_v27 }
0x23a8   : > { %v3671_v28 = vmul.f32 %v3669_v45, %v3664_v49  ;;  %v3782_v30 = vrot.slane %v3778_v29, %v5239_v9 }
0x23aa   : > { %v3678_v55 = vadd.f32 %v3676_v52, %v3671_v28  ;;  %v4897_v28 = vld [vmem:[%s6047_s18 + $0x8] sm:$0xff]  }
0x23ac   : > { %v3679_v56 = vpack.c.bf16 %v3678_v55, %v3677_v54  ;;  %v4898_v54 = vld [vmem:[%s6047_s18] sm:$0xff]  }
0x23ae   : > { %4768 = vmatmul.mubr.msk.bf16.vlgmr.msra.gmra.mxu0 %vm758_vm2, %v3679_v56 }
0x23af   : > { %4787 = vmatprep.mubr.msk.bf16.mxu0 %vm5048_vm0, %v5047_v1  ;;  %4784 = vmatpush3.bf16.msra.mxu0 %v4897_v28 }
0x23b0   : > { %4785 = vmatprep.subr.bf16.mxu0 %v5047_v1 }
0x23b3   : > { %4786 = vmatpush3.bf16.msra.mxu0 %v4898_v54 }
0x246e   : > { %v3741_v62 = vpop.f32.mrf.mxu0 }
0x246f   : > { %v3742_v63 = vadd.f32 %v3741_v62, %v3691_v61 }
0x2470   : > { %v4769_v0 = vpop.f32.mrf.mxu0 }
0x2471   : > { %v3748_v2 = vmul.f32 %v3742_v63, %v3742_v63  ;;  %v3888_v0 = vld [vmem:[%s6048_s19] sm:$0x1] }
0x2472   : > { %v3744_v3 = vpop.f32.mrf.mxu0 }
0x2473   : > { %v3750_v4 = vmul.f32 %v3748_v2, %v3742_v63  ;;  %v3745_v6 = vadd.f32 %v3744_v3, %v3691_v61  ;;  %v3881_v61 = vunpack.c.l.bf16 %v3865_v58  ;;  %v3889_v2 = vunpack.c.l.bf16 %v3888_v0 }
0x2474   : > { %v4770_v7 = vpop.f32.mrf.mxu0 }
0x2475   : > { %v3752_v8 = vmul.f32 0.044715, %v3750_v4  ;;  %v3749_v10 = vmul.f32 %v3745_v6, %v3745_v6 }
0x2477   : > { %v3754_v12 = vadd.f32 %v3752_v8, %v3742_v63  ;;  %v3751_v13 = vmul.f32 %v3749_v10, %v3745_v6 }
0x2479   : > { %v3756_v14 = vmul.f32 0.7978846, %v3754_v12  ;;  %v3753_v15 = vmul.f32 0.044715, %v3751_v13 }
0x247b   : > { %4979 = vtanh.f32 %v3756_v14  ;;  %v3755_v53 = vadd.f32 %v3753_v15, %v3745_v6 }
0x247d   : > { %v3757_v18 = vmul.f32 0.7978846, %v3755_v53 }
0x247f   : > { %4981 = vtanh.f32 %v3757_v18 }
0x2488   : > { %v4980_v19 = vpop.eup %4979 }
0x2489   : > { %v3760_v20 = vadd.f32 1.0, %v4980_v19 }
0x248b   : > { %v3762_v5 = vmul.f32 0.5, %v3760_v20 }
0x248c   : > { %v4982_v21 = vpop.eup %4981 }
0x248d   : > { %v3761_v23 = vadd.f32 1.0, %v4982_v21  ;;  %v3764_v50 = vmul.f32 %v3762_v5, %v3742_v63 }
0x248f   : > { %v3763_v25 = vmul.f32 0.5, %v3761_v23 }
0x2491   : > { %v3765_v11 = vmul.f32 %v3763_v25, %v3745_v6 }
0x2493   : > { %v3766_v26 = vpack.c.bf16 %v3765_v11, %v3764_v50 }
0x2495   : > { %4780 = vmatmul.mubr.msk.bf16.vlgmr.msra.gmra.mxu1 %vm1736_vm5, %v3766_v26 }
0x2555   : > { %v3844_v31 = vpop.f32.mrf.mxu1 }
0x2556   : > { %v3845_v32 = vadd.f32 %v3844_v31, %v3782_v30 }
0x2557   : > { %v4781_v16 = vpop.f32.mrf.mxu1 }
0x2558   : > { %v3851_v35 = vadd.f32 %v3845_v32, %v5905_v17 }
0x2559   : > { %v3847_v34 = vpop.f32.mrf.mxu1 }
0x255a   : > { %v3848_v59 = vadd.f32 %v3847_v34, %v3782_v30  ;;  %v3853_v37 = vsel %vm758_vm2, %v3851_v35, 0.0 }
0x255b   : > { %v4782_v22 = vpop.f32.mrf.mxu1 }
0x255c   : > { %v3852_v36 = vadd.f32 %v3848_v59, %v5909_v33 }
0x255e   : > { %v3854_v38 = vsel %vm758_vm2, %v3852_v36, 0.0 }
0x255f   : > { %v3855_v39 = vadd.f32 %v3854_v38, %v3853_v37 }
0x2561   : > { %v3856_v40 = vrot.slane %v3855_v39, 4 }
0x2563   : > { %v3857_v41 = vadd.f32 %v3856_v40, %v3855_v39 }
0x2565   : > { %v3858_v42 = vrot.slane %v3857_v41, 2 }
0x2567   : > { %v3859_v44 = vadd.f32 %v3858_v42, %v3857_v41 }
0x2569   : > { %v3860_v9 = vrot.slane %v3859_v44, 1 }
0x256b   : > { %v3861_v45 = vadd.f32 %v3860_v9, %v3859_v44 }
0x256d   : > { %v3863_v46 = vmul.f32 0.0625, %v3861_v45 }
0x256f   : > { %v3866_v47 = vsel %vm758_vm2, %v3863_v46, 0.0 }
0x2570   : > { %3867 = vadd.xlane.f32.xlu0 %v3866_v47 }
0x25f9   : > { %v3868_v17 = vpop.xlane.xlu0 %3867 }
0x25fa   : > { %v3869_v49 = vmul.f32 0.03125, %v3868_v17 }
0x25fc   : > { %v3870_v51 = vsub.f32 %v3863_v46, %v3869_v49 }
0x25fe   : > { %v3871_v52 = vmul.f32 %v3870_v51, %v3870_v51 }
0x2600   : > { %v3872_v33 = vsel %vm758_vm2, %v3871_v52, 0.0 }
0x2601   : > { %3873 = vadd.xlane.f32.xlu1 %v3872_v33 }
0x268a   : > { %v3874_v55 = vpop.xlane.xlu1 %3873 }
0x268b   : > { %v3875_v56 = vmul.f32 0.03125, %v3874_v55 }
0x268d   : > { %v3876_v57 = vadd.f32 1e-05, %v3875_v56 }
0x268f   : > { %4983 = vrsqrt.f32 %v3876_v57 }
0x269c   : > { %v4984_v24 = vpop.eup %4983 }
0x269d   : > { %v3878_v48 = vmul.f32 %v4984_v24, %v3870_v51 }
0x269f   : > { %v3880_v1 = vmul.f32 %v3879_v60, %v3878_v48 }
0x26a1   : > { %v3882_v62 = vadd.f32 %v3881_v61, %v3880_v1 }
0x26a3   : > { %v3883_v63 = vpack.c.bf16 %v3882_v62, %v3882_v62 }
0x26a5   : > { %4788 = vmatmul.mubr.msk.bf16.vlgmr.msra.gmra.mxu0 %vm758_vm2, %v3883_v63 }
0x2765   : > { %v3939_v3 = vpop.f32.mrf.mxu0 }
0x2766   : > { %v3940_v4 = vadd.f32 %v3939_v3, %v3889_v2 }
0x2767   : > { %v4789_v6 = vpop.f32.mrf.mxu0 }
0x2768   : > { %3946 = vst.msk [vmem:[%s649_s23] sm:$0x1] %vm3945_vm6, %v3940_v4 }
0x2769   : > { %v3942_v7 = vpop.f32.mrf.mxu0 }
0x276a   : > { %4998 = shalt.err (!%p4995_p3)
}
0x276b   : > { %s4999_s4 = scalar_lea.hbm %s5988_s26, 16  ;;  %s5003_s21 = scalar_lea.hbm %s6049_s20, 32 }
0x276c   : > { %p5000_p4 = scmp.ne.s32.totalorder %s5988_s26, %s4999_s4  ;;  %p5004_p9 = scmp.lt.s32.totalorder %s5988_s26, %s6049_s20 }
0x276d   : > { %p5005_p10 = scmp.lt.s32.totalorder %s5003_s21, %s4999_s4 }
0x276e   : > { %p5001_p7 = pnand %p5000_p4, %p5198_p5 }
0x276f   : > { %p5006_p11 = por %p5005_p10, %p5004_p9 }
0x2770   : > { %p5002_p8 = pneg %p5001_p7 }
0x2772   : > { %p5007_p12 = pnand %p5006_p11, %p5002_p8 }
0x2774   : > { %5010 = shalt.err (!%p5007_p12)
}
0x2775   : > { %4792 = dma.vmem_to_hbm [thread:$0]  (%p5198_p5), %s5990_s1, 16, %s5988_s26, %s3948_s28   ;;  %v4790_v8 = vpop.f32.mrf.mxu0 }
0x2776 PF: > { %p4798_p13 = scmp.ge.s32.totalorder %s5045_s27, 2  ;;  %s3980_s3 = sand.u32 1, %s5033_s2  }
0x2777   : > { %s3981_s6 = scalar_lea.sflag [#allocation3], %s3980_s3 }
0x2778   : > { %p4795_p0 = pnand %p4798_p13, %p5202_p6 }
0x277a   : > { %p4796_p1 = pneg %p4795_p0 }
0x277c   : > { %5028 = dma.done.wait (%p4796_p1), %s3981_s6, 16  }
0x277d   : > { %5030 = vsyncadd (%p4796_p1), %s3981_s6, 4294967280  ;;  %s6083_s27 = sld [smem:[#allocation6_spill]]  ;;  %s6086_s2 = smov %s5037_s25 }
0x277e   : > { %s6084_s29 = sld [smem:[#allocation5_spill]] }
0x277f   : > { %s6085_s26 = sld [smem:[#allocation7_spill]] }
0x2783   : > { %p32_p2 = scmp.ge.s32.totalorder %s6083_s27, 4  }
0x2784   : > { %s6087_s25 = smov %s6084_s29 }
0x2785   :  { %34 = sbr.rel (!%p32_p2) target bundleno = 12 (0xc), region = 209 }
0x278a   :  { %3993 = vsyncpa [#allocation3], 1 }
0x278b   :  { %3995 = vsyncpa [#allocation3 + $0x1], 1 }

</bundles_post_ra>
